<compile_context>
chip_gen: v6e
topology: v6e:2x2x1
jax: 0.10.0
libtpu: 0.0.40
codegen_flags: <defaults>
</compile_context>

<pallas_src>
import functools
import math

import jax
import jax.numpy as jnp
import numpy as np
from jax import lax
from jax.experimental import pallas as pl
from jax.experimental.pallas import tpu as pltpu

# Module-level constants from the PyTorch script.
BLOCK_SIZE = 256
N_EMBEDDING = 384
NUM_HEADS = 8
HEAD_SIZE = N_EMBEDDING // NUM_HEADS  # 48
DROPOUT_P = 0.2
HP = 128  # head size padded to one full lane tile (lane-dense compute & stores)


def _head_kernel(x_ref, w_ref, bias_ref, *rest, scale, has_dropout):
    """One batch element per grid step.

    x_ref:    (T, C)      bf16  activations
    w_ref:    (C, 3*HP)   bf16  [Wk^T | Wq^T | Wv^T], each zero-padded 48 -> 128
    bias_ref: (T, T)      f32   causal additive bias (0 on/below diag, -inf above)
    drop_ref: (T, T)      f32   dropout scale mask {0, 1/(1-p)}   (train only)
    o_ref:    (T, HP)     out dtype
    """
    if has_dropout:
        drop_ref, o_ref = rest
    else:
        (o_ref,) = rest

    x = x_ref[...]

    # Fused K/Q/V projection: one lane-dense bf16 MXU matmul, f32 accumulation.
    kqv = jnp.dot(x, w_ref[...], preferred_element_type=jnp.float32)  # (T, 3*HP)
    k = kqv[:, 0 * HP:1 * HP]   # 128-lane aligned slices: free vreg selection
    q = kqv[:, 1 * HP:2 * HP]
    v = kqv[:, 2 * HP:3 * HP]

    # wei = (q @ k^T) * sqrt(B).  Contract the last dims directly (no explicit
    # transpose / XLU relayout); padded columns are zero so they contribute 0.
    s = lax.dot_general(
        q.astype(jnp.bfloat16), k.astype(jnp.bfloat16),
        dimension_numbers=(((1,), (1,)), ((), ())),
        preferred_element_type=jnp.float32)                           # (T, T)

    # Causal masked_fill as an additive bias, kept in f32 before exp.
    wei = s * scale + bias_ref[...]

    # Numerically-stable softmax; divide only the (T,1) row-sum, then a cheap
    # broadcast multiply over the (T,T) tile instead of a full-tile divide.
    m = jnp.max(wei, axis=-1, keepdims=True)
    e = jnp.exp(wei - m)
    l = jnp.sum(e, axis=-1, keepdims=True)
    wei = e * (1.0 / l)   # (pl.reciprocal(..., approx=True) on HW; see notes)

    if has_dropout:
        # Dropout(p) folded into a single multiply by {0, 1/(1-p)}.
        wei = wei * drop_ref[...]

    out = jnp.dot(wei.astype(jnp.bfloat16), v.astype(jnp.bfloat16),
                  preferred_element_type=jnp.float32)                 # (T, HP)
    o_ref[...] = out.astype(o_ref.dtype)


def head_forward(x, w_key, w_query, w_value, *, training=True,
                 dropout_p=DROPOUT_P, rng_key=None):
    """Pallas implementation of Head.forward. x: (B, T, C), weights: (H, C)."""
    B, T, C = x.shape
    assert T == BLOCK_SIZE, "full-tril masked_fill requires T == block_size"
    H = w_key.shape[0]
    assert H <= HP
    scale = float(B) ** 0.5  # reproduces `/ k.shape[0] ** (-0.5)` exactly

    # Fused, transposed, zero-padded projection weight (glue, not hot path).
    w_fused = jnp.zeros((C, 3 * HP), jnp.bfloat16)
    w_fused = w_fused.at[:, 0 * HP:0 * HP + H].set(w_key.T.astype(jnp.bfloat16))
    w_fused = w_fused.at[:, 1 * HP:1 * HP + H].set(w_query.T.astype(jnp.bfloat16))
    w_fused = w_fused.at[:, 2 * HP:2 * HP + H].set(w_value.T.astype(jnp.bfloat16))

    x_bf16 = x.astype(jnp.bfloat16)  # halves the per-step activation DMA

    # Precomputed causal additive bias; constant index_map -> resident in VMEM.
    row = lax.broadcasted_iota(jnp.int32, (T, T), 0)
    col = lax.broadcasted_iota(jnp.int32, (T, T), 1)
    bias = jnp.where(col <= row, 0.0, -jnp.inf).astype(jnp.float32)

    has_dropout = bool(training) and dropout_p > 0.0

    operands = [x_bf16, w_fused, bias]
    in_specs = [
        pl.BlockSpec((None, T, C), lambda b: (b, 0, 0)),      # x, one batch/step
        pl.BlockSpec((C, 3 * HP), lambda b: (0, 0)),          # fused W (resident)
        pl.BlockSpec((T, T), lambda b: (0, 0)),               # causal bias (resident)
    ]
    if has_dropout:
        if rng_key is None:
            rng_key = jax.random.PRNGKey(0)
        keep = jax.random.bernoulli(rng_key, 1.0 - dropout_p, (B, T, T))
        drop_scale = keep.astype(jnp.float32) * (1.0 / (1.0 - dropout_p))
        operands.append(drop_scale)
        in_specs.append(pl.BlockSpec((None, T, T), lambda b: (b, 0, 0)))

    kernel = functools.partial(_head_kernel, scale=scale,
                               has_dropout=has_dropout)

    out_padded = pl.pallas_call(
        kernel,
        out_shape=jax.ShapeDtypeStruct((B, T, HP), x.dtype),
        grid=(B,),
        in_specs=in_specs,
        out_specs=pl.BlockSpec((None, T, HP), lambda b: (b, 0, 0)),
        compiler_params=pltpu.CompilerParams(
            dimension_semantics=("parallel",)),   # batch is independent (v7x 2 TCs)
    )(*operands)

    # Drop the lane-padding columns (128 -> 48) outside the hot loop.
    return out_padded[..., :H]


def head_reference(x, w_key, w_query, w_value):
    """Pure-JAX f32 reference of the torch forward (dropout in eval / identity)."""
    B, T, C = x.shape
    k = x @ w_key.T
    q = x @ w_query.T
    v = x @ w_value.T
    wei = (q @ jnp.swapaxes(k, -2, -1)) / (float(B) ** -0.5)
    tril = jnp.tril(jnp.ones((BLOCK_SIZE, BLOCK_SIZE), jnp.float32))
    wei = jnp.where(tril == 0, -jnp.inf, wei)
    wei = jax.nn.softmax(wei, axis=-1)
    return wei @ v


if __name__ == "__main__":
    B = 2
    key = jax.random.PRNGKey(0)
    kx, kk, kq, kv, kd = jax.random.split(key, 5)

    x = jax.random.normal(kx, (B, BLOCK_SIZE, N_EMBEDDING), jnp.float32)

    # Deterministic nn.Linear-style init: U(-1/sqrt(in), 1/sqrt(in)), shape (out, in).
    bound = 1.0 / math.sqrt(N_EMBEDDING)
    w_key = jax.random.uniform(kk, (HEAD_SIZE, N_EMBEDDING), jnp.float32, -bound, bound)
    w_query = jax.random.uniform(kq, (HEAD_SIZE, N_EMBEDDING), jnp.float32, -bound, bound)
    w_value = jax.random.uniform(kv, (HEAD_SIZE, N_EMBEDDING), jnp.float32, -bound, bound)

    # Eval path (dropout identity) — verify numerically against the f32 reference.
    # Tolerance reflects bf16 MXU operands (f32 accumulation) on sqrt(B)-scaled logits.
    out_eval = jax.block_until_ready(
        head_forward(x, w_key, w_query, w_value, training=False))
    ref = head_reference(x, w_key, w_query, w_value)
    assert out_eval.shape == (B, BLOCK_SIZE, HEAD_SIZE)
    max_err = float(np.max(np.abs(np.asarray(out_eval) - np.asarray(ref))))
    assert np.allclose(np.asarray(out_eval), np.asarray(ref),
                       atol=3e-2, rtol=3e-2), max_err

    # Train path (dropout active, as in torch's default .train() mode).
    out_train = jax.block_until_ready(
        head_forward(x, w_key, w_query, w_value, training=True, rng_key=kd))
    assert out_train.shape == (B, BLOCK_SIZE, HEAD_SIZE)
    assert bool(jnp.all(jnp.isfinite(out_train)))

    print("KERNEL_OK")
</pallas_src>

<mosaic_0001>
module attributes {stable_mosaic.version = 11 : i64} {
  func.func @_head_kernel(%arg0: i32, %arg1: memref<1x256x384xbf16, #tpu.memory_space<vmem>>, %arg2: memref<384x384xbf16, #tpu.memory_space<vmem>>, %arg3: memref<256x256xf32, #tpu.memory_space<vmem>>, %arg4: memref<1x256x128xf32, #tpu.memory_space<vmem>>) attributes {dimension_semantics = [#tpu.dimension_semantics<parallel>], iteration_bounds = array<i64: 2>, scalar_prefetch = 0 : i64, scratch_operands = 0 : i64, tpu.core_type = #tpu.core_type<tc>, window_params = [{transform_indices = @transform_0, window_bounds = array<i64: 1, 256, 384>}, {pipeline_mode = #tpu.pipeline_mode<synchronous>, transform_indices = @transform_1, window_bounds = array<i64: 384, 384>}, {pipeline_mode = #tpu.pipeline_mode<synchronous>, transform_indices = @transform_2, window_bounds = array<i64: 256, 256>}, {transform_indices = @transform_3, window_bounds = array<i64: 1, 256, 128>}]} {
    %c0 = arith.constant 0 : index
    %c0_0 = arith.constant 0 : index
    %c0_1 = arith.constant 0 : index
    %0 = vector.load %arg1[%c0, %c0_0, %c0_1] : memref<1x256x384xbf16, #tpu.memory_space<vmem>>, vector<1x256x384xbf16>
    %1 = vector.shape_cast %0 : vector<1x256x384xbf16> to vector<256x384xbf16>
    %c0_2 = arith.constant 0 : index
    %c0_3 = arith.constant 0 : index
    %2 = vector.load %arg2[%c0_2, %c0_3] : memref<384x384xbf16, #tpu.memory_space<vmem>>, vector<384x384xbf16>
    %cst = arith.constant dense<0.000000e+00> : vector<256x384xf32>
    %3 = tpu.matmul %1, %2, %cst {dimension_numbers = #tpu.dot_dimension_numbers<[1], [0], [0], [1], [0, 0, 1, 1], [], []>} : vector<256x384xbf16>, vector<384x384xbf16>, vector<256x384xf32> -> vector<256x384xf32>
    %4 = vector.extract_strided_slice %3 {offsets = [0, 0], sizes = [256, 128], strides = [1, 1]} : vector<256x384xf32> to vector<256x128xf32>
    %5 = vector.extract_strided_slice %3 {offsets = [0, 128], sizes = [256, 128], strides = [1, 1]} : vector<256x384xf32> to vector<256x128xf32>
    %6 = vector.extract_strided_slice %3 {offsets = [0, 256], sizes = [256, 128], strides = [1, 1]} : vector<256x384xf32> to vector<256x128xf32>
    %7 = arith.truncf %5 : vector<256x128xf32> to vector<256x128xbf16>
    %8 = arith.truncf %4 : vector<256x128xf32> to vector<256x128xbf16>
    %cst_4 = arith.constant dense<0.000000e+00> : vector<256x256xf32>
    %9 = tpu.matmul %7, %8, %cst_4 {dimension_numbers = #tpu.dot_dimension_numbers<[1], [1], [0], [0], [0, 0, 1, 0], [], []>} : vector<256x128xbf16>, vector<256x128xbf16>, vector<256x256xf32> -> vector<256x256xf32>
    %cst_5 = arith.constant 1.41421354 : f32
    %10 = vector.broadcast %cst_5 : f32 to vector<256x256xf32>
    %11 = arith.mulf %9, %10 : vector<256x256xf32>
    %c0_6 = arith.constant 0 : index
    %c0_7 = arith.constant 0 : index
    %12 = vector.load %arg3[%c0_6, %c0_7] : memref<256x256xf32, #tpu.memory_space<vmem>>, vector<256x256xf32>
    %13 = arith.addf %11, %12 : vector<256x256xf32>
    %cst_8 = arith.constant dense<0xFF800000> : vector<256xf32>
    %14 = vector.multi_reduction <maximumf>, %13, %cst_8 [1] : vector<256x256xf32> to vector<256xf32>
    %15 = vector.shape_cast %14 : vector<256xf32> to vector<256x1xf32>
    %16 = vector.broadcast %15 : vector<256x1xf32> to vector<256x256xf32>
    %17 = arith.subf %13, %16 : vector<256x256xf32>
    %18 = math.exp %17 : vector<256x256xf32>
    %cst_9 = arith.constant dense<0.000000e+00> : vector<256xf32>
    %19 = vector.multi_reduction <add>, %18, %cst_9 [1] : vector<256x256xf32> to vector<256xf32>
    %20 = vector.shape_cast %19 : vector<256xf32> to vector<256x1xf32>
    %cst_10 = arith.constant 1.000000e+00 : f32
    %21 = vector.broadcast %cst_10 : f32 to vector<256x1xf32>
    %22 = arith.divf %21, %20 : vector<256x1xf32>
    %23 = vector.broadcast %22 : vector<256x1xf32> to vector<256x256xf32>
    %24 = arith.mulf %18, %23 : vector<256x256xf32>
    %25 = arith.truncf %24 : vector<256x256xf32> to vector<256x256xbf16>
    %26 = arith.truncf %6 : vector<256x128xf32> to vector<256x128xbf16>
    %cst_11 = arith.constant dense<0.000000e+00> : vector<256x128xf32>
    %27 = tpu.matmul %25, %26, %cst_11 {dimension_numbers = #tpu.dot_dimension_numbers<[1], [0], [0], [1], [0, 0, 1, 1], [], []>} : vector<256x256xbf16>, vector<256x128xbf16>, vector<256x128xf32> -> vector<256x128xf32>
    %c0_12 = arith.constant 0 : index
    %c0_13 = arith.constant 0 : index
    %c0_14 = arith.constant 0 : index
    %28 = vector.load %arg4[%c0_12, %c0_13, %c0_14] : memref<1x256x128xf32, #tpu.memory_space<vmem>>, vector<1x256x128xf32>
    %29 = vector.shape_cast %28 : vector<1x256x128xf32> to vector<256x128xf32>
    %30 = vector.shape_cast %27 : vector<256x128xf32> to vector<1x256x128xf32>
    tpu.vector_store %arg4[%c0_12, %c0_13, %c0_14], %30 {strides = array<i32>} : memref<1x256x128xf32, #tpu.memory_space<vmem>>, vector<1x256x128xf32>,
    return
  }
  func.func @transform_0(%arg0: i32) -> (i32, i32, i32) {
    %c0_i32 = arith.constant 0 : i32
    %c0_i32_0 = arith.constant 0 : i32
    %c0_i32_1 = arith.constant 0 : i32
    return %arg0, %c0_i32, %c0_i32_0 : i32, i32, i32
  }
  func.func @transform_1(%arg0: i32) -> (i32, i32) {
    %c0_i32 = arith.constant 0 : i32
    %c0_i32_0 = arith.constant 0 : i32
    %c0_i32_1 = arith.constant 0 : i32
    return %c0_i32, %c0_i32_0 : i32, i32
  }
  func.func @transform_2(%arg0: i32) -> (i32, i32) {
    %c0_i32 = arith.constant 0 : i32
    %c0_i32_0 = arith.constant 0 : i32
    %c0_i32_1 = arith.constant 0 : i32
    return %c0_i32, %c0_i32_0 : i32, i32
  }
  func.func @transform_3(%arg0: i32) -> (i32, i32, i32) {
    %c0_i32 = arith.constant 0 : i32
    %c0_i32_0 = arith.constant 0 : i32
    %c0_i32_1 = arith.constant 0 : i32
    return %arg0, %c0_i32, %c0_i32_0 : i32, i32, i32
  }
}

</mosaic_0001>

<bundles_post_ra>
// kernel: tpu_custom_call.1
= control target key start
LH: loop header
LB: loop body
LE: loop exit
PB: predicated region body
PF: predicated region fallthrough
CT: control target
= control target key end

     0   :  { %8 = vsyncpa [#allocation3], 0  ;;  %s5438_s0 = inlined_call_operand.hbm [shape: bf16[2,256,384], index: 0, kind: input, shape index: {}]   ;;  %s5439_s1 = inlined_call_operand.hbm [shape: bf16[384,384], index: 1, kind: input, shape index: {}]   ;;  %s5440_s2 = inlined_call_operand.hbm [shape: f32[256,256], index: 2, kind: input, shape index: {}]   ;;  %s5441_s3 = inlined_call_operand.hbm [shape: f32[2,256,128], index: 3, kind: output, shape index: {}]  }
   0x1   :  { %10 = vsyncpa [#allocation3 + $0x1], 0 }
   0x2   :  { %11 = vsyncpa [#allocation6], 0 }
   0x3   :  { %12 = vsyncpa [#allocation4], 0 }
   0x4   :  { %14 = vsyncpa [#allocation4 + $0x1], 0  ;;  %s4109_s12 = smov 0   ;;  %s4111_s13 = smov 0  }
   0x5   :  { %s4113_s14 = smov 0   ;;  %s4115_s15 = smov 0  }
   0x6 LB: > { %s4130_s16 = sadd.s32 4294967295, %s4076_s15   ;;  %s3003_s17 = sadd.s32 4294967294, %s4076_s15   ;;  %s4076_s15 = sphi %s4115_s15, %s5625_s15   ;;  %s4072_s14 = sphi %s4113_s14, %s5624_s14   ;;  %s4068_s13 = sphi %s4111_s13, %s5623_s13   ;;  %s4064_s12 = sphi %s4109_s12, %s5622_s12  }
   0x7   : > { %p40_p0 = scmp.ne.s32.totalorder %s4068_s13, %s4064_s12  ;;  %p5442_p1 = scmp.eq.s32.totalorder %s4130_s16, 0 }
   0x8   : > { %p106_p2 = scmp.eq.s32.totalorder %s4130_s16, 1  ;;  %p112_p3 = scmp.eq.s32.totalorder %s3003_s17, 1 }
   0x9   : > { %p4139_p4 = por %p5442_p1, %p40_p0  ;;  %p3004_p5 = scmp.ge.s32.totalorder %s4076_s15, 1 }
   0xa   : > { %p4144_p6 = por %p112_p3, %p40_p0  ;;  %p119_p7 = scmp.lt.s32.totalorder %s4076_s15, 3 }
   0xb   : > { %s5476_s18 = scalar_select %p4139_p4, 1, 0 }
   0xc   : > { %s5477_s19 = scalar_select %p4144_p6, 1, 0 }
   0xd   : > { %p4149_p8 = pnand %p3004_p5, %p119_p7  ;;  %s4078_s21 = smov [#allocation5]  }
   0xe   : > { %s131_s22 = sshll.u32 %s4078_s21, 4  ;;  %s4079_s24 = smov [#allocation7]   ;;  %s132_s22 = int_to_ptr.vmem [resolvable:$true] %s131_s22 }
   0xf   : > { %s5478_s20 = scalar_select %p4149_p8, 1, 0 }
  0x10   : > { %p3514_p9 = pneg %p4149_p8  ;;  %s144_s25 = sshll.u32 %s4079_s24, 4  ;;  %s145_s25 = int_to_ptr.vmem [resolvable:$true] %s144_s25 }
  0x11   : > { %s3939_s26 = scalar_lea.vmem %s132_s22, 9216  ;;  %p3947_p5 = scmp.lt.s32.totalorder %s132_s22, %s132_s22 }
  0x12   : > { %p4158_p11 = pnand %p3514_p9, %p5442_p1  ;;  %p3940_p13 = scmp.ne.s32.totalorder %s132_s22, %s3939_s26 }
  0x13   : > { %p3948_p7 = scmp.lt.s32.totalorder %s3939_s26, %s3939_s26 }
  0x14   : > { %p3930_p12 = pneg %p4158_p11 }
  0x15   : > { %p3949_p10 = por %p3948_p7, %p3947_p5 }
  0x16   : > { %p3942_p0 = pnand %p3940_p13, %p3930_p12 }
  0x18   : > { %p3943_p3 = pneg %p3942_p0 }
  0x1a   : > { %p3950_p9 = pnand %p3949_p10, %p3943_p3 }
  0x1c   : > { %3953 = shalt.err (!%p3950_p9)
}
  0x1d   : > { %s4080_s27 = smov 192   ;;  %s4081_s28 = smov 12  }
  0x1e   : > { %3517 = dma.hbm_to_vmem [thread:$0]  (!%p4158_p11), %s5439_s1, 9216, %s132_s22, [#allocation6], %s4080_s27, %s4080_s27, %s4081_s28  }
  0x1f   : > { %s3965_s4 = scalar_lea.vmem %s145_s25, 8192  ;;  %p3973_p10 = scmp.lt.s32.totalorder %s145_s25, %s145_s25 }
  0x20   : > { %p3966_p13 = scmp.ne.s32.totalorder %s145_s25, %s3965_s4  ;;  %p3974_p3 = scmp.lt.s32.totalorder %s3965_s4, %s3965_s4 }
  0x22   : > { %p3968_p0 = pnand %p3966_p13, %p3930_p12  ;;  %p3975_p7 = por %p3974_p3, %p3973_p10 }
  0x24   : > { %p3969_p5 = pneg %p3968_p0 }
  0x26   : > { %p3976_p9 = pnand %p3975_p7, %p3969_p5 }
  0x28   : > { %3979 = shalt.err (!%p3976_p9)
}
  0x29   : > { %s4082_s5 = smov 256   ;;  %s4083_s6 = smov 16  }
  0x2a   : > { %3520 = dma.hbm_to_vmem [thread:$0]  (!%p4158_p11), %s5440_s2, 8192, %s145_s25, [#allocation6], %s4082_s5, %s4082_s5, %s4083_s6  }
  0x2b   : > { %s4184_s9 = sadd.s32 1, %s4076_s15   ;;  %s27_s11 = sadd.s32 1, %s4072_s14 }
  0x2c   : > { %s24_s10 = ssub.s32 %s4076_s15, %s4184_s9  ;;  %p34_p13 = scmp.ne.s32.totalorder %s4072_s14, %s4068_s13 }
  0x2d   : > { %p25_p12 = scmp.eq.s32.totalorder %s24_s10, 0  ;;  %p35_p0 = scmp.eq.s32.totalorder %s4076_s15, 0 }
  0x2e   : > { %p4197_p10 = por %p106_p2, %p34_p13  ;;  %p3531_p3 = scmp.lt.s32.totalorder %s4076_s15, 2 }
  0x2f   : > { %s4193_s17 = scalar_select %p25_p12, %s4072_s14, %s27_s11  }
  0x30   : > { %p36_p5 = por %p35_p0, %p34_p13  ;;  %s158_s22 = sand.u32 1, %s4072_s14  }
  0x31   : > { %s5480_s21 = scalar_select %p4197_p10, 1, 0 }
  0x32   : > { %s3499_s23 = smul.u32 384, %s158_s22  ;;  %p4204_p11 = pnand %p3531_p3, %p36_p5 }
  0x33   : > { %s3500_s24 = smul.u32 6144, %s4076_s15  ;;  %s4215_s6 = scalar_lea.sflag [#allocation3], %s158_s22 }
  0x34   : > { %s162_s4 = scalar_lea.vmem [#allocation2], %s3499_s23  ;;  %p3982_p7 = pneg %p4204_p11 }
  0x35   : > { %s4211_s30 = scalar_lea.hbm %s5438_s0, %s3500_s24  ;;  %s169_s5 = sshll.u32 %s162_s4, 4  ;;  %s4213_s5 = int_to_ptr.vmem [resolvable:$true] %s169_s5 }
  0x36   : > { %s3980_s7 = scalar_lea.hbm %s4211_s30, 6144  ;;  %s3985_s11 = scalar_lea.hbm %s5438_s0, 12288 }
  0x37   : > { %p3981_p2 = scmp.ne.s32.totalorder %s4211_s30, %s3980_s7  ;;  %p3986_p13 = scmp.lt.s32.totalorder %s4211_s30, %s5438_s0 }
  0x38   : > { %p3987_p0 = scmp.lt.s32.totalorder %s3985_s11, %s3980_s7 }
  0x39   : > { %p3983_p9 = pnand %p3982_p7, %p3981_p2 }
  0x3a   : > { %p3988_p5 = por %p3987_p0, %p3986_p13 }
  0x3b   : > { %p3984_p12 = pneg %p3983_p9 }
  0x3d   : > { %p3989_p3 = pnand %p3988_p5, %p3984_p12 }
  0x3f   : > { %3992 = shalt.err (!%p3989_p3)
}
  0x40   : > { %s3993_s22 = scalar_lea.vmem %s4213_s5, 6144  ;;  %s4084_s23 = smov [#allocation2]  }
  0x41   : > { %p3994_p1 = scmp.ne.s32.totalorder %s4213_s5, %s3993_s22  ;;  %s3998_s29 = sshll.u32 %s4084_s23, 4  ;;  %s3999_s29 = int_to_ptr.vmem [resolvable:$false] %s3998_s29 }
  0x42   : > { %s4000_s4 = scalar_lea.vmem %s3999_s29, 12288  ;;  %p4001_p9 = scmp.lt.s32.totalorder %s4213_s5, %s3999_s29 }
  0x43   : > { %p3996_p6 = pnand %p3994_p1, %p3982_p7  ;;  %p4002_p10 = scmp.lt.s32.totalorder %s4000_s4, %s3993_s22 }
  0x45   : > { %p3997_p2 = pneg %p3996_p6  ;;  %p4003_p4 = por %p4002_p10, %p4001_p9 }
  0x47   : > { %p4004_p8 = pnand %p4003_p4, %p3997_p2 }
  0x49   : > { %4007 = shalt.err (!%p4004_p8)
}
  0x4a   : > { %3524 = dma.hbm_to_vmem [thread:$0]  (!%p4204_p11), %s4211_s30, 6144, %s4213_s5, %s4215_s6, %s4080_s27, %s4080_s27, %s4081_s28  }
  0x4b   : > { %p5482_p1 = scmp.ne.s32.totalorder %s5478_s20, 0 }
  0x4d   : > { %181 = sbr.rel (%p5482_p1) target bundleno = 1463 (0x5b7), region = 32 }
  0x52   : > { %s4242_s7 = sand.u32 1, %s4068_s13   ;;  %p5483_p4 = scmp.ne.s32.totalorder %s5476_s18, 0 }
  0x53   : > { %s3501_s8 = smul.u32 384, %s4242_s7  ;;  %s184_s10 = scalar_lea.sflag [#allocation3], %s4242_s7 }
  0x55   : > { %s4246_s11 = scalar_lea.vmem [#allocation2], %s3501_s8 }
  0x56   : > { %4051 = dma.done.wait (%p5483_p4), %s184_s10, 6144  }
  0x57   : > { %4053 = vsyncadd (%p5483_p4), %s184_s10, 4294961152  ;;  %p5484_p6 = scmp.eq.s32.totalorder %s4130_s16, 0 }
  0x59   : > { %4055 = dma.done.wait (%p5484_p6), [#allocation6], 17408   ;;  %p5485_p8 = pmov %p5484_p6 }
  0x5a   : > { %v4085_v0 = vmov 0   ;;  %v3576_v1 = vld [vmem:[#allocation5 + $0xac] ss:$12 sps:$4 sm:$0xff]   ;;  %v3578_v2 = vld [vmem:[#allocation5 + $0xa8] ss:$12 sps:$4 sm:$0xff]   ;;  %s3012_s18 = sshll.u32 %s4242_s7, 8 }
  0x5b   : > { %4057 = vsyncadd (%p5485_p8), [#allocation6], 4294949888  ;;  %1244 = vmatprep.mubr.bf16.mxu1 %v4085_v0  ;;  %1019 = vmatprep.subr.bf16.mxu0 %v3576_v1  ;;  %v3579_v3 = vld [vmem:[#allocation5 + $0x94] ss:$12 sps:$4 sm:$0xff]   ;;  %v3581_v4 = vld [vmem:[#allocation5 + $0x90] ss:$12 sps:$4 sm:$0xff]  }
  0x5c   : > { %1020 = vmatpush1.bf16.msra.mxu0 %v3578_v2  ;;  %v3582_v5 = vld [vmem:[#allocation5 + $0x7c] ss:$12 sps:$4 sm:$0xff]   ;;  %v3584_v6 = vld [vmem:[#allocation5 + $0x78] ss:$12 sps:$4 sm:$0xff]   ;;  %v3587_v10 = vld [vmem:[#allocation5 + $0x60] ss:$12 sps:$4 sm:$0xff]  }
  0x5d   : > { %1021 = vmatprep.subr.bf16.mxu0 %v3579_v3  ;;  %v3585_v7 = vld [vmem:[#allocation5 + $0x64] ss:$12 sps:$4 sm:$0xff]   ;;  %v3597_v8 = vld [vmem:[#allocation5 + $0x22c] ss:$12 sps:$4 sm:$0xff]   ;;  %v3599_v9 = vld [vmem:[#allocation5 + $0x228] ss:$12 sps:$4 sm:$0xff]  }
  0x5e   : > { %v3588_v11 = vld [vmem:[#allocation5 + $0x4c] ss:$12 sps:$4 sm:$0xff]   ;;  %1212 = vmatprep.subr.bf16.mxu1 %v3597_v8  ;;  %v3603_v12 = vld [vmem:[#allocation5 + $0x214] ss:$12 sps:$4 sm:$0xff]   ;;  %v3605_v13 = vld [vmem:[#allocation5 + $0x210] ss:$12 sps:$4 sm:$0xff]  }
  0x5f   : > { %1213 = vmatpush1.bf16.msra.mxu1 %v3599_v9  ;;  %v3590_v14 = vld [vmem:[#allocation5 + $0x48] ss:$12 sps:$4 sm:$0xff]   ;;  %v3611_v17 = vld [vmem:[#allocation5 + $0x1f8] ss:$12 sps:$4 sm:$0xff]   ;;  %v3593_v19 = vld [vmem:[#allocation5 + $0x30] ss:$12 sps:$4 sm:$0xff]  }
  0x60   : > { %1022 = vmatpush1.bf16.msra.mxu0 %v3581_v4  ;;  %1214 = vmatprep.subr.bf16.mxu1 %v3603_v12  ;;  %v3609_v15 = vld [vmem:[#allocation5 + $0x1fc] ss:$12 sps:$4 sm:$0xff]   ;;  %v3591_v16 = vld [vmem:[#allocation5 + $0x34] ss:$12 sps:$4 sm:$0xff]   ;;  %v3615_v18 = vld [vmem:[#allocation5 + $0x1e4] ss:$12 sps:$4 sm:$0xff]  }
  0x61   : > { %1023 = vmatprep.subr.bf16.mxu0 %v3582_v5  ;;  %v3594_v20 = vld [vmem:[#allocation5 + $0x1c] ss:$12 sps:$4 sm:$0xff]   ;;  %v3617_v21 = vld [vmem:[#allocation5 + $0x1e0] ss:$12 sps:$4 sm:$0xff]   ;;  %v3596_v23 = vld [vmem:[#allocation5 + $0x18] ss:$12 sps:$4 sm:$0xff]  }
  0x62   : > { %v3621_v22 = vld [vmem:[#allocation5 + $0x1cc] ss:$12 sps:$4 sm:$0xff]   ;;  %v3600_v24 = vld [vmem:[#allocation5 + $0x4] ss:$12 sps:$4 sm:$0xff]   ;;  %v3623_v25 = vld [vmem:[#allocation5 + $0x1c8] ss:$12 sps:$4 sm:$0xff]  }
  0x63   : > { %1215 = vmatpush1.bf16.msra.mxu1 %v3605_v13  ;;  %v3627_v26 = vld [vmem:[#allocation5 + $0x1b4] ss:$12 sps:$4 sm:$0xff]   ;;  %v3606_v28 = vld [vmem:[#allocation5 + $0x16c] ss:$12 sps:$4 sm:$0xff]   ;;  %v3629_v29 = vld [vmem:[#allocation5 + $0x1b0] ss:$12 sps:$4 sm:$0xff]  }
  0x64   : > { %1024 = vmatpush1.bf16.msra.mxu0 %v3584_v6  ;;  %1216 = vmatprep.subr.bf16.mxu1 %v3609_v15  ;;  %v3602_v27 = vld [vmem:[#allocation5] ss:$12 sps:$4 sm:$0xff]   ;;  %v3633_v30 = vld [vmem:[#allocation5 + $0x19c] ss:$12 sps:$4 sm:$0xff]   ;;  %v3635_v33 = vld [vmem:[#allocation5 + $0x198] ss:$12 sps:$4 sm:$0xff]  }
  0x65   : > { %1025 = vmatprep.subr.bf16.mxu0 %v3585_v7  ;;  %v3608_v31 = vld [vmem:[#allocation5 + $0x168] ss:$12 sps:$4 sm:$0xff]   ;;  %v3639_v34 = vld [vmem:[#allocation5 + $0x184] ss:$12 sps:$4 sm:$0xff]   ;;  %v3641_v38 = vld [vmem:[#allocation5 + $0x180] ss:$12 sps:$4 sm:$0xff]  }
  0x66   : > { %v3612_v32 = vld [vmem:[#allocation5 + $0x154] ss:$12 sps:$4 sm:$0xff]   ;;  %v4258_v35 = vld [vmem:[%s4246_s11 + $0x4] ss:$12 sps:$4 sm:$0xff]   ;;  %v3618_v37 = vld [vmem:[#allocation5 + $0x13c] ss:$12 sps:$4 sm:$0xff]  }
  0x67   : > { %1217 = vmatpush1.bf16.msra.mxu1 %v3611_v17  ;;  %v3614_v36 = vld [vmem:[#allocation5 + $0x150] ss:$12 sps:$4 sm:$0xff]   ;;  %1051 = vmatprep.mubr.bf16.mxu0 %v4258_v35  ;;  %v3620_v39 = vld [vmem:[#allocation5 + $0x138] ss:$12 sps:$4 sm:$0xff]   ;;  %v4262_v41 = vld [vmem:[%s4246_s11 + $0x8] ss:$12 sps:$4 sm:$0xff]  }
  0x68   : > { %1026 = vmatpush1.bf16.msra.mxu0 %v3587_v10  ;;  %1218 = vmatprep.subr.bf16.mxu1 %v3615_v18  ;;  %v3624_v40 = vld [vmem:[#allocation5 + $0x124] ss:$12 sps:$4 sm:$0xff]   ;;  %v3626_v42 = vld [vmem:[#allocation5 + $0x120] ss:$12 sps:$4 sm:$0xff]   ;;  %v3632_v44 = vld [vmem:[#allocation5 + $0x108] ss:$12 sps:$4 sm:$0xff]  }
  0x69   : > { %1027 = vmatprep.subr.bf16.mxu0 %v3588_v11  ;;  %v3630_v43 = vld [vmem:[#allocation5 + $0x10c] ss:$12 sps:$4 sm:$0xff]   ;;  %v3636_v45 = vld [vmem:[#allocation5 + $0xf4] ss:$12 sps:$4 sm:$0xff]   ;;  %v3638_v47 = vld [vmem:[#allocation5 + $0xf0] ss:$12 sps:$4 sm:$0xff]  }
  0x6a   : > { %v4267_v46 = vld [vmem:[%s4246_s11 + $0x20] ss:$12 sps:$4 sm:$0xff]   ;;  %v3642_v48 = vld [vmem:[#allocation5 + $0xdc] ss:$12 sps:$4 sm:$0xff]   ;;  %v3644_v49 = vld [vmem:[#allocation5 + $0xd8] ss:$12 sps:$4 sm:$0xff]  }
  0x6b   : > { %1219 = vmatpush1.bf16.msra.mxu1 %v3617_v21  ;;  %v3646_v50 = vld [vmem:[#allocation5 + $0xc4] ss:$12 sps:$4 sm:$0xff]   ;;  %v3648_v52 = vld [vmem:[#allocation5 + $0xc0] ss:$12 sps:$4 sm:$0xff]   ;;  %v4280_v54 = vld [vmem:[%s4246_s11 + $0x1c] ss:$12 sps:$4 sm:$0xff]  }
  0x6c   : > { %1028 = vmatpush1.bf16.msra.mxu0 %v3590_v14  ;;  %1220 = vmatprep.subr.bf16.mxu1 %v3621_v22  ;;  %v4272_v51 = vld [vmem:[%s4246_s11 + $0x38] ss:$12 sps:$4 sm:$0xff]   ;;  %v4277_v53 = vld [vmem:[%s4246_s11] ss:$12 sps:$4 sm:$0xff]   ;;  %v4283_v55 = vld [vmem:[%s4246_s11 + $0x50] ss:$12 sps:$4 sm:$0xff]  }
  0x6d   : > { %1029 = vmatprep.subr.bf16.mxu0 %v3591_v16  ;;  %v4288_v56 = vld [vmem:[%s4246_s11 + $0x18] ss:$12 sps:$4 sm:$0xff]   ;;  %v3709_v57 = vld [vmem:[#allocation5 + $0x230] ss:$12 sps:$4 sm:$0xff]   ;;  %v4293_v59 = vld [vmem:[%s4246_s11 + $0x34] ss:$12 sps:$4 sm:$0xff]  }
  0x6e   : > { %v3710_v58 = vld [vmem:[#allocation5 + $0x218] ss:$12 sps:$4 sm:$0xff]   ;;  %v4296_v60 = vld [vmem:[%s4246_s11 + $0x68] ss:$12 sps:$4 sm:$0xff]   ;;  %v3714_v61 = vld [vmem:[#allocation5 + $0x200] ss:$12 sps:$4 sm:$0xff]  }
  0x6f   : > { %1221 = vmatpush1.bf16.msra.mxu1 %v3623_v25  ;;  %v3715_v62 = vld [vmem:[#allocation5 + $0x1e8] ss:$12 sps:$4 sm:$0xff]   ;;  %v3717_v63 = vld [vmem:[#allocation5 + $0x170] ss:$12 sps:$4 sm:$0xff]   ;;  %v4305_v3 = vld [vmem:[%s4246_s11 + $0x4c] ss:$12 sps:$4 sm:$0xff]  }
  0x70   : > { %1030 = vmatpush1.bf16.msra.mxu0 %v3593_v19  ;;  %1222 = vmatprep.subr.bf16.mxu1 %v3627_v26  ;;  %v4301_v1 = vld [vmem:[%s4246_s11 + $0x30] ss:$12 sps:$4 sm:$0xff]   ;;  %v4309_v4 = vld [vmem:[%s4246_s11 + $0x80] ss:$12 sps:$4 sm:$0xff]   ;;  %v3720_v5 = vld [vmem:[#allocation5 + $0x158] ss:$12 sps:$4 sm:$0xff]  }
  0x71   : > { %1031 = vmatprep.subr.bf16.mxu0 %v3594_v20  ;;  %v3718_v2 = vld [vmem:[#allocation5 + $0xb0] ss:$12 sps:$4 sm:$0xff]   ;;  %v3721_v6 = vld [vmem:[#allocation5 + $0x98] ss:$12 sps:$4 sm:$0xff]   ;;  %v3723_v8 = vld [vmem:[#allocation5 + $0x140] ss:$12 sps:$4 sm:$0xff]  }
  0x72   : > { %v3716_v7 = vld [vmem:[#allocation5 + $0x1d0] ss:$12 sps:$4 sm:$0xff]   ;;  %v3724_v9 = vld [vmem:[#allocation5 + $0x80] ss:$12 sps:$4 sm:$0xff]   ;;  %v3719_v10 = vld [vmem:[#allocation5 + $0x1b8] ss:$12 sps:$4 sm:$0xff]  }
  0x73   : > { %1223 = vmatpush1.bf16.msra.mxu1 %v3629_v29  ;;  %v4314_v11 = vld [vmem:[%s4246_s11 + $0x48] ss:$12 sps:$4 sm:$0xff]   ;;  %v4318_v13 = vld [vmem:[%s4246_s11 + $0x64] ss:$12 sps:$4 sm:$0xff]   ;;  %v3722_v16 = vld [vmem:[#allocation5 + $0x1a0] ss:$12 sps:$4 sm:$0xff]  }
  0x74   : > { %1032 = vmatpush1.bf16.msra.mxu0 %v3596_v23  ;;  %1224 = vmatprep.subr.bf16.mxu1 %v3633_v30  ;;  %v3726_v12 = vld [vmem:[#allocation5 + $0x128] ss:$12 sps:$4 sm:$0xff]   ;;  %v4322_v15 = vld [vmem:[%s4246_s11 + $0x98] ss:$12 sps:$4 sm:$0xff]   ;;  %v3728_v17 = vld [vmem:[#allocation5 + $0x110] ss:$12 sps:$4 sm:$0xff]  }
  0x75   : > { %1033 = vmatprep.subr.bf16.mxu0 %v3600_v24  ;;  %v3727_v14 = vld [vmem:[#allocation5 + $0x68] ss:$12 sps:$4 sm:$0xff]   ;;  %v3729_v18 = vld [vmem:[#allocation5 + $0x50] ss:$12 sps:$4 sm:$0xff]   ;;  %v3730_v19 = vld [vmem:[#allocation5 + $0xf8] ss:$12 sps:$4 sm:$0xff]  }
  0x76   : > { %v3725_v20 = vld [vmem:[#allocation5 + $0x188] ss:$12 sps:$4 sm:$0xff]   ;;  %v4329_v21 = vld [vmem:[%s4246_s11 + $0x60] ss:$12 sps:$4 sm:$0xff]   ;;  %v3731_v22 = vld [vmem:[#allocation5 + $0x38] ss:$12 sps:$4 sm:$0xff]  }
  0x77   : > { %1225 = vmatpush1.bf16.msra.mxu1 %v3635_v33  ;;  %v4332_v23 = vld [vmem:[%s4246_s11 + $0x7c] ss:$12 sps:$4 sm:$0xff]   ;;  %v3732_v25 = vld [vmem:[#allocation5 + $0xe0] ss:$12 sps:$4 sm:$0xff]   ;;  %s5354_s20 = scalar_lea.vmem [#allocation8], %s3012_s18  ;;  %s3138_s27 = sshll.u32 %s4130_s16, 12 }
  0x78   : > { %1034 = vmatpush1.bf16.msra.mxu0 %v3602_v27  ;;  %1226 = vmatprep.subr.bf16.mxu1 %v3639_v34  ;;  %v4335_v24 = vld [vmem:[%s4246_s11 + $0xb0] ss:$12 sps:$4 sm:$0xff]   ;;  %v3733_v26 = vld [vmem:[#allocation5 + $0x20] ss:$12 sps:$4 sm:$0xff]   ;;  %v3734_v27 = vld [vmem:[#allocation5 + $0xc8] ss:$12 sps:$4 sm:$0xff]   ;;  %s5392_s5 = scalar_lea.hbm %s5441_s3, %s3138_s27 }
  0x79   : > { %1035 = vmatprep.subr.bf16.mxu0 %v3606_v28  ;;  %v4342_v28 = vld [vmem:[%s4246_s11 + $0x78] ss:$12 sps:$4 sm:$0xff]   ;;  %v3735_v29 = vld [vmem:[#allocation5 + $0x8] ss:$12 sps:$4 sm:$0xff]   ;;  %v4361_v34 = vld [vmem:[%s4246_s11 + $0xe0] ss:$12 sps:$4 sm:$0xff]  }
  0x7a   : > { %v4345_v30 = vld [vmem:[%s4246_s11 + $0x94] ss:$12 sps:$4 sm:$0xff]   ;;  %v4358_v33 = vld [vmem:[%s4246_s11 + $0xac] ss:$12 sps:$4 sm:$0xff]   ;;  %s2911_s28 = sshll.u32 %s5354_s20, 4  ;;  %s2898_s6 = scalar_lea.sflag [#allocation4], %s4242_s7  ;;  %s5394_s28 = int_to_ptr.vmem [resolvable:$true] %s2911_s28 }
  0x7b   : > { %1227 = vmatpush1.bf16.msra.mxu1 %v3641_v38  ;;  %v4374_v38 = vld [vmem:[%s4246_s11 + $0xf8] ss:$12 sps:$4 sm:$0xff]   ;;  %s4008_s24 = scalar_lea.vmem %s5394_s28, 4096  ;;  %p5619_p11 = scmp.ne.s32.totalorder %s5480_s21, 0 }
  0x7c   : > { %1036 = vmatpush2.bf16.msra.mxu0 %v3608_v31  ;;  %3139 = vmatprep.subr.bf16.mxu1 %v3717_v63  ;;  %v4348_v31 = vld [vmem:[%s4246_s11 + $0xc8] ss:$12 sps:$4 sm:$0xff]   ;;  %v4440_v63 = vld [vmem:[%s4246_s11 + $0x138] ss:$12 sps:$4 sm:$0xff]   ;;  %p4009_p10 = scmp.ne.s32.totalorder %s5394_s28, %s4008_s24  ;;  %s4086_s16 = smov [#allocation8]  }
  0x7d   : > { %1037 = vmatprep.subr.bf16.mxu0 %v3612_v32  ;;  %v4355_v32 = vld [vmem:[%s4246_s11 + $0x90] ss:$12 sps:$4 sm:$0xff]   ;;  %s4012_s26 = sshll.u32 %s4086_s16, 4  ;;  %s4013_s26 = int_to_ptr.vmem [resolvable:$false] %s4012_s26 }
  0x7e   : > { %1245 = vmatmul.mubr.bf16.vlgmr.msra.gmra.mxu1 %v4262_v41  ;;  %p4010_p7 = pnand %p4009_p10, %p5619_p11  ;;  %s4014_s22 = scalar_lea.vmem %s4013_s26, 8192 }
  0x7f   : > { %1254 = vmatprep.mubr.bf16.mxu1 %v4085_v0  ;;  %3140 = vmatpush3.bf16.msra.mxu1 %v3718_v2  ;;  %v4443_v2 = vld [vmem:[%s4246_s11 + $0x154] ss:$12 sps:$4 sm:$0xff]   ;;  %p4015_p13 = scmp.lt.s32.totalorder %s5394_s28, %s4013_s26  ;;  %p4016_p0 = scmp.lt.s32.totalorder %s4014_s22, %s4008_s24 }
  0x80   : > { %1038 = vmatpush2.bf16.msra.mxu0 %v3614_v36  ;;  %3141 = vmatprep.subr.bf16.mxu1 %v3720_v5  ;;  %v4368_v36 = vld [vmem:[%s4246_s11 + $0xa8] ss:$12 sps:$4 sm:$0xff]   ;;  %v4453_v5 = vld [vmem:[%s4246_s11 + $0x16c] ss:$12 sps:$4 sm:$0xff]   ;;  %p4011_p12 = pneg %p4010_p7 }
  0x81   : > { %1039 = vmatprep.subr.bf16.mxu0 %v3618_v37  ;;  %v4371_v37 = vld [vmem:[%s4246_s11 + $0xc4] ss:$12 sps:$4 sm:$0xff]   ;;  %p4017_p5 = por %p4016_p0, %p4015_p13 }
  0x83   : > { %3142 = vmatpush3.bf16.msra.mxu1 %v3721_v6  ;;  %p4018_p3 = pnand %p4017_p5, %p4011_p12 }
  0x84   : > { %1040 = vmatpush2.bf16.msra.mxu0 %v3620_v39  ;;  %3143 = vmatprep.subr.bf16.mxu1 %v3723_v8  ;;  %v4381_v39 = vld [vmem:[%s4246_s11 + $0xc0] ss:$12 sps:$4 sm:$0xff]  }
  0x85   : > { %1041 = vmatprep.subr.bf16.mxu0 %v3624_v40  ;;  %v4384_v40 = vld [vmem:[%s4246_s11 + $0xdc] ss:$12 sps:$4 sm:$0xff]  }
  0x86   : > { %1255 = vmatmul.mubr.bf16.gmra.mxu1 %v4267_v46 }
  0x87   : > { %1264 = vmatprep.mubr.bf16.mxu1 %v4085_v0  ;;  %3144 = vmatpush3.bf16.msra.mxu1 %v3724_v9 }
  0x88   : > { %1042 = vmatpush2.bf16.msra.mxu0 %v3626_v42  ;;  %3145 = vmatprep.subr.bf16.mxu1 %v3726_v12  ;;  %v4387_v42 = vld [vmem:[%s4246_s11 + $0x110] ss:$12 sps:$4 sm:$0xff]  }
  0x89   : > { %1043 = vmatprep.subr.bf16.mxu0 %v3630_v43  ;;  %v4394_v43 = vld [vmem:[%s4246_s11 + $0xd8] ss:$12 sps:$4 sm:$0xff]  }
  0x8b   : > { %3146 = vmatpush3.bf16.msra.mxu1 %v3727_v14 }
  0x8c   : > { %1044 = vmatpush2.bf16.msra.mxu0 %v3632_v44  ;;  %3147 = vmatprep.subr.bf16.mxu1 %v3728_v17  ;;  %v4397_v44 = vld [vmem:[%s4246_s11 + $0xf4] ss:$12 sps:$4 sm:$0xff]  }
  0x8d   : > { %1045 = vmatprep.subr.bf16.mxu0 %v3636_v45  ;;  %v4400_v45 = vld [vmem:[%s4246_s11 + $0x128] ss:$12 sps:$4 sm:$0xff]  }
  0x8e   : > { %1265 = vmatmul.mubr.bf16.gmra.mxu1 %v4272_v51 }
  0x8f   : > { %1274 = vmatprep.mubr.bf16.mxu1 %v4085_v0  ;;  %3148 = vmatpush3.bf16.msra.mxu1 %v3729_v18 }
  0x90   : > { %1046 = vmatpush2.bf16.msra.mxu0 %v3638_v47  ;;  %3149 = vmatprep.subr.bf16.mxu1 %v3730_v19  ;;  %v4407_v47 = vld [vmem:[%s4246_s11 + $0xf0] ss:$12 sps:$4 sm:$0xff]  }
  0x91   : > { %1047 = vmatprep.subr.bf16.mxu0 %v3642_v48  ;;  %v4410_v48 = vld [vmem:[%s4246_s11 + $0x10c] ss:$12 sps:$4 sm:$0xff]  }
  0x93   : > { %3150 = vmatpush3.bf16.msra.mxu1 %v3731_v22 }
  0x94   : > { %1048 = vmatpush2.bf16.msra.mxu0 %v3644_v49  ;;  %3151 = vmatprep.subr.bf16.mxu1 %v3732_v25  ;;  %v4413_v49 = vld [vmem:[%s4246_s11 + $0x140] ss:$12 sps:$4 sm:$0xff]  }
  0x95   : > { %1049 = vmatprep.subr.bf16.mxu0 %v3646_v50  ;;  %v4420_v50 = vld [vmem:[%s4246_s11 + $0x108] ss:$12 sps:$4 sm:$0xff]  }
  0x96   : > { %1275 = vmatmul.mubr.bf16.gmra.mxu1 %v4283_v55 }
  0x97   : > { %1284 = vmatprep.mubr.bf16.mxu1 %v4085_v0  ;;  %3152 = vmatpush3.bf16.msra.mxu1 %v3733_v26 }
  0x98   : > { %1050 = vmatpush2.bf16.msra.mxu0 %v3648_v52  ;;  %3153 = vmatprep.subr.bf16.mxu1 %v3734_v27  ;;  %v4423_v52 = vld [vmem:[%s4246_s11 + $0x124] ss:$12 sps:$4 sm:$0xff]  }
  0x99   : > { %3435 = vmatprep.subr.bf16.mxu0 %v3709_v57 }
  0x9b   : > { %1052 = vmatmul.mubr.bf16.vlgmr.msra.gmra.mxu0 %v4277_v53  ;;  %3154 = vmatpush3.bf16.msra.mxu1 %v3735_v29 }
  0x9c   : > { %1061 = vmatprep.mubr.bf16.mxu0 %v4280_v54  ;;  %3436 = vmatpush3.bf16.msra.mxu0 %v3709_v57  ;;  %v3704_v57 = vld [vmem:[%s4246_s11 + $0x158] ss:$12 sps:$4 sm:$0xff]  }
  0x9d   : > { %3437 = vmatprep.subr.bf16.mxu0 %v3710_v58 }
  0x9e   : > { %1285 = vmatmul.mubr.bf16.gmra.mxu1 %v4296_v60 }
  0x9f   : > { %1294 = vmatprep.mubr.bf16.mxu1 %v4085_v0 }
  0xa0   : > { %3438 = vmatpush3.bf16.msra.mxu0 %v3710_v58  ;;  %v4430_v58 = vld [vmem:[%s4246_s11 + $0x120] ss:$12 sps:$4 sm:$0xff]  }
  0xa1   : > { %3439 = vmatprep.subr.bf16.mxu0 %v3714_v61 }
  0xa3   : > { %1062 = vmatmul.mubr.bf16.gmra.mxu0 %v4288_v56 }
  0xa4   : > { %1071 = vmatprep.mubr.bf16.mxu0 %v4293_v59  ;;  %3440 = vmatpush3.bf16.msra.mxu0 %v3714_v61  ;;  %v4433_v61 = vld [vmem:[%s4246_s11 + $0x13c] ss:$12 sps:$4 sm:$0xff]  }
  0xa5   : > { %3441 = vmatprep.subr.bf16.mxu0 %v3715_v62 }
  0xa6   : > { %1295 = vmatmul.mubr.bf16.gmra.mxu1 %v4309_v4 }
  0xa7   : > { %1304 = vmatprep.mubr.bf16.mxu1 %v4085_v0 }
  0xa8   : > { %3442 = vmatpush3.bf16.msra.mxu0 %v3715_v62  ;;  %v3708_v62 = vld [vmem:[%s4246_s11 + $0x170] ss:$12 sps:$4 sm:$0xff]  }
  0xa9   : > { %3443 = vmatprep.subr.bf16.mxu0 %v3716_v7 }
  0xab   : > { %1072 = vmatmul.mubr.bf16.gmra.mxu0 %v4301_v1 }
  0xac   : > { %1081 = vmatprep.mubr.bf16.mxu0 %v4305_v3  ;;  %3444 = vmatpush3.bf16.msra.mxu0 %v3716_v7 }
  0xad   : > { %3445 = vmatprep.subr.bf16.mxu0 %v3719_v10 }
  0xae   : > { %1305 = vmatmul.mubr.bf16.gmra.mxu1 %v4322_v15 }
  0xaf   : > { %1314 = vmatprep.mubr.bf16.mxu1 %v4085_v0 }
  0xb0   : > { %3446 = vmatpush3.bf16.msra.mxu0 %v3719_v10 }
  0xb1   : > { %3447 = vmatprep.subr.bf16.mxu0 %v3722_v16 }
  0xb3   : > { %1082 = vmatmul.mubr.bf16.gmra.mxu0 %v4314_v11 }
  0xb4   : > { %1091 = vmatprep.mubr.bf16.mxu0 %v4318_v13  ;;  %3448 = vmatpush3.bf16.msra.mxu0 %v3722_v16 }
  0xb5   : > { %3449 = vmatprep.subr.bf16.mxu0 %v3725_v20 }
  0xb6   : > { %1315 = vmatmul.mubr.bf16.gmra.mxu1 %v4335_v24 }
  0xb7   : > { %1324 = vmatprep.mubr.bf16.mxu1 %v4085_v0 }
  0xb8   : > { %3450 = vmatpush3.bf16.msra.mxu0 %v3725_v20 }
  0xbb   : > { %1092 = vmatmul.mubr.bf16.gmra.mxu0 %v4329_v21 }
  0xbc   : > { %1101 = vmatprep.mubr.bf16.mxu0 %v4332_v23 }
  0xbe   : > { %1325 = vmatmul.mubr.bf16.gmra.mxu1 %v4348_v31 }
  0xbf   : > { %1334 = vmatprep.mubr.bf16.mxu1 %v4085_v0 }
  0xc3   : > { %1102 = vmatmul.mubr.bf16.gmra.mxu0 %v4342_v28 }
  0xc4   : > { %1111 = vmatprep.mubr.bf16.mxu0 %v4345_v30 }
  0xc6   : > { %1335 = vmatmul.mubr.bf16.gmra.mxu1 %v4361_v34 }
  0xc7   : > { %1344 = vmatprep.mubr.bf16.mxu1 %v4085_v0 }
  0xcb   : > { %1112 = vmatmul.mubr.bf16.gmra.mxu0 %v4355_v32 }
  0xcc   : > { %1121 = vmatprep.mubr.bf16.mxu0 %v4358_v33 }
  0xce   : > { %1345 = vmatmul.mubr.bf16.gmra.mxu1 %v4374_v38 }
  0xcf   : > { %1354 = vmatprep.mubr.bf16.mxu1 %v4085_v0 }
  0xd3   : > { %1122 = vmatmul.mubr.bf16.gmra.mxu0 %v4368_v36 }
  0xd4   : > { %1131 = vmatprep.mubr.bf16.mxu0 %v4371_v37 }
  0xd6   : > { %1355 = vmatmul.mubr.bf16.gmra.mxu1 %v4387_v42 }
  0xd7   : > { %1364 = vmatprep.mubr.bf16.mxu1 %v4085_v0 }
  0xdb   : > { %1132 = vmatmul.mubr.bf16.gmra.mxu0 %v4381_v39 }
  0xdc   : > { %1141 = vmatprep.mubr.bf16.mxu0 %v4384_v40 }
  0xde   : > { %1365 = vmatmul.mubr.bf16.gmra.mxu1 %v4400_v45 }
  0xdf   : > { %1374 = vmatprep.mubr.bf16.mxu1 %v4085_v0 }
  0xe3   : > { %1142 = vmatmul.mubr.bf16.gmra.mxu0 %v4394_v43 }
  0xe4   : > { %1151 = vmatprep.mubr.bf16.mxu0 %v4397_v44 }
  0xe6   : > { %1375 = vmatmul.mubr.bf16.gmra.mxu1 %v4413_v49 }
  0xe7   : > { %1384 = vmatprep.mubr.bf16.mxu1 %v4085_v0 }
  0xeb   : > { %1152 = vmatmul.mubr.bf16.gmra.mxu0 %v4407_v47 }
  0xec   : > { %1161 = vmatprep.mubr.bf16.mxu0 %v4410_v48 }
  0xee   : > { %1385 = vmatmul.mubr.bf16.gmra.mxu1 %v3704_v57 }
  0xef   : > { %1394 = vmatprep.mubr.bf16.mxu1 %v4085_v0  ;;  %v4450_v0 = vld [vmem:[%s4246_s11 + $0x150] ss:$12 sps:$4 sm:$0xff]  }
  0xf3   : > { %1162 = vmatmul.mubr.bf16.gmra.mxu0 %v4420_v50 }
  0xf4   : > { %1171 = vmatprep.mubr.bf16.mxu0 %v4423_v52 }
  0xf6   : > { %1395 = vmatmul.mubr.bf16.gmra.mxu1 %v3708_v62 }
  0xf7   : > { %1437 = vmatprep.mubr.bf16.mxu1 %v4258_v35  ;;  %v4460_v35 = vld [vmem:[%s4246_s11 + $0x168] ss:$12 sps:$4 sm:$0xff]  }
  0xfb   : > { %1172 = vmatmul.mubr.bf16.gmra.mxu0 %v4430_v58 }
  0xfc   : > { %1181 = vmatprep.mubr.bf16.mxu0 %v4433_v61 }
  0xfe   : > { %1438 = vmatmul.mubr.bf16.vlgmr.msra.gmra.mxu1 %v4277_v53 }
  0xff   : > { %1445 = vmatprep.mubr.bf16.mxu1 %v4280_v54 }
 0x103   : > { %1182 = vmatmul.mubr.bf16.gmra.mxu0 %v4440_v63 }
 0x104   : > { %1191 = vmatprep.mubr.bf16.mxu0 %v4443_v2 }
 0x106   : > { %1446 = vmatmul.mubr.bf16.gmra.mxu1 %v4288_v56 }
 0x107   : > { %1453 = vmatprep.mubr.bf16.mxu1 %v4293_v59 }
 0x10b   : > { %1192 = vmatmul.mubr.bf16.gmra.mxu0 %v4450_v0 }
 0x10c   : > { %1201 = vmatprep.mubr.bf16.mxu0 %v4453_v5 }
 0x10e   : > { %1454 = vmatmul.mubr.bf16.gmra.mxu1 %v4301_v1 }
 0x10f   : > { %1461 = vmatprep.mubr.bf16.mxu1 %v4305_v3 }
 0x113   : > { %1202 = vmatmul.mubr.bf16.gmra.mxu0 %v4460_v35 }
 0x114   : > { %3451 = vmatprep.mubr.bf16.mxu0 %v4262_v41 }
 0x116   : > { %1462 = vmatmul.mubr.bf16.gmra.mxu1 %v4314_v11 }
 0x117   : > { %1469 = vmatprep.mubr.bf16.mxu1 %v4318_v13 }
 0x11b   : > { %3452 = vmatmul.mubr.bf16.vlgmr.msra.gmra.mxu0 %v4267_v46 }
 0x11c   : > { %3455 = vmatprep.mubr.bf16.mxu0 %v4272_v51 }
 0x11e   : > { %1470 = vmatmul.mubr.bf16.gmra.mxu1 %v4329_v21 }
 0x11f   : > { %1477 = vmatprep.mubr.bf16.mxu1 %v4332_v23 }
 0x123   : > { %3456 = vmatmul.mubr.bf16.gmra.mxu0 %v4283_v55 }
 0x124   : > { %3459 = vmatprep.mubr.bf16.mxu0 %v4296_v60 }
 0x126   : > { %1478 = vmatmul.mubr.bf16.gmra.mxu1 %v4342_v28 }
 0x127   : > { %1485 = vmatprep.mubr.bf16.mxu1 %v4345_v30 }
 0x12b   : > { %3460 = vmatmul.mubr.bf16.gmra.mxu0 %v4309_v4 }
 0x12c   : > { %3463 = vmatprep.mubr.bf16.mxu0 %v4322_v15 }
 0x12e   : > { %1486 = vmatmul.mubr.bf16.gmra.mxu1 %v4355_v32 }
 0x12f   : > { %1493 = vmatprep.mubr.bf16.mxu1 %v4358_v33 }
 0x133   : > { %3464 = vmatmul.mubr.bf16.gmra.mxu0 %v4335_v24 }
 0x134   : > { %3467 = vmatprep.mubr.bf16.mxu0 %v4348_v31 }
 0x136   : > { %1494 = vmatmul.mubr.bf16.gmra.mxu1 %v4368_v36 }
 0x137   : > { %1501 = vmatprep.mubr.bf16.mxu1 %v4371_v37 }
 0x13b   : > { %3468 = vmatmul.mubr.bf16.gmra.mxu0 %v4361_v34 }
 0x13c   : > { %3471 = vmatprep.mubr.bf16.mxu0 %v4374_v38 }
 0x13e   : > { %v1246_v41 = vpop.f32.mrf.mxu1  ;;  %1502 = vmatmul.mubr.bf16.gmra.mxu1 %v4381_v39 }
 0x13f   : > { %1509 = vmatprep.mubr.bf16.mxu1 %v4384_v40 }
 0x140   : > { %v1248_v46 = vpop.f32.mrf.mxu1 }
 0x142   : > { %v1250_v51 = vpop.f32.mrf.mxu1 }
 0x143   : > { %3472 = vmatmul.mubr.bf16.gmra.mxu0 %v4387_v42 }
 0x144   : > { %3475 = vmatprep.mubr.bf16.mxu0 %v4400_v45  ;;  %v1252_v53 = vpop.f32.mrf.mxu1 }
 0x146   : > { %v1256_v54 = vpop.f32.mrf.mxu1  ;;  %1510 = vmatmul.mubr.bf16.gmra.mxu1 %v4394_v43 }
 0x147   : > { %1517 = vmatprep.mubr.bf16.mxu1 %v4397_v44 }
 0x148   : > { %v1258_v55 = vpop.f32.mrf.mxu1 }
 0x14a   : > { %v1260_v56 = vpop.f32.mrf.mxu1 }
 0x14b   : > { %3476 = vmatmul.mubr.bf16.gmra.mxu0 %v4413_v49 }
 0x14c   : > { %3479 = vmatprep.mubr.bf16.mxu0 %v3704_v57  ;;  %v1262_v59 = vpop.f32.mrf.mxu1 }
 0x14e   : > { %v1266_v60 = vpop.f32.mrf.mxu1  ;;  %1518 = vmatmul.mubr.bf16.gmra.mxu1 %v4407_v47 }
 0x14f   : > { %1525 = vmatprep.mubr.bf16.mxu1 %v4410_v48 }
 0x150   : > { %v1268_v1 = vpop.f32.mrf.mxu1 }
 0x152   : > { %v1270_v3 = vpop.f32.mrf.mxu1 }
 0x153   : > { %3480 = vmatmul.mubr.bf16.gmra.mxu0 %v3708_v62 }
 0x154   : > { %v1272_v6 = vpop.f32.mrf.mxu1 }
 0x156   : > { %v1276_v9 = vpop.f32.mrf.mxu1  ;;  %1526 = vmatmul.mubr.bf16.gmra.mxu1 %v4420_v50 }
 0x157   : > { %1533 = vmatprep.mubr.bf16.mxu1 %v4423_v52 }
 0x158   : > { %v1278_v11 = vpop.f32.mrf.mxu1 }
 0x15a   : > { %v1280_v14 = vpop.f32.mrf.mxu1 }
 0x15b   : > { %v1053_v4 = vpop.f32.mrf.mxu0 }
 0x15c   : > { %v4495_v7 = vadd.f32 %v1246_v41, %v1053_v4  ;;  %v1282_v19 = vpop.f32.mrf.mxu1 }
 0x15d   : > { %v1055_v8 = vpop.f32.mrf.mxu0 }
 0x15e   : > { %5486 = vst [vmem:[#allocation12_spill] sm:$0xff] %v4495_v7  ;;  %v1249_v15 = vadd.f32 %v1248_v46, %v1055_v8  ;;  %v1286_v23 = vpop.f32.mrf.mxu1  ;;  %1534 = vmatmul.mubr.bf16.gmra.mxu1 %v4430_v58 }
 0x15f   : > { %v1057_v10 = vpop.f32.mrf.mxu0  ;;  %1541 = vmatprep.mubr.bf16.mxu1 %v4433_v61 }
 0x160   : > { %v4499_v12 = vadd.f32 %v1250_v51, %v1057_v10  ;;  %v1288_v26 = vpop.f32.mrf.mxu1 }
 0x161   : > { %v1059_v13 = vpop.f32.mrf.mxu0 }
 0x162   : > { %5487 = vst [vmem:[#allocation13_spill] sm:$0xff] %v4499_v12  ;;  %v1253_v17 = vadd.f32 %v1252_v53, %v1059_v13  ;;  %v1290_v29 = vpop.f32.mrf.mxu1 }
 0x163   : > { %v1063_v18 = vpop.f32.mrf.mxu0 }
 0x164   : > { %v4503_v20 = vpack.c.bf16 %v1253_v17, %v1249_v15  ;;  %v4505_v21 = vadd.f32 %v1256_v54, %v1063_v18  ;;  %v4514_v33 = vpop.f32.mrf.mxu1 }
 0x165   : > { %v1065_v22 = vpop.f32.mrf.mxu0  ;;  %5489 = vst [vmem:[#allocation15_spill] sm:$0xff] %v4514_v33 }
 0x166   : > { %5488 = vst [vmem:[#allocation14_spill] sm:$0xff] %v4503_v20  ;;  %v1259_v24 = vadd.f32 %v1258_v55, %v1065_v22  ;;  %3291 = vmatprep.mubr.bf16.mxu0 %v4503_v20  ;;  %v1296_v38 = vpop.f32.mrf.mxu1  ;;  %1542 = vmatmul.mubr.bf16.gmra.mxu1 %v4440_v63 }
 0x167   : > { %v1067_v25 = vpop.f32.mrf.mxu0  ;;  %1549 = vmatprep.mubr.bf16.mxu1 %v4443_v2 }
 0x168   : > { %v4510_v27 = vadd.f32 %v1260_v56, %v1067_v25  ;;  %v1298_v42 = vpop.f32.mrf.mxu1 }
 0x169   : > { %v1069_v28 = vpop.f32.mrf.mxu0 }
 0x16a   : > { %v1263_v31 = vadd.f32 %v1262_v59, %v1069_v28  ;;  %v1300_v45 = vpop.f32.mrf.mxu1 }
 0x16b   : > { %v1073_v32 = vpop.f32.mrf.mxu0 }
 0x16c   : > { %v4516_v34 = vpack.c.bf16 %v1263_v31, %v1259_v24  ;;  %v4518_v36 = vadd.f32 %v1266_v60, %v1073_v32  ;;  %v4526_v50 = vpop.f32.mrf.mxu1 }
 0x16d   : > { %v1075_v37 = vpop.f32.mrf.mxu0  ;;  %5491 = vst [vmem:[#allocation17_spill] sm:$0xff] %v4526_v50 }
 0x16e   : > { %5490 = vst [vmem:[#allocation16_spill] sm:$0xff] %v4516_v34  ;;  %v1269_v39 = vadd.f32 %v1268_v1, %v1075_v37  ;;  %v1306_v61 = vpop.f32.mrf.mxu1  ;;  %1550 = vmatmul.mubr.bf16.gmra.mxu1 %v4450_v0 }
 0x16f   : > { %v1077_v40 = vpop.f32.mrf.mxu0  ;;  %1557 = vmatprep.mubr.bf16.mxu1 %v4453_v5 }
 0x170   : > { %v4522_v43 = vadd.f32 %v1270_v3, %v1077_v40  ;;  %v1308_v2 = vpop.f32.mrf.mxu1 }
 0x171   : > { %v1079_v44 = vpop.f32.mrf.mxu0 }
 0x172   : > { %v1273_v48 = vadd.f32 %v1272_v6, %v1079_v44  ;;  %v1310_v51 = vpop.f32.mrf.mxu1 }
 0x173   : > { %v1083_v49 = vpop.f32.mrf.mxu0 }
 0x174   : > { %v4528_v52 = vpack.c.bf16 %v1273_v48, %v1269_v39  ;;  %v4530_v57 = vadd.f32 %v1276_v9, %v1083_v49  ;;  %v4538_v56 = vpop.f32.mrf.mxu1 }
 0x175   : > { %v1085_v58 = vpop.f32.mrf.mxu0  ;;  %5493 = vst [vmem:[#allocation19_spill] sm:$0xff] %v4538_v56 }
 0x176   : > { %5492 = vst [vmem:[#allocation18_spill] sm:$0xff] %v4528_v52  ;;  %v1279_v62 = vadd.f32 %v1278_v11, %v1085_v58  ;;  %v1316_v1 = vpop.f32.mrf.mxu1  ;;  %1558 = vmatmul.mubr.bf16.gmra.mxu1 %v4460_v35 }
 0x177   : > { %v1087_v63 = vpop.f32.mrf.mxu0 }
 0x178   : > { %v4534_v41 = vadd.f32 %v1280_v14, %v1087_v63  ;;  %v1318_v4 = vpop.f32.mrf.mxu1 }
 0x179   : > { %v1089_v46 = vpop.f32.mrf.mxu0 }
 0x17a   : > { %v1283_v54 = vadd.f32 %v1282_v19, %v1089_v46  ;;  %v1320_v9 = vpop.f32.mrf.mxu1 }
 0x17b   : > { %v1093_v55 = vpop.f32.mrf.mxu0 }
 0x17c   : > { %v4540_v59 = vpack.c.bf16 %v1283_v54, %v1279_v62  ;;  %v4542_v60 = vadd.f32 %v1286_v23, %v1093_v55  ;;  %v4553_v13 = vpop.f32.mrf.mxu1 }
 0x17d   : > { %v1095_v0 = vpop.f32.mrf.mxu0  ;;  %5497 = vst [vmem:[#allocation23_spill] sm:$0xff] %v4553_v13 }
 0x17e   : > { %5494 = vst [vmem:[#allocation20_spill] sm:$0xff] %v4540_v59  ;;  %v4545_v5 = vadd.f32 %v1288_v26, %v1095_v0  ;;  %v1326_v17 = vpop.f32.mrf.mxu1 }
 0x17f   : > { %v1097_v3 = vpop.f32.mrf.mxu0 }
 0x180   : > { %5495 = vst [vmem:[#allocation21_spill] sm:$0xff] %v4545_v5  ;;  %v4547_v6 = vadd.f32 %v1290_v29, %v1097_v3  ;;  %v1328_v19 = vpop.f32.mrf.mxu1 }
 0x181   : > { %v4549_v8 = vpop.f32.mrf.mxu0 }
 0x182   : > { %5496 = vst [vmem:[#allocation22_spill] sm:$0xff] %v4549_v8  ;;  %v1330_v24 = vpop.f32.mrf.mxu1 }
 0x183   : > { %v1103_v11 = vpop.f32.mrf.mxu0 }
 0x184   : > { %v4555_v14 = vadd.f32 %v1296_v38, %v1103_v11  ;;  %v4565_v28 = vpop.f32.mrf.mxu1 }
 0x185   : > { %v1105_v15 = vpop.f32.mrf.mxu0  ;;  %5500 = vst [vmem:[#allocation26_spill] sm:$0xff] %v4565_v28 }
 0x186   : > { %v4557_v35 = vadd.f32 %v1298_v42, %v1105_v15  ;;  %v1336_v32 = vpop.f32.mrf.mxu1 }
 0x187   : > { %v1107_v18 = vpop.f32.mrf.mxu0 }
 0x188   : > { %5498 = vst [vmem:[#allocation24_spill] sm:$0xff] %v4557_v35  ;;  %v4559_v22 = vadd.f32 %v1300_v45, %v1107_v18  ;;  %v1338_v39 = vpop.f32.mrf.mxu1 }
 0x189   : > { %v4561_v23 = vpop.f32.mrf.mxu0 }
 0x18a   : > { %5499 = vst [vmem:[#allocation25_spill] sm:$0xff] %v4561_v23  ;;  %v1340_v44 = vpop.f32.mrf.mxu1 }
 0x18b   : > { %v1113_v26 = vpop.f32.mrf.mxu0 }
 0x18c   : > { %v4567_v29 = vadd.f32 %v1306_v61, %v1113_v26  ;;  %v4577_v49 = vpop.f32.mrf.mxu1 }
 0x18d   : > { %v1115_v31 = vpop.f32.mrf.mxu0  ;;  %5503 = vst [vmem:[#allocation29_spill] sm:$0xff] %v4577_v49 }
 0x18e   : > { %v4569_v37 = vadd.f32 %v1308_v2, %v1115_v31  ;;  %v1346_v62 = vpop.f32.mrf.mxu1 }
 0x18f   : > { %v1117_v38 = vpop.f32.mrf.mxu0 }
 0x190   : > { %5501 = vst [vmem:[#allocation27_spill] sm:$0xff] %v4569_v37  ;;  %v4571_v40 = vadd.f32 %v1310_v51, %v1117_v38  ;;  %v1348_v46 = vpop.f32.mrf.mxu1 }
 0x191   : > { %v4573_v42 = vpop.f32.mrf.mxu0 }
 0x192   : > { %5502 = vst [vmem:[#allocation28_spill] sm:$0xff] %v4573_v42  ;;  %v1350_v55 = vpop.f32.mrf.mxu1 }
 0x193   : > { %v1123_v48 = vpop.f32.mrf.mxu0 }
 0x194   : > { %v4579_v58 = vadd.f32 %v1316_v1, %v1123_v48  ;;  %v4589_v11 = vpop.f32.mrf.mxu1 }
 0x195   : > { %v1125_v61 = vpop.f32.mrf.mxu0  ;;  %5506 = vst [vmem:[#allocation32_spill] sm:$0xff] %v4589_v11 }
 0x196   : > { %v4581_v63 = vadd.f32 %v1318_v4, %v1125_v61  ;;  %v1356_v18 = vpop.f32.mrf.mxu1 }
 0x197   : > { %v1127_v2 = vpop.f32.mrf.mxu0 }
 0x198   : > { %5504 = vst [vmem:[#allocation30_spill] sm:$0xff] %v4581_v63  ;;  %v4583_v54 = vadd.f32 %v1320_v9, %v1127_v2  ;;  %v1358_v31 = vpop.f32.mrf.mxu1 }
 0x199   : > { %v4585_v51 = vpop.f32.mrf.mxu0 }
 0x19a   : > { %5505 = vst [vmem:[#allocation31_spill] sm:$0xff] %v4585_v51  ;;  %v1360_v48 = vpop.f32.mrf.mxu1 }
 0x19b   : > { %v1133_v3 = vpop.f32.mrf.mxu0 }
 0x19c   : > { %v4591_v15 = vadd.f32 %v1326_v17, %v1133_v3  ;;  %v4601_v16 = vpop.f32.mrf.mxu1 }
 0x19d   : > { %v1135_v1 = vpop.f32.mrf.mxu0  ;;  %5509 = vst [vmem:[#allocation35_spill] sm:$0xff] %v4601_v16 }
 0x19e   : > { %v4593_v26 = vadd.f32 %v1328_v19, %v1135_v1  ;;  %v1366_v3 = vpop.f32.mrf.mxu1 }
 0x19f   : > { %v1137_v4 = vpop.f32.mrf.mxu0 }
 0x1a0   : > { %5507 = vst [vmem:[#allocation33_spill] sm:$0xff] %v4593_v26  ;;  %v4595_v38 = vadd.f32 %v1330_v24, %v1137_v4  ;;  %v1368_v1 = vpop.f32.mrf.mxu1 }
 0x1a1   : > { %v4597_v9 = vpop.f32.mrf.mxu0 }
 0x1a2   : > { %5508 = vst [vmem:[#allocation34_spill] sm:$0xff] %v4597_v9  ;;  %v1370_v4 = vpop.f32.mrf.mxu1 }
 0x1a3   : > { %v1143_v2 = vpop.f32.mrf.mxu0 }
 0x1a4   : > { %v4603_v30 = vadd.f32 %v1336_v32, %v1143_v2  ;;  %v4613_v25 = vpop.f32.mrf.mxu1 }
 0x1a5   : > { %v1145_v17 = vpop.f32.mrf.mxu0  ;;  %5512 = vst [vmem:[#allocation38_spill] sm:$0xff] %v4613_v25 }
 0x1a6   : > { %v4605_v47 = vadd.f32 %v1338_v39, %v1145_v17  ;;  %v4617_v2 = vpop.f32.mrf.mxu1 }
 0x1a7   : > { %v1147_v19 = vpop.f32.mrf.mxu0 }
 0x1a8   : > { %5510 = vst [vmem:[#allocation36_spill] sm:$0xff] %v4605_v47  ;;  %v4607_v53 = vadd.f32 %v1340_v44, %v1147_v19  ;;  %v1378_v0 = vpop.f32.mrf.mxu1 }
 0x1a9   : > { %v4609_v24 = vpop.f32.mrf.mxu0 }
 0x1aa   : > { %5511 = vst [vmem:[#allocation37_spill] sm:$0xff] %v4609_v24  ;;  %v4625_v16 = vpop.f32.mrf.mxu1 }
 0x1ab   : > { %v1153_v61 = vpop.f32.mrf.mxu0 }
 0x1ac   : > { %v4615_v45 = vadd.f32 %v1346_v62, %v1153_v61  ;;  %v4629_v25 = vpop.f32.mrf.mxu1 }
 0x1ad   : > { %v1155_v32 = vpop.f32.mrf.mxu0  ;;  %5515 = vst [vmem:[#allocation41_spill] sm:$0xff] %v4629_v25 }
 0x1ae   : > { %v4619_v39 = vadd.f32 %v1348_v46, %v1155_v32  ;;  %v1386_v61 = vpop.f32.mrf.mxu1 }
 0x1af   : > { %v1157_v17 = vpop.f32.mrf.mxu0 }
 0x1b0   : > { %5513 = vst [vmem:[#allocation39_spill] sm:$0xff] %v4619_v39  ;;  %v4621_v44 = vadd.f32 %v1350_v55, %v1157_v17  ;;  %v1388_v32 = vpop.f32.mrf.mxu1 }
 0x1b1   : > { %v4623_v19 = vpop.f32.mrf.mxu0 }
 0x1b2   : > { %5514 = vst [vmem:[#allocation40_spill] sm:$0xff] %v4623_v19  ;;  %v1390_v19 = vpop.f32.mrf.mxu1 }
 0x1b3   : > { %v1163_v11 = vpop.f32.mrf.mxu0 }
 0x1b4   : > { %v4633_v39 = vadd.f32 %v1356_v18, %v1163_v11  ;;  %v1392_v24 = vpop.f32.mrf.mxu1 }
 0x1b5   : > { %v1165_v62 = vpop.f32.mrf.mxu0 }
 0x1b6   : > { %v4631_v47 = vadd.f32 %v1358_v31, %v1165_v62  ;;  %v1396_v25 = vpop.f32.mrf.mxu1 }
 0x1b7   : > { %v1167_v46 = vpop.f32.mrf.mxu0 }
 0x1b8   : > { %5516 = vst [vmem:[#allocation42_spill] sm:$0xff] %v4631_v47  ;;  %v4635_v55 = vadd.f32 %v1360_v48, %v1167_v46  ;;  %v1398_v62 = vpop.f32.mrf.mxu1 }
 0x1b9   : > { %v4637_v17 = vpop.f32.mrf.mxu0 }
 0x1ba   : > { %5517 = vst [vmem:[#allocation43_spill] sm:$0xff] %v4637_v17  ;;  %v1400_v48 = vpop.f32.mrf.mxu1 }
 0x1bb   : > { %v1173_v10 = vpop.f32.mrf.mxu0 }
 0x1bc   : > { %v4643_v47 = vadd.f32 %v1366_v3, %v1173_v10  ;;  %v1402_v49 = vpop.f32.mrf.mxu1 }
 0x1bd   : > { %v1175_v26 = vpop.f32.mrf.mxu0 }
 0x1be   : > { %v4641_v28 = vadd.f32 %v1368_v1, %v1175_v26  ;;  %v3155_v63 = vpop.f32.mrf.mxu1 }
 0x1bf   : > { %v1177_v31 = vpop.f32.mrf.mxu0 }
 0x1c0   : > { %5518 = vst [vmem:[#allocation44_spill] sm:$0xff] %v4641_v28  ;;  %v4645_v11 = vadd.f32 %v1370_v4, %v1177_v31  ;;  %v3156_v1 = vpop.f32.mrf.mxu1 }
 0x1c1   : > { %v4647_v18 = vpop.f32.mrf.mxu0  ;;  %v3157_v28 = vadd.f32 %v3156_v1, %v3155_v63 }
 0x1c2   : > { %5519 = vst [vmem:[#allocation45_spill] sm:$0xff] %v4647_v18  ;;  %v3158_v10 = vpop.f32.mrf.mxu1 }
 0x1c3   : > { %v1183_v17 = vpop.f32.mrf.mxu0 }
 0x1c4   : > { %v3159_v4 = vpop.f32.mrf.mxu1 }
 0x1c5   : > { %v1185_v9 = vpop.f32.mrf.mxu0 }
 0x1c6   : > { %v4651_v13 = vadd.f32 %v1378_v0, %v1185_v9  ;;  %v3161_v18 = vpop.f32.mrf.mxu1 }
 0x1c7   : > { %v1187_v26 = vpop.f32.mrf.mxu0 }
 0x1c8   : > { %5520 = vst [vmem:[#allocation46_spill] sm:$0xff] %v4651_v13  ;;  %v3162_v42 = vpop.f32.mrf.mxu1 }
 0x1c9   : > { %v4653_v51 = vpop.f32.mrf.mxu0  ;;  %v3163_v46 = vadd.f32 %v3162_v42, %v3161_v18 }
 0x1ca   : > { %5521 = vst [vmem:[#allocation47_spill] sm:$0xff] %v4653_v51  ;;  %v3164_v50 = vpop.f32.mrf.mxu1 }
 0x1cb   : > { %v1193_v3 = vpop.f32.mrf.mxu0 }
 0x1cc   : > { %v3165_v0 = vpop.f32.mrf.mxu1 }
 0x1cd   : > { %v1195_v31 = vpop.f32.mrf.mxu0 }
 0x1ce   : > { %v1389_v37 = vadd.f32 %v1388_v32, %v1195_v31  ;;  %v3167_v63 = vpop.f32.mrf.mxu1  ;;  %v1387_v32 = vadd.f32 %v1386_v61, %v1193_v3 }
 0x1cf   : > { %v1197_v56 = vpop.f32.mrf.mxu0 }
 0x1d0   : > { %v1391_v51 = vadd.f32 %v1390_v19, %v1197_v56  ;;  %v3168_v8 = vpop.f32.mrf.mxu1  ;;  %v5523_v56 = vpack.c.bf16 %v4583_v54, %v4579_v58 }
 0x1d1   : > { %v1199_v35 = vpop.f32.mrf.mxu0  ;;  %v3169_v34 = vadd.f32 %v3168_v8, %v3167_v63  ;;  %v3160_v8 = vadd.f32 %v3159_v4, %v3158_v10  ;;  %v5524_v10 = vpack.c.bf16 %v4571_v40, %v4567_v29  ;;  %v5525_v29 = vpack.c.bf16 %v4559_v22, %v4555_v14 }
 0x1d2   : > { %v1393_v23 = vadd.f32 %v1392_v24, %v1199_v35  ;;  %v3170_v20 = vpop.f32.mrf.mxu1  ;;  %v1757_v7 = vpack.c.bf16 %v1391_v51, %v1387_v32  ;;  %v5527_v14 = vpack.c.bf16 %v4547_v6, %v4542_v60  ;;  %v5529_v60 = vpack.c.bf16 %v4534_v41, %v4530_v57 }
 0x1d3   : > { %v1203_v5 = vpop.f32.mrf.mxu0  ;;  %v5531_v57 = vpack.c.bf16 %v4522_v43, %v4518_v36  ;;  %v5533_v36 = vpack.c.bf16 %v4510_v27, %v4505_v21 }
 0x1d4   : > { %v4655_v9 = vpack.c.bf16 %v1393_v23, %v1389_v37  ;;  %v1397_v59 = vadd.f32 %v1396_v25, %v1203_v5  ;;  %v3171_v35 = vpop.f32.mrf.mxu1  ;;  %v3166_v23 = vadd.f32 %v3165_v0, %v3164_v50 }
 0x1d5   : > { %v1205_v13 = vpop.f32.mrf.mxu0  ;;  %v3172_v37 = vadd.f32 %v3171_v35, %v3170_v20  ;;  %v1377_v20 = vadd.f32 %v4617_v2, %v1183_v17 }
 0x1d6   : > { %v1399_v1 = vadd.f32 %v1398_v62, %v1205_v13 }
 0x1d7   : > { %v1207_v33 = vpop.f32.mrf.mxu0 }
 0x1d8   : > { %v1401_v52 = vadd.f32 %v1400_v48, %v1207_v33  ;;  %v3173_v33 = vpop.f32.mrf.mxu1 }
 0x1d9   : > { %v1209_v31 = vpop.f32.mrf.mxu0 }
 0x1da   : > { %v1758_v42 = vpack.c.bf16 %v1401_v52, %v1397_v59  ;;  %v1403_v18 = vadd.f32 %v1402_v49, %v1209_v31  ;;  %v3174_v52 = vpop.f32.mrf.mxu1  ;;  %v1381_v49 = vadd.f32 %v4625_v16, %v1187_v26 }
 0x1db   : > { %v3453_v24 = vpop.f32.mrf.mxu0  ;;  %v3175_v51 = vadd.f32 %v3174_v52, %v3173_v33 }
 0x1dc   : > { %v4657_v12 = vpack.c.bf16 %v1403_v18, %v1399_v1  ;;  %3275 = vmatprep.subr.bf16.mxu0 %v1758_v42  ;;  %v1609_v13 = vadd.f32 %v3453_v24, %v3163_v46  ;;  %v3176_v61 = vpop.f32.mrf.mxu1  ;;  %v1756_v46 = vpack.c.bf16 %v1381_v49, %v1377_v20 }
 0x1dd   : > { %3276 = vmatpush3.bf16.xpose.msra.mxu0 %v5523_v56  ;;  %v1600_v5 = vpop.f32.mrf.mxu0 }
 0x1de   : > { %5522 = vst [vmem:[#allocation48_spill] sm:$0xff] %v4657_v12  ;;  %3277 = vmatprep.subr.bf16.mxu0 %v1757_v7  ;;  %v1601_v25 = vadd.f32 %v3157_v28, %v1600_v5  ;;  %v3177_v58 = vpop.f32.mrf.mxu1 }
 0x1df   : > { %v3454_v59 = vpop.f32.mrf.mxu0  ;;  %v3178_v3 = vadd.f32 %v3177_v58, %v3176_v61 }
 0x1e0   : > { %v1612_v19 = vadd.f32 %v3454_v59, %v3166_v23  ;;  %v3179_v16 = vpop.f32.mrf.mxu1 }
 0x1e1   : > { %v1603_v62 = vpop.f32.mrf.mxu0 }
 0x1e2   : > { %v4664_v50 = vpack.c.bf16 %v1612_v19, %v1609_v13  ;;  %v1604_v48 = vadd.f32 %v3160_v8, %v1603_v62  ;;  %v3180_v0 = vpop.f32.mrf.mxu1  ;;  %v5526_v13 = vpack.c.bf16 %v4645_v11, %v4643_v47  ;;  %v5528_v11 = vpack.c.bf16 %v4635_v55, %v4633_v39 }
 0x1e3   : > { %v3457_v54 = vpop.f32.mrf.mxu0  ;;  %v3181_v17 = vadd.f32 %v3180_v0, %v3179_v16  ;;  %v5530_v39 = vpack.c.bf16 %v4621_v44, %v4615_v45  ;;  %v5532_v45 = vpack.c.bf16 %v4607_v53, %v4603_v30  ;;  %v5534_v30 = vpack.c.bf16 %v4595_v38, %v4591_v15 }
 0x1e4   : > { %v4666_v7 = vpack.c.bf16 %v1604_v48, %v1601_v25  ;;  %v1625_v28 = vadd.f32 %v3457_v54, %v3175_v51  ;;  %v3182_v1 = vpop.f32.mrf.mxu1 }
 0x1e5   : > { %3278 = vmatpush3.bf16.xpose.msra.mxu0 %v5524_v10  ;;  %v1616_v26 = vpop.f32.mrf.mxu0 }
 0x1e6   : > { %3279 = vmatprep.subr.bf16.mxu0 %v1756_v46  ;;  %v1617_v4 = vadd.f32 %v3169_v34, %v1616_v26  ;;  %v3183_v18 = vpop.f32.mrf.mxu1 }
 0x1e7   : > { %v3458_v2 = vpop.f32.mrf.mxu0  ;;  %v3184_v24 = vadd.f32 %v3183_v18, %v3182_v1 }
 0x1e8   : > { %v1628_v63 = vadd.f32 %v3458_v2, %v3178_v3  ;;  %v3185_v40 = vpop.f32.mrf.mxu1 }
 0x1e9   : > { %v1619_v32 = vpop.f32.mrf.mxu0 }
 0x1ea   : > { %v4671_v31 = vpack.c.bf16 %v1628_v63, %v1625_v28  ;;  %v1620_v42 = vadd.f32 %v3172_v37, %v1619_v32  ;;  %v3186_v56 = vpop.f32.mrf.mxu1 }
 0x1eb   : > { %v3461_v35 = vpop.f32.mrf.mxu0  ;;  %v3187_v5 = vadd.f32 %v3186_v56, %v3185_v40 }
 0x1ec   : > { %v4673_v23 = vpack.c.bf16 %v1620_v42, %v1617_v4  ;;  %v3188_v37 = vpop.f32.mrf.mxu1 }
 0x1ed   : > { %3280 = vmatpush3.bf16.xpose.msra.mxu0 %v5525_v29  ;;  %v1632_v34 = vpop.f32.mrf.mxu0  ;;  %v1641_v19 = vadd.f32 %v3461_v35, %v3187_v5 }
 0x1ee   : > { %3281 = vmatprep.subr.bf16.mxu0 %v5526_v13  ;;  %v1633_v8 = vadd.f32 %v3181_v17, %v1632_v34  ;;  %v3189_v59 = vpop.f32.mrf.mxu1 }
 0x1ef   : > { %v3462_v33 = vpop.f32.mrf.mxu0  ;;  %v3190_v51 = vadd.f32 %v3189_v59, %v3188_v37 }
 0x1f0   : > { %v3191_v22 = vpop.f32.mrf.mxu1 }
 0x1f1   : > { %v1635_v25 = vpop.f32.mrf.mxu0  ;;  %v1644_v62 = vadd.f32 %v3462_v33, %v3190_v51  ;;  %v5535_v51 = vld [vmem:[#allocation13_spill] sm:$0xff] }
 0x1f2   : > { %v1636_v52 = vadd.f32 %v3184_v24, %v1635_v25  ;;  %v3192_v20 = vpop.f32.mrf.mxu1 }
 0x1f3   : > { %v3465_v49 = vpop.f32.mrf.mxu0  ;;  %v3193_v48 = vadd.f32 %v3192_v20, %v3191_v22  ;;  %v4689_v58 = vpack.c.bf16 %v1644_v62, %v1641_v19  ;;  %v5536_v19 = vld [vmem:[#allocation12_spill] sm:$0xff]  ;;  %v5538_v20 = vld [vmem:[#allocation14_spill] sm:$0xff] }
 0x1f4   : > { %v4681_v61 = vpack.c.bf16 %v1636_v52, %v1633_v8  ;;  %v3194_v54 = vpop.f32.mrf.mxu1 }
 0x1f5   : > { %3282 = vmatpush3.bf16.xpose.msra.mxu0 %v5527_v14  ;;  %v1648_v47 = vpop.f32.mrf.mxu0  ;;  %v5537_v14 = vpack.c.bf16 %v5535_v51, %v5536_v19 }
 0x1f6   : > { %3283 = vmatprep.subr.bf16.mxu0 %v5528_v11  ;;  %v3195_v3 = vpop.f32.mrf.mxu1  ;;  %v1649_v10 = vadd.f32 %v3193_v48, %v1648_v47  ;;  %v5539_v48 = vld [vmem:[#allocation16_spill] sm:$0xff] }
 0x1f7   : > { %v3466_v46 = vpop.f32.mrf.mxu0  ;;  %v3196_v28 = vadd.f32 %v3195_v3, %v3194_v54 }
 0x1f8   : > { %v3197_v6 = vpop.f32.mrf.mxu1 }
 0x1f9   : > { %v1651_v16 = vpop.f32.mrf.mxu0 }
 0x1fa   : > { %v1652_v55 = vadd.f32 %v3196_v28, %v1651_v16  ;;  %v3198_v26 = vpop.f32.mrf.mxu1 }
 0x1fb   : > { %v3199_v4 = vadd.f32 %v3198_v26, %v3197_v6  ;;  %v3469_v17 = vpop.f32.mrf.mxu0  ;;  %v5540_v6 = vld [vmem:[#allocation18_spill] sm:$0xff] }
 0x1fc   : > { %v4697_v0 = vpack.c.bf16 %v1652_v55, %v1649_v10  ;;  %v3200_v2 = vpop.f32.mrf.mxu1 }
 0x1fd   : > { %3284 = vmatpush3.bf16.xpose.msra.mxu0 %v5529_v60  ;;  %v1657_v32 = vadd.f32 %v3465_v49, %v3199_v4  ;;  %v1664_v42 = vpop.f32.mrf.mxu0 }
 0x1fe   : > { %3285 = vmatprep.subr.bf16.mxu0 %v5530_v39  ;;  %v3201_v63 = vpop.f32.mrf.mxu1 }
 0x1ff   : > { %v3202_v1 = vadd.f32 %v3201_v63, %v3200_v2  ;;  %v3470_v40 = vpop.f32.mrf.mxu0 }
 0x200   : > { %v3203_v41 = vpop.f32.mrf.mxu1 }
 0x201   : > { %v1660_v44 = vadd.f32 %v3466_v46, %v3202_v1  ;;  %v1667_v33 = vpop.f32.mrf.mxu0  ;;  %v5542_v1 = vld [vmem:[#allocation22_spill] sm:$0xff] }
 0x202   : > { %v3204_v18 = vpop.f32.mrf.mxu1 }
 0x203   : > { %v3205_v35 = vadd.f32 %v3204_v18, %v3203_v41  ;;  %v4705_v24 = vpack.c.bf16 %v1660_v44, %v1657_v32  ;;  %v4722_v15 = vpop.f32.mrf.mxu0  ;;  %v5543_v32 = vld [vmem:[#allocation15_spill] sm:$0xff]  ;;  %v5544_v44 = vld [vmem:[#allocation21_spill] sm:$0xff] }
 0x204   : > { %v3206_v29 = vpop.f32.mrf.mxu1 }
 0x205   : > { %3286 = vmatpush3.bf16.xpose.msra.mxu0 %v5531_v57  ;;  %v1665_v56 = vadd.f32 %v3205_v35, %v1664_v42  ;;  %v4730_v62 = vpop.f32.mrf.mxu0  ;;  %v1293_v57 = vadd.f32 %v5543_v32, %v5542_v1 }
 0x206   : > { %3287 = vmatprep.subr.bf16.mxu0 %v5532_v45  ;;  %v3207_v34 = vpop.f32.mrf.mxu1 }
 0x207   : > { %v3208_v13 = vadd.f32 %v3207_v34, %v3206_v29  ;;  %v4738_v3 = vpop.f32.mrf.mxu0  ;;  %v1731_v18 = vpack.c.bf16 %v1293_v57, %v5544_v44  ;;  %v5545_v34 = vld [vmem:[#allocation25_spill] sm:$0xff] }
 0x208   : > { %v3209_v43 = vpop.f32.mrf.mxu1 }
 0x209   : > { %v1668_v53 = vadd.f32 %v3208_v13, %v1667_v33  ;;  %v4744_v60 = vpop.f32.mrf.mxu0  ;;  %v5546_v13 = vld [vmem:[#allocation17_spill] sm:$0xff] }
 0x20a   : > { %v3210_v5 = vpop.f32.mrf.mxu1 }
 0x20b   : > { %v3211_v8 = vadd.f32 %v3210_v5, %v3209_v43  ;;  %v4713_v37 = vpack.c.bf16 %v1668_v53, %v1665_v56  ;;  %v3477_v55 = vpop.f32.mrf.mxu0  ;;  %v1303_v56 = vadd.f32 %v5546_v13, %v5545_v34 }
 0x20c   : > { %v3212_v25 = vpop.f32.mrf.mxu1 }
 0x20d   : > { %3288 = vmatpush3.bf16.xpose.msra.mxu0 %v5533_v36  ;;  %v1673_v49 = vadd.f32 %v3469_v17, %v3211_v8  ;;  %v1696_v2 = vpop.f32.mrf.mxu0  ;;  %v5541_v17 = vld [vmem:[#allocation20_spill] sm:$0xff] }
 0x20e   : > { %3289 = vmatprep.subr.bf16.mxu0 %v5534_v30  ;;  %v3213_v52 = vpop.f32.mrf.mxu1  ;;  %v5547_v30 = vld [vmem:[#allocation24_spill] sm:$0xff] }
 0x20f   : > { %v3214_v59 = vadd.f32 %v3213_v52, %v3212_v25  ;;  %v3478_v42 = vpop.f32.mrf.mxu0  ;;  %v1732_v53 = vpack.c.bf16 %v1303_v56, %v5547_v30  ;;  %v5548_v52 = vld [vmem:[#allocation28_spill] sm:$0xff] }
 0x210   : > { %v4718_v21 = vpop.f32.mrf.mxu1 }
 0x211   : > { %v1676_v27 = vadd.f32 %v3470_v40, %v3214_v59  ;;  %v1699_v29 = vpop.f32.mrf.mxu0  ;;  %v5549_v59 = vld [vmem:[#allocation19_spill] sm:$0xff] }
 0x212   : > { %v4720_v22 = vpop.f32.mrf.mxu1 }
 0x213   : > { %v4724_v38 = vpack.c.bf16 %v1676_v27, %v1673_v49  ;;  %v3481_v43 = vpop.f32.mrf.mxu0  ;;  %v1313_v49 = vadd.f32 %v5549_v59, %v5548_v52  ;;  %v5551_v52 = vld [vmem:[#allocation31_spill] sm:$0xff] }
 0x214   : > { %v4726_v47 = vpop.f32.mrf.mxu1  ;;  %v5552_v59 = vld [vmem:[#allocation23_spill] sm:$0xff] }
 0x215   : > { %3290 = vmatpush3.bf16.xpose.msra.mxu0 %v5537_v14  ;;  %v1712_v8 = vpop.f32.mrf.mxu0  ;;  %v1323_v12 = vadd.f32 %v5552_v59, %v5551_v52 }
 0x216   : > { %v4728_v11 = vpop.f32.mrf.mxu1 }
 0x217   : > { %v3482_v19 = vpop.f32.mrf.mxu0 }
 0x218   : > { %v4734_v54 = vpop.f32.mrf.mxu1 }
 0x21a   : > { %v4736_v46 = vpop.f32.mrf.mxu1 }
 0x21c   : > { %3292 = vmatmul.mubr.bf16.vlgmr.msra.gmra.mxu0 %v5538_v20  ;;  %v4740_v28 = vpop.f32.mrf.mxu1 }
 0x21d   : > { %3293 = vmatprep.mubr.bf16.mxu0 %v5539_v48 }
 0x21e   : > { %v4742_v10 = vpop.f32.mrf.mxu1 }
 0x220   : > { %v3227_v16 = vpop.f32.mrf.mxu1 }
 0x222   : > { %v3228_v39 = vpop.f32.mrf.mxu1 }
 0x224   : > { %3294 = vmatmul.mubr.bf16.gmra.mxu0 %v5539_v48  ;;  %v3230_v26 = vpop.f32.mrf.mxu1 }
 0x225   : > { %3295 = vmatprep.mubr.bf16.mxu0 %v5540_v6 }
 0x226   : > { %v3231_v4 = vpop.f32.mrf.mxu1 }
 0x228   : > { %v3233_v63 = vpop.f32.mrf.mxu1 }
 0x22a   : > { %v3234_v41 = vpop.f32.mrf.mxu1 }
 0x22b   : > { %v3235_v32 = vadd.f32 %v3234_v41, %v3233_v63  ;;  %v5553_v63 = vld [vmem:[#allocation30_spill] sm:$0xff] }
 0x22c   : > { %3296 = vmatmul.mubr.bf16.gmra.mxu0 %v5540_v6  ;;  %v3236_v45 = vpop.f32.mrf.mxu1  ;;  %v1715_v6 = vpop.f32.mrf.mxu0  ;;  %v1734_v41 = vpack.c.bf16 %v1323_v12, %v5553_v63 }
 0x22d   : > { %3297 = vmatprep.mubr.bf16.mxu0 %v5541_v17 }
 0x22e   : > { %v3237_v35 = vpop.f32.mrf.mxu1 }
 0x22f   : > { %v3238_v57 = vadd.f32 %v3237_v35, %v3236_v45  ;;  %v3223_v45 = vadd.f32 %v4736_v46, %v4734_v54  ;;  %v3226_v35 = vadd.f32 %v4742_v10, %v4740_v28  ;;  %v3217_v54 = vadd.f32 %v4720_v22, %v4718_v21 }
 0x230   : > { %v3239_v40 = vpop.f32.mrf.mxu1  ;;  %v3220_v46 = vadd.f32 %v4728_v11, %v4726_v47 }
 0x231   : > { %v1692_v28 = vadd.f32 %v4738_v3, %v3226_v35  ;;  %v1681_v21 = vadd.f32 %v3217_v54, %v4730_v62  ;;  %v5560_v62 = vld [vmem:[#allocation40_spill] sm:$0xff]  ;;  %v2027_v35 = vld [vmem:[#allocation7 + $0x58] sm:$0xff] }
 0x232   : > { %v3240_v36 = vpop.f32.mrf.mxu1  ;;  %v1684_v47 = vadd.f32 %v3220_v46, %v4744_v60  ;;  %v5561_v60 = vld [vmem:[#allocation32_spill] sm:$0xff] }
 0x233   : > { %v3241_v14 = vadd.f32 %v3240_v36, %v3239_v40  ;;  %v3229_v40 = vadd.f32 %v3228_v39, %v3227_v16  ;;  %v3232_v36 = vadd.f32 %v3231_v4, %v3230_v26  ;;  %v5554_v26 = vld [vmem:[#allocation34_spill] sm:$0xff]  ;;  %v2028_v46 = vld [vmem:[#allocation7 + $0x60] sm:$0xff] }
 0x234   : > { %3298 = vmatmul.mubr.bf16.gmra.mxu0 %v5541_v17  ;;  %v3242_v33 = vpop.f32.mrf.mxu1  ;;  %v5550_v17 = vld [vmem:[#allocation27_spill] sm:$0xff]  ;;  %v5555_v4 = vld [vmem:[#allocation26_spill] sm:$0xff]  ;;  %v2698_v3 = vpack.c.bf16 %v1684_v47, %v1681_v21 }
 0x235   : > { %3299 = vmatprep.mubr.bf16.mxu0 %v1731_v18  ;;  %v1733_v1 = vpack.c.bf16 %v1313_v49, %v5550_v17  ;;  %v1713_v13 = vadd.f32 %v3241_v14, %v1712_v8  ;;  %v1697_v16 = vadd.f32 %v3229_v40, %v1696_v2  ;;  %v1333_v12 = vadd.f32 %v5555_v4, %v5554_v26  ;;  %v5556_v2 = vld [vmem:[#allocation33_spill] sm:$0xff]  ;;  %v5564_v8 = vld [vmem:[#allocation35_spill] sm:$0xff]  ;;  %v5567_v14 = vld [vmem:[#allocation38_spill] sm:$0xff] }
 0x236   : > { %v3243_v5 = vpop.f32.mrf.mxu1  ;;  %v5571_v17 = vld [vmem:[#allocation46_spill] sm:$0xff]  ;;  %v2024_v40 = vld [vmem:[#allocation7 + $0x40] sm:$0xff] }
 0x237   : > { %v3244_v27 = vadd.f32 %v3243_v5, %v3242_v33  ;;  %v1705_v33 = vadd.f32 %v3477_v55, %v3235_v32  ;;  %v1708_v5 = vadd.f32 %v3478_v42, %v3238_v57  ;;  %v1700_v55 = vadd.f32 %v3232_v36, %v1699_v29  ;;  %v2025_v36 = vld [vmem:[#allocation7 + $0x48] sm:$0xff]  ;;  %v2030_v47 = vld [vmem:[#allocation7 + $0x70] sm:$0xff] }
 0x238   : > { %v3245_v25 = vpop.f32.mrf.mxu1  ;;  %v1735_v42 = vpack.c.bf16 %v1333_v12, %v5556_v2 }
 0x239   : > { %v1716_v56 = vadd.f32 %v3244_v27, %v1715_v6  ;;  %v2701_v39 = vpack.c.bf16 %v1708_v5, %v1705_v33  ;;  %v2700_v10 = vpack.c.bf16 %v1700_v55, %v1697_v16  ;;  %v5568_v27 = vld [vmem:[#allocation44_spill] sm:$0xff] }
 0x23a   : > { %v3246_v51 = vpop.f32.mrf.mxu1 }
 0x23b   : > { %v3247_v20 = vadd.f32 %v3246_v51, %v3245_v25  ;;  %v2702_v51 = vpack.c.bf16 %v1716_v56, %v1713_v13 }
 0x23c   : > { %3300 = vmatmul.mubr.bf16.gmra.mxu0 %v1731_v18  ;;  %v3248_v48 = vpop.f32.mrf.mxu1 }
 0x23d   : > { %3301 = vmatprep.mubr.bf16.mxu0 %v1732_v53  ;;  %v1721_v34 = vadd.f32 %v3481_v43, %v3247_v20  ;;  %v1353_v43 = vadd.f32 %v5561_v60, %v5560_v62 }
 0x23e   : > { %v3249_v44 = vpop.f32.mrf.mxu1 }
 0x23f   : > { %v3250_v18 = vadd.f32 %v3249_v44, %v3248_v48  ;;  %v5569_v48 = vld [vmem:[#allocation47_spill] sm:$0xff] }
 0x241   : > { %v1724_v30 = vadd.f32 %v3482_v19, %v3250_v18  ;;  %v5566_v19 = vld [vmem:[#allocation45_spill] sm:$0xff] }
 0x243   : > { %v2703_v25 = vpack.c.bf16 %v1724_v30, %v1721_v34 }
 0x244   : > { %3302 = vmatmul.mubr.bf16.gmra.mxu0 %v1732_v53 }
 0x245   : > { %3303 = vmatprep.mubr.bf16.mxu0 %v1733_v1  ;;  %3323 = vmatprep.subr.bf16.mxu0 %v2703_v25 }
 0x246   : > { %3483 = vmatprep.subr.bf16.mxu1 %v2703_v25  ;;  %3324 = vmatpush3.bf16.msra.mxu0 %v4705_v24 }
 0x247   : > { %3491 = vmatpush3.bf16.msra.mxu1 %v4705_v24  ;;  %3325 = vmatprep.subr.bf16.mxu0 %v2702_v51  ;;  %v1689_v24 = vadd.f32 %v4722_v15, %v3223_v45  ;;  %v5558_v15 = vld [vmem:[#allocation29_spill] sm:$0xff] }
 0x248   : > { %3484 = vmatprep.subr.bf16.mxu1 %v2702_v51 }
 0x249   : > { %v2699_v22 = vpack.c.bf16 %v1692_v28, %v1689_v24  ;;  %v2029_v24 = vld [vmem:[#allocation7 + $0x68] sm:$0xff] }
 0x24a   : > { %3326 = vmatpush3.bf16.msra.mxu0 %v4697_v0 }
 0x24b   : > { %3492 = vmatpush3.bf16.msra.mxu1 %v4697_v0  ;;  %3327 = vmatprep.subr.bf16.mxu0 %v2701_v39  ;;  %v5557_v0 = vld [vmem:[#allocation37_spill] sm:$0xff] }
 0x24c   : > { %3304 = vmatmul.mubr.bf16.gmra.mxu0 %v1733_v1  ;;  %3485 = vmatprep.subr.bf16.mxu1 %v2701_v39  ;;  %v1343_v11 = vadd.f32 %v5558_v15, %v5557_v0  ;;  %v2031_v15 = vld [vmem:[#allocation7 + $0x78] sm:$0xff] }
 0x24d   : > { %3305 = vmatprep.mubr.bf16.mxu0 %v1734_v41 }
 0x24e   : > { %3328 = vmatpush3.bf16.msra.mxu0 %v4689_v58 }
 0x24f   : > { %3493 = vmatpush3.bf16.msra.mxu1 %v4689_v58  ;;  %3329 = vmatprep.subr.bf16.mxu0 %v2700_v10  ;;  %v5559_v58 = vld [vmem:[#allocation36_spill] sm:$0xff] }
 0x250   : > { %3486 = vmatprep.subr.bf16.mxu1 %v2700_v10  ;;  %v1736_v29 = vpack.c.bf16 %v1343_v11, %v5559_v58 }
 0x252   : > { %3330 = vmatpush3.bf16.msra.mxu0 %v4681_v61 }
 0x253   : > { %3494 = vmatpush3.bf16.msra.mxu1 %v4681_v61  ;;  %3331 = vmatprep.subr.bf16.mxu0 %v2699_v22  ;;  %v5562_v61 = vld [vmem:[#allocation39_spill] sm:$0xff] }
 0x254   : > { %3306 = vmatmul.mubr.bf16.gmra.mxu0 %v1734_v41  ;;  %3487 = vmatprep.subr.bf16.mxu1 %v2699_v22  ;;  %v1737_v53 = vpack.c.bf16 %v1353_v43, %v5562_v61  ;;  %v2026_v41 = vld [vmem:[#allocation7 + $0x50] sm:$0xff]  ;;  %v2032_v43 = vld [vmem:[#allocation7 + $0x80] sm:$0xff] }
 0x255   : > { %3307 = vmatprep.mubr.bf16.mxu0 %v1735_v42 }
 0x256   : > { %3332 = vmatpush3.bf16.msra.mxu0 %v4671_v31 }
 0x257   : > { %3495 = vmatpush3.bf16.msra.mxu1 %v4671_v31  ;;  %3333 = vmatprep.subr.bf16.mxu0 %v2698_v3  ;;  %v5563_v31 = vld [vmem:[#allocation43_spill] sm:$0xff] }
 0x258   : > { %3488 = vmatprep.subr.bf16.mxu1 %v2698_v3  ;;  %v1363_v49 = vadd.f32 %v5564_v8, %v5563_v31 }
 0x25a   : > { %3334 = vmatpush3.bf16.msra.mxu0 %v4673_v23 }
 0x25b   : > { %3496 = vmatpush3.bf16.msra.mxu1 %v4673_v23  ;;  %3335 = vmatprep.subr.bf16.mxu0 %v4724_v38  ;;  %v5565_v23 = vld [vmem:[#allocation42_spill] sm:$0xff] }
 0x25c   : > { %3308 = vmatmul.mubr.bf16.gmra.mxu0 %v1735_v42  ;;  %3489 = vmatprep.subr.bf16.mxu1 %v4724_v38  ;;  %v1738_v38 = vpack.c.bf16 %v1363_v49, %v5565_v23 }
 0x25d   : > { %3309 = vmatprep.mubr.bf16.mxu0 %v1736_v29 }
 0x25e   : > { %3336 = vmatpush3.bf16.msra.mxu0 %v4664_v50 }
 0x25f   : > { %3497 = vmatpush3.bf16.msra.mxu1 %v4664_v50  ;;  %3337 = vmatprep.subr.bf16.mxu0 %v4713_v37  ;;  %v1373_v50 = vadd.f32 %v5567_v14, %v5566_v19  ;;  %v2034_v14 = vld [vmem:[#allocation7 + $0x90] sm:$0xff] }
 0x260   : > { %3490 = vmatprep.subr.bf16.mxu1 %v4713_v37  ;;  %v5570_v37 = vld [vmem:[#allocation41_spill] sm:$0xff] }
 0x261   : > { %v1739_v20 = vpack.c.bf16 %v1373_v50, %v5568_v27  ;;  %v1383_v6 = vadd.f32 %v5570_v37, %v5569_v48  ;;  %v2035_v27 = vld [vmem:[#allocation7 + $0x98] sm:$0xff] }
 0x262   : > { %3338 = vmatpush3.bf16.msra.mxu0 %v4666_v7 }
 0x263   : > { %3498 = vmatpush3.bf16.msra.mxu1 %v4666_v7  ;;  %v1740_v1 = vpack.c.bf16 %v1383_v6, %v5571_v17  ;;  %v5572_v7 = vld [vmem:[#allocation48_spill] sm:$0xff] }
 0x264   : > { %3310 = vmatmul.mubr.bf16.gmra.mxu0 %v1736_v29 }
 0x265   : > { %3311 = vmatprep.mubr.bf16.mxu0 %v1737_v53 }
 0x26c   : > { %3312 = vmatmul.mubr.bf16.gmra.mxu0 %v1737_v53  ;;  %v2033_v53 = vld [vmem:[#allocation7 + $0x88] sm:$0xff] }
 0x26d   : > { %3313 = vmatprep.mubr.bf16.mxu0 %v1738_v38 }
 0x274   : > { %3314 = vmatmul.mubr.bf16.gmra.mxu0 %v1738_v38 }
 0x275   : > { %3315 = vmatprep.mubr.bf16.mxu0 %v1739_v20 }
 0x27c   : > { %3316 = vmatmul.mubr.bf16.gmra.mxu0 %v1739_v20 }
 0x27d   : > { %3317 = vmatprep.mubr.bf16.mxu0 %v1740_v1 }
 0x284   : > { %3318 = vmatmul.mubr.bf16.gmra.mxu0 %v1740_v1 }
 0x285   : > { %3319 = vmatprep.mubr.bf16.mxu0 %v4655_v9 }
 0x28c   : > { %3320 = vmatmul.mubr.bf16.gmra.mxu0 %v4655_v9 }
 0x28d   : > { %3321 = vmatprep.mubr.bf16.mxu0 %v5572_v7 }
 0x294   : > { %3322 = vmatmul.mubr.bf16.gmra.mxu0 %v5572_v7  ;;  %v2036_v7 = vld [vmem:[#allocation7 + $0xa0] sm:$0xff] }
 0x2dc   : > { %v4817_v32 = vpop.f32.mrf.mxu0 }
 0x2de   : > { %v4819_v57 = vpop.f32.mrf.mxu0 }
 0x2e0   : > { %v4821_v44 = vpop.f32.mrf.mxu0 }
 0x2e2   : > { %v4823_v34 = vpop.f32.mrf.mxu0 }
 0x2e4   : > { %v4825_v18 = vpop.f32.mrf.mxu0 }
 0x2e6   : > { %v4827_v13 = vpop.f32.mrf.mxu0 }
 0x2e8   : > { %v4829_v56 = vpop.f32.mrf.mxu0 }
 0x2ea   : > { %v4831_v30 = vpop.f32.mrf.mxu0 }
 0x2ec   : > { %v1813_v9 = vpop.f32.mrf.mxu0 }
 0x2ed   : > { %v1960_v52 = vmul.f32 1.4142135, %v1813_v9 }
 0x2ee   : > { %v1815_v59 = vpop.f32.mrf.mxu0 }
 0x2ef   : > { %v1961_v33 = vmul.f32 1.4142135, %v1815_v59  ;;  %v4833_v51 = vadd.f32 %v2024_v40, %v1960_v52  ;;  %v2037_v52 = vld [vmem:[#allocation7 + $0xa8] sm:$0xff] }
 0x2f0   : > { %v1817_v5 = vpop.f32.mrf.mxu0 }
 0x2f1   : > { %v1962_v25 = vmul.f32 1.4142135, %v1817_v5  ;;  %v4835_v63 = vadd.f32 %v2025_v36, %v1961_v33 }
 0x2f2   : > { %v1819_v45 = vpop.f32.mrf.mxu0 }
 0x2f3   : > { %v1963_v16 = vmul.f32 1.4142135, %v1819_v45  ;;  %v2156_v39 = vmax.f32 %v4833_v51, %v4835_v63  ;;  %v4839_v26 = vadd.f32 %v2026_v41, %v1962_v25  ;;  %v2038_v41 = vld [vmem:[#allocation7 + $0xb0] sm:$0xff] }
 0x2f4   : > { %v1823_v55 = vpop.f32.mrf.mxu0 }
 0x2f5   : > { %v4841_v4 = vadd.f32 %v2027_v35, %v1963_v16  ;;  %v1964_v12 = vmul.f32 1.4142135, %v1823_v55  ;;  %2157 = vmax.xlane.f32.xlu0 %v2156_v39  ;;  %v2039_v35 = vld [vmem:[#allocation7 + $0xb8] sm:$0xff] }
 0x2f6   : > { %v1825_v54 = vpop.f32.mrf.mxu0 }
 0x2f7   : > { %v1965_v28 = vmul.f32 1.4142135, %v1825_v54  ;;  %v2159_v10 = vmax.f32 %v4839_v26, %v4841_v4  ;;  %v4845_v21 = vadd.f32 %v2028_v46, %v1964_v12 }
 0x2f8   : > { %v1827_v2 = vpop.f32.mrf.mxu0 }
 0x2f9   : > { %v1966_v42 = vmul.f32 1.4142135, %v1827_v2  ;;  %2160 = vmax.xlane.f32.xlu0 %v2159_v10  ;;  %v4847_v22 = vadd.f32 %v2029_v24, %v1965_v28  ;;  %v2040_v24 = vld [vmem:[#allocation7 + $0xc0] sm:$0xff]  ;;  %v2041_v10 = vld [vmem:[#allocation7 + $0xc8] sm:$0xff] }
 0x2fa   : > { %v1829_v0 = vpop.f32.mrf.mxu0 }
 0x2fb   : > { %v1967_v11 = vmul.f32 1.4142135, %v1829_v0  ;;  %v2162_v3 = vmax.f32 %v4845_v21, %v4847_v22  ;;  %v4851_v29 = vadd.f32 %v2030_v47, %v1966_v42 }
 0x2fc   : > { %v1833_v58 = vpop.f32.mrf.mxu0 }
 0x2fd   : > { %v4853_v62 = vadd.f32 %v2031_v15, %v1967_v11  ;;  %v1968_v60 = vmul.f32 1.4142135, %v1833_v58  ;;  %2163 = vmax.xlane.f32.xlu1 %v2162_v3  ;;  %v2042_v3 = vld [vmem:[#allocation7 + $0xd0] sm:$0xff] }
 0x2fe   : > { %v1835_v61 = vpop.f32.mrf.mxu0 }
 0x2ff   : > { %v1969_v31 = vmul.f32 1.4142135, %v1835_v61  ;;  %v2165_v8 = vmax.f32 %v4851_v29, %v4853_v62  ;;  %v4857_v23 = vadd.f32 %v2032_v43, %v1968_v60  ;;  %v2043_v60 = vld [vmem:[#allocation7 + $0xd8] sm:$0xff] }
 0x300   : > { %v1837_v49 = vpop.f32.mrf.mxu0 }
 0x301   : > { %v4859_v38 = vadd.f32 %v2033_v53, %v1969_v31  ;;  %v1970_v19 = vmul.f32 1.4142135, %v1837_v49  ;;  %2166 = vmax.xlane.f32.xlu1 %v2165_v8 }
 0x302   : > { %v1839_v50 = vpop.f32.mrf.mxu0 }
 0x303   : > { %v1971_v20 = vmul.f32 1.4142135, %v1839_v50  ;;  %v2168_v48 = vmax.f32 %v4857_v23, %v4859_v38  ;;  %v4863_v6 = vadd.f32 %v2034_v14, %v1970_v19  ;;  %v2044_v19 = vld [vmem:[#allocation7 + $0xe0] sm:$0xff]  ;;  %v2045_v50 = vld [vmem:[#allocation7 + $0xe8] sm:$0xff] }
 0x304   : > { %v1843_v37 = vpop.f32.mrf.mxu0 }
 0x305   : > { %v4865_v17 = vadd.f32 %v2035_v27, %v1971_v20  ;;  %v1972_v1 = vmul.f32 1.4142135, %v1843_v37  ;;  %2169 = vmax.xlane.f32.xlu0 %v2168_v48 }
 0x306   : > { %v1845_v9 = vpop.f32.mrf.mxu0 }
 0x307   : > { %v1973_v59 = vmul.f32 1.4142135, %v1845_v9  ;;  %v2171_v40 = vmax.f32 %v4863_v6, %v4865_v17  ;;  %v4869_v33 = vadd.f32 %v2036_v7, %v1972_v1  ;;  %v2046_v9 = vld [vmem:[#allocation7 + $0xf0] sm:$0xff] }
 0x308   : > { %v1847_v36 = vpop.f32.mrf.mxu0 }
 0x309   : > { %v4871_v5 = vadd.f32 %v2037_v52, %v1973_v59  ;;  %v1974_v25 = vmul.f32 1.4142135, %v1847_v36  ;;  %2172 = vmax.xlane.f32.xlu1 %v2171_v40  ;;  %v2047_v59 = vld [vmem:[#allocation7 + $0xf8] sm:$0xff] }
 0x30a   : > { %v1849_v45 = vpop.f32.mrf.mxu0 }
 0x30b   : > { %v1975_v16 = vmul.f32 1.4142135, %v1849_v45  ;;  %v2174_v39 = vmax.f32 %v4869_v33, %v4871_v5  ;;  %v4875_v12 = vadd.f32 %v2038_v41, %v1974_v25 }
 0x30c   : > { %v1853_v55 = vpop.f32.mrf.mxu0 }
 0x30d   : > { %v4877_v54 = vadd.f32 %v2039_v35, %v1975_v16  ;;  %v1976_v46 = vmul.f32 1.4142135, %v1853_v55  ;;  %2175 = vmax.xlane.f32.xlu0 %v2174_v39  ;;  %v2048_v16 = vld [vmem:[#allocation7 + $0x100] sm:$0xff]  ;;  %v2049_v55 = vld [vmem:[#allocation7 + $0x108] sm:$0xff] }
 0x30e   : > { %v1855_v28 = vpop.f32.mrf.mxu0 }
 0x30f   : > { %v1977_v2 = vmul.f32 1.4142135, %v1855_v28  ;;  %v2177_v42 = vmax.f32 %v4875_v12, %v4877_v54  ;;  %v4881_v0 = vadd.f32 %v2040_v24, %v1976_v46 }
 0x310   : > { %v1857_v47 = vpop.f32.mrf.mxu0 }
 0x311   : > { %v4883_v15 = vadd.f32 %v2041_v10, %v1977_v2  ;;  %v1978_v11 = vmul.f32 1.4142135, %v1857_v47  ;;  %2178 = vmax.xlane.f32.xlu1 %v2177_v42  ;;  %v2050_v47 = vld [vmem:[#allocation7 + $0x110] sm:$0xff] }
 0x312   : > { %v1859_v58 = vpop.f32.mrf.mxu0 }
 0x313   : > { %v1979_v43 = vmul.f32 1.4142135, %v1859_v58  ;;  %v2180_v61 = vmax.f32 %v4881_v0, %v4883_v15  ;;  %v4887_v31 = vadd.f32 %v2042_v3, %v1978_v11  ;;  %v2051_v3 = vld [vmem:[#allocation7 + $0x118] sm:$0xff] }
 0x314   : > { %v1863_v53 = vpop.f32.mrf.mxu0 }
 0x315   : > { %v4889_v8 = vadd.f32 %v2043_v60, %v1979_v43  ;;  %v1980_v49 = vmul.f32 1.4142135, %v1863_v53  ;;  %2181 = vmax.xlane.f32.xlu0 %v2180_v61 }
 0x316   : > { %v1865_v14 = vpop.f32.mrf.mxu0 }
 0x317   : > { %v1981_v27 = vmul.f32 1.4142135, %v1865_v14  ;;  %v2183_v20 = vmax.f32 %v4887_v31, %v4889_v8  ;;  %v4893_v37 = vadd.f32 %v2044_v19, %v1980_v49  ;;  %v2052_v19 = vld [vmem:[#allocation7 + $0x120] sm:$0xff] }
 0x318   : > { %v1867_v48 = vpop.f32.mrf.mxu0 }
 0x319   : > { %v4895_v1 = vadd.f32 %v2045_v50, %v1981_v27  ;;  %v1982_v7 = vmul.f32 1.4142135, %v1867_v48  ;;  %2184 = vmax.xlane.f32.xlu1 %v2183_v20  ;;  %v2053_v50 = vld [vmem:[#allocation7 + $0x128] sm:$0xff] }
 0x31a   : > { %v1869_v52 = vpop.f32.mrf.mxu0 }
 0x31b   : > { %v1983_v40 = vmul.f32 1.4142135, %v1869_v52  ;;  %v2186_v36 = vmax.f32 %v4893_v37, %v4895_v1  ;;  %v4899_v41 = vadd.f32 %v2046_v9, %v1982_v7 }
 0x31c   : > { %v1873_v25 = vpop.f32.mrf.mxu0 }
 0x31d   : > { %v4901_v45 = vadd.f32 %v2047_v59, %v1983_v40  ;;  %v1984_v35 = vmul.f32 1.4142135, %v1873_v25  ;;  %2187 = vmax.xlane.f32.xlu0 %v2186_v36  ;;  %v2054_v59 = vld [vmem:[#allocation7 + $0x130] sm:$0xff]  ;;  %v2055_v36 = vld [vmem:[#allocation7 + $0x138] sm:$0xff] }
 0x31e   : > { %v1875_v39 = vpop.f32.mrf.mxu0 }
 0x31f   : > { %v1985_v46 = vmul.f32 1.4142135, %v1875_v39  ;;  %v2189_v24 = vmax.f32 %v4899_v41, %v4901_v45  ;;  %v4905_v10 = vadd.f32 %v2048_v16, %v1984_v35 }
 0x320   : > { %v1877_v28 = vpop.f32.mrf.mxu0 }
 0x321   : > { %v4907_v2 = vadd.f32 %v2049_v55, %v1985_v46  ;;  %v1986_v42 = vmul.f32 1.4142135, %v1877_v28  ;;  %2190 = vmax.xlane.f32.xlu1 %v2189_v24  ;;  %v2056_v24 = vld [vmem:[#allocation7 + $0x140] sm:$0xff] }
 0x322   : > { %v1879_v11 = vpop.f32.mrf.mxu0 }
 0x323   : > { %v1987_v58 = vmul.f32 1.4142135, %v1879_v11  ;;  %v2192_v60 = vmax.f32 %v4905_v10, %v4907_v2  ;;  %v4911_v61 = vadd.f32 %v2050_v47, %v1986_v42  ;;  %v2057_v42 = vld [vmem:[#allocation7 + $0x148] sm:$0xff] }
 0x324   : > { %v1883_v43 = vpop.f32.mrf.mxu0 }
 0x325   : > { %v4913_v53 = vadd.f32 %v2051_v3, %v1987_v58  ;;  %v1988_v49 = vmul.f32 1.4142135, %v1883_v43  ;;  %2193 = vmax.xlane.f32.xlu0 %v2192_v60 }
 0x326   : > { %v1885_v14 = vpop.f32.mrf.mxu0 }
 0x327   : > { %v1989_v27 = vmul.f32 1.4142135, %v1885_v14  ;;  %v2195_v20 = vmax.f32 %v4911_v61, %v4913_v53  ;;  %v4917_v7 = vadd.f32 %v2052_v19, %v1988_v49  ;;  %v2058_v49 = vld [vmem:[#allocation7 + $0x150] sm:$0xff]  ;;  %v2059_v14 = vld [vmem:[#allocation7 + $0x158] sm:$0xff] }
 0x328   : > { %v1887_v48 = vpop.f32.mrf.mxu0 }
 0x329   : > { %v4919_v9 = vadd.f32 %v2053_v50, %v1989_v27  ;;  %v1990_v52 = vmul.f32 1.4142135, %v1887_v48  ;;  %2196 = vmax.xlane.f32.xlu1 %v2195_v20 }
 0x32a   : > { %v1889_v40 = vpop.f32.mrf.mxu0 }
 0x32b   : > { %v1991_v25 = vmul.f32 1.4142135, %v1889_v40  ;;  %v2198_v35 = vmax.f32 %v4917_v7, %v4919_v9  ;;  %v4923_v39 = vadd.f32 %v2054_v59, %v1990_v52  ;;  %v2060_v40 = vld [vmem:[#allocation7 + $0x160] sm:$0xff] }
 0x32c   : > { %v1893_v16 = vpop.f32.mrf.mxu0 }
 0x32d   : > { %v4925_v55 = vadd.f32 %v2055_v36, %v1991_v25  ;;  %v1992_v46 = vmul.f32 1.4142135, %v1893_v16  ;;  %2199 = vmax.xlane.f32.xlu0 %v2198_v35  ;;  %v2061_v25 = vld [vmem:[#allocation7 + $0x168] sm:$0xff]  ;;  %v1953_v35 = vmul.f32 1.4142135, %v4819_v57 }
 0x32e   : > { %v1895_v28 = vpop.f32.mrf.mxu0  ;;  %v1955_v57 = vmul.f32 1.4142135, %v4823_v34  ;;  %v2065_v34 = vld [vmem:[#allocation7 + $0x188] sm:$0xff] }
 0x32f   : > { %v1993_v47 = vmul.f32 1.4142135, %v1895_v28  ;;  %v2201_v11 = vmax.f32 %v4923_v39, %v4925_v55  ;;  %v4929_v58 = vadd.f32 %v2056_v24, %v1992_v46  ;;  %v1952_v24 = vmul.f32 1.4142135, %v4817_v32  ;;  %v2017_v28 = vld [vmem:[#allocation7 + $0x8] sm:$0xff] }
 0x330   : > { %v1897_v3 = vpop.f32.mrf.mxu0 }
 0x331   : > { %v4931_v60 = vadd.f32 %v2057_v42, %v1993_v47  ;;  %v1994_v43 = vmul.f32 1.4142135, %v1897_v3  ;;  %2202 = vmax.xlane.f32.xlu1 %v2201_v11  ;;  %v2016_v47 = vld [vmem:[#allocation7] sm:$0xff] }
 0x332   : > { %v1899_v19 = vpop.f32.mrf.mxu0 }
 0x333   : > { %v1995_v50 = vmul.f32 1.4142135, %v1899_v19  ;;  %v2204_v27 = vmax.f32 %v4929_v58, %v4931_v60  ;;  %v4935_v48 = vadd.f32 %v2058_v49, %v1994_v43  ;;  %v2062_v49 = vld [vmem:[#allocation7 + $0x170] sm:$0xff] }
 0x334   : > { %v1903_v20 = vpop.f32.mrf.mxu0 }
 0x335   : > { %v4937_v52 = vadd.f32 %v2059_v14, %v1995_v50  ;;  %v1996_v59 = vmul.f32 1.4142135, %v1903_v20  ;;  %2205 = vmax.xlane.f32.xlu0 %v2204_v27  ;;  %v2063_v14 = vld [vmem:[#allocation7 + $0x178] sm:$0xff]  ;;  %v4947_v50 = vadd.f32 %v2017_v28, %v1953_v35  ;;  %v4952_v20 = vadd.f32 %v2016_v47, %v1952_v24  ;;  %v2018_v35 = vld [vmem:[#allocation7 + $0x10] sm:$0xff]  ;;  %v2064_v28 = vld [vmem:[#allocation7 + $0x180] sm:$0xff] }
 0x336   : > { %v1905_v36 = vpop.f32.mrf.mxu0 }
 0x337   : > { %5573 = vst [vmem:[#allocation13_spill] sm:$0xff] %v4937_v52  ;;  %v1997_v16 = vmul.f32 1.4142135, %v1905_v36  ;;  %v2207_v46 = vmax.f32 %v4935_v48, %v4937_v52  ;;  %v4943_v11 = vadd.f32 %v2060_v40, %v1996_v59  ;;  %5574 = vst [vmem:[#allocation12_spill] sm:$0xff] %v4947_v50  ;;  %v2019_v36 = vld [vmem:[#allocation7 + $0x18] sm:$0xff]  ;;  %v2144_v24 = vmax.f32 %v4952_v20, %v4947_v50 }
 0x338   : > { %v1907_v42 = vpop.f32.mrf.mxu0  ;;  %5575 = vst [vmem:[#allocation14_spill] sm:$0xff] %v4952_v20  ;;  %v1954_v40 = vmul.f32 1.4142135, %v4821_v44 }
 0x339   : > { %v4945_v3 = vadd.f32 %v2061_v25, %v1997_v16  ;;  %v1998_v43 = vmul.f32 1.4142135, %v1907_v42  ;;  %2208 = vmax.xlane.f32.xlu1 %v2207_v46 }
 0x33a   : > { %v1909_v19 = vpop.f32.mrf.mxu0 }
 0x33b   : > { %v1999_v27 = vmul.f32 1.4142135, %v1909_v19  ;;  %v2210_v32 = vmax.f32 %v4943_v11, %v4945_v3  ;;  %v4955_v25 = vadd.f32 %v2062_v49, %v1998_v43  ;;  %v4959_v19 = vadd.f32 %v2019_v36, %v1955_v57  ;;  %v2067_v36 = vld [vmem:[#allocation7 + $0x198] sm:$0xff] }
 0x33c   : > { %v1913_v59 = vpop.f32.mrf.mxu0  ;;  %v4965_v43 = vadd.f32 %v2018_v35, %v1954_v40  ;;  %v2068_v35 = vld [vmem:[#allocation7 + $0x1a0] sm:$0xff] }
 0x33d   : > { %v4957_v16 = vadd.f32 %v2063_v14, %v1999_v27  ;;  %v2000_v46 = vmul.f32 1.4142135, %v1913_v59  ;;  %2211 = vmax.xlane.f32.xlu0 %v2210_v32  ;;  %5576 = vst [vmem:[#allocation16_spill] sm:$0xff] %v4959_v19  ;;  %v2066_v32 = vld [vmem:[#allocation7 + $0x190] sm:$0xff] }
 0x33e   : > { %v1915_v42 = vpop.f32.mrf.mxu0  ;;  %5577 = vst [vmem:[#allocation18_spill] sm:$0xff] %v4965_v43 }
 0x33f   : > { %v2001_v52 = vmul.f32 1.4142135, %v1915_v42  ;;  %v2213_v47 = vmax.f32 %v4955_v25, %v4957_v16  ;;  %v4967_v49 = vadd.f32 %v2064_v28, %v2000_v46  ;;  %v2147_v42 = vmax.f32 %v4965_v43, %v4959_v19 }
 0x340   : > { %v1917_v44 = vpop.f32.mrf.mxu0 }
 0x341   : > { %v4969_v14 = vadd.f32 %v2065_v34, %v2001_v52  ;;  %v2002_v27 = vmul.f32 1.4142135, %v1917_v44  ;;  %2145 = vmax.xlane.f32.xlu0 %v2144_v24  ;;  %2214 = vmax.xlane.f32.xlu1 %v2213_v47  ;;  %v2069_v34 = vld [vmem:[#allocation7 + $0x1a8] sm:$0xff] }
 0x342   : > { %v1919_v57 = vpop.f32.mrf.mxu0 }
 0x343   : > { %v2003_v59 = vmul.f32 1.4142135, %v1919_v57  ;;  %v2216_v50 = vmax.f32 %v4967_v49, %v4969_v14  ;;  %v4975_v40 = vadd.f32 %v2066_v32, %v2002_v27  ;;  %v2070_v27 = vld [vmem:[#allocation7 + $0x1b0] sm:$0xff] }
 0x344   : > { %v1923_v20 = vpop.f32.mrf.mxu0 }
 0x345   : > { %5578 = vst [vmem:[#allocation20_spill] sm:$0xff] %v4975_v40  ;;  %v4977_v46 = vadd.f32 %v2067_v36, %v2003_v59  ;;  %v2004_v52 = vmul.f32 1.4142135, %v1923_v20  ;;  %2148 = vmax.xlane.f32.xlu1 %v2147_v42  ;;  %2217 = vmax.xlane.f32.xlu0 %v2216_v50  ;;  %v2071_v36 = vld [vmem:[#allocation7 + $0x1b8] sm:$0xff] }
 0x346   : > { %v1925_v28 = vpop.f32.mrf.mxu0 }
 0x347   : > { %5579 = vst [vmem:[#allocation22_spill] sm:$0xff] %v4977_v46  ;;  %v2005_v24 = vmul.f32 1.4142135, %v1925_v28  ;;  %v2219_v47 = vmax.f32 %v4975_v40, %v4977_v46  ;;  %v4981_v57 = vadd.f32 %v2068_v35, %v2004_v52  ;;  %v2072_v52 = vld [vmem:[#allocation7 + $0x1c0] sm:$0xff] }
 0x348   : > { %v1927_v44 = vpop.f32.mrf.mxu0 }
 0x349   : > { %v4983_v19 = vadd.f32 %v2069_v34, %v2005_v24  ;;  %v2006_v43 = vmul.f32 1.4142135, %v1927_v44  ;;  %2220 = vmax.xlane.f32.xlu1 %v2219_v47  ;;  %v2073_v34 = vld [vmem:[#allocation7 + $0x1c8] sm:$0xff] }
 0x34a   : > { %v1929_v32 = vpop.f32.mrf.mxu0 }
 0x34b   : > { %5580 = vst [vmem:[#allocation15_spill] sm:$0xff] %v4983_v19  ;;  %v2007_v20 = vmul.f32 1.4142135, %v1929_v32  ;;  %v2222_v50 = vmax.f32 %v4981_v57, %v4983_v19  ;;  %v4987_v42 = vadd.f32 %v2070_v27, %v2006_v43  ;;  %v2074_v43 = vld [vmem:[#allocation7 + $0x1d0] sm:$0xff] }
 0x34c   : > { %v1933_v59 = vpop.f32.mrf.mxu0 }
 0x34d   : > { %v4989_v28 = vadd.f32 %v2071_v36, %v2007_v20  ;;  %v2008_v46 = vmul.f32 1.4142135, %v1933_v59  ;;  %2223 = vmax.xlane.f32.xlu0 %v2222_v50  ;;  %v2075_v36 = vld [vmem:[#allocation7 + $0x1d8] sm:$0xff] }
 0x34e   : > { %v1935_v35 = vpop.f32.mrf.mxu0 }
 0x34f   : > { %v2009_v24 = vmul.f32 1.4142135, %v1935_v35  ;;  %v2225_v47 = vmax.f32 %v4987_v42, %v4989_v28  ;;  %v4993_v40 = vadd.f32 %v2072_v52, %v2008_v46 }
 0x350   : > { %v1937_v44 = vpop.f32.mrf.mxu0 }
 0x351   : > { %v4995_v32 = vadd.f32 %v2073_v34, %v2009_v24  ;;  %v2010_v19 = vmul.f32 1.4142135, %v1937_v44  ;;  %2226 = vmax.xlane.f32.xlu1 %v2225_v47 }
 0x352   : > { %v1939_v27 = vpop.f32.mrf.mxu0 }
 0x353   : > { %5581 = vst [vmem:[#allocation21_spill] sm:$0xff] %v4995_v32  ;;  %v2011_v20 = vmul.f32 1.4142135, %v1939_v27  ;;  %v2228_v50 = vmax.f32 %v4993_v40, %v4995_v32  ;;  %v4999_v59 = vadd.f32 %v2074_v43, %v2010_v19 }
 0x355   : > { %v5001_v35 = vadd.f32 %v2075_v36, %v2011_v20  ;;  %2229 = vmax.xlane.f32.xlu0 %v2228_v50 }
 0x357   : > { %v2231_v46 = vmax.f32 %v4999_v59, %v5001_v35 }
 0x359   : > { %2232 = vmax.xlane.f32.xlu1 %v2231_v46 }
 0x37e   : > { %v2158_v52 = vpop.xlane.xlu0 %2157 }
 0x37f   : > { %v2248_v34 = vsub.f32 %v4833_v51, %v2158_v52  ;;  %v2249_v24 = vsub.f32 %v4835_v63, %v2158_v52 }
 0x381   : > { %v2320_v47 = vmul.f32 1.442695, %v2248_v34  ;;  %v2322_v44 = vmul.f32 1.442695, %v2249_v24  ;;  %v1943_v34 = vpop.f32.mrf.mxu0 }
 0x382   : > { %v2161_v27 = vpop.xlane.xlu0 %2160 }
 0x383   : > { %3736 = vpow2.f32 %v2320_v47  ;;  %v2250_v32 = vsub.f32 %v4839_v26, %v2161_v27  ;;  %v2251_v19 = vsub.f32 %v4841_v4, %v2161_v27  ;;  %v1957_v47 = vmul.f32 1.4142135, %v4827_v13  ;;  %v2021_v27 = vld [vmem:[#allocation7 + $0x28] sm:$0xff] }
 0x384   : > { %3738 = vpow2.f32 %v2322_v44  ;;  %v1959_v13 = vmul.f32 1.4142135, %v4831_v30 }
 0x385   : > { %v2324_v43 = vmul.f32 1.442695, %v2250_v32  ;;  %v2326_v36 = vmul.f32 1.442695, %v2251_v19 }
 0x386   : > { %v2164_v20 = vpop.xlane.xlu1 %2163 }
 0x387   : > { %3740 = vpow2.f32 %v2324_v43  ;;  %v2252_v50 = vsub.f32 %v4845_v21, %v2164_v20  ;;  %v2253_v46 = vsub.f32 %v4847_v22, %v2164_v20  ;;  %v1945_v21 = vpop.f32.mrf.mxu0 }
 0x388   : > { %3742 = vpow2.f32 %v2326_v36  ;;  %v1956_v36 = vmul.f32 1.4142135, %v4825_v18 }
 0x389   : > { %v2328_v51 = vmul.f32 1.442695, %v2252_v50  ;;  %v2330_v63 = vmul.f32 1.442695, %v2253_v46  ;;  %v5021_v46 = vadd.f32 %v2021_v27, %v1957_v47 }
 0x38a   : > { %v2167_v52 = vpop.xlane.xlu1 %2166 }
 0x38b   : > { %3744 = vpow2.f32 %v2328_v51  ;;  %v2254_v24 = vsub.f32 %v4851_v29, %v2167_v52  ;;  %v2255_v26 = vsub.f32 %v4853_v62, %v2167_v52  ;;  %v2020_v62 = vld [vmem:[#allocation7 + $0x20] sm:$0xff] }
 0x38c   : > { %3746 = vpow2.f32 %v2330_v63  ;;  %v2023_v63 = vld [vmem:[#allocation7 + $0x38] sm:$0xff] }
 0x38d   : > { %v2332_v4 = vmul.f32 1.442695, %v2254_v24  ;;  %v2334_v32 = vmul.f32 1.442695, %v2255_v26  ;;  %v5030_v26 = vadd.f32 %v2020_v62, %v1956_v36  ;;  %v5035_v27 = vadd.f32 %v2023_v63, %v1959_v13  ;;  %v2077_v36 = vld [vmem:[#allocation7 + $0x1e8] sm:$0xff] }
 0x38e   : > { %v2170_v44 = vpop.xlane.xlu0 %2169  ;;  %v2012_v13 = vmul.f32 1.4142135, %v1943_v34 }
 0x38f   : > { %3748 = vpow2.f32 %v2332_v4  ;;  %v2256_v22 = vsub.f32 %v4857_v23, %v2170_v44  ;;  %v2257_v19 = vsub.f32 %v4859_v38, %v2170_v44  ;;  %v1947_v38 = vpop.f32.mrf.mxu0  ;;  %v1958_v4 = vmul.f32 1.4142135, %v4829_v56 }
 0x390   : > { %v5016_v43 = vpop.eup %3736  ;;  %3750 = vpow2.f32 %v2334_v32  ;;  %v2022_v32 = vld [vmem:[#allocation7 + $0x30] sm:$0xff] }
 0x391   : > { %v5019_v29 = vpop.eup %3738  ;;  %v2336_v20 = vmul.f32 1.442695, %v2256_v22  ;;  %v2338_v50 = vmul.f32 1.442695, %v2257_v19  ;;  %v2013_v22 = vmul.f32 1.4142135, %v1945_v21  ;;  %v1949_v62 = vpop.f32.mrf.mxu0 }
 0x392   : > { %v2173_v51 = vpop.xlane.xlu1 %2172  ;;  %v2444_v23 = vadd.f32 %v5019_v29, %v5016_v43 }
 0x393   : > { %3752 = vpow2.f32 %v2336_v20  ;;  %v2258_v52 = vsub.f32 %v4863_v6, %v2173_v51  ;;  %v2259_v18 = vsub.f32 %v4865_v17, %v2173_v51  ;;  %v2150_v6 = vmax.f32 %v5030_v26, %v5021_v46 }
 0x394   : > { %v5028_v24 = vpop.eup %3740  ;;  %3754 = vpow2.f32 %v2338_v50  ;;  %2445 = vadd.xlane.f32.xlu0 %v2444_v23  ;;  %v5045_v51 = vadd.f32 %v2022_v32, %v1958_v4  ;;  %v2076_v23 = vld [vmem:[#allocation7 + $0x1e0] sm:$0xff]  ;;  %v2079_v4 = vld [vmem:[#allocation7 + $0x1f8] sm:$0xff] }
 0x395   : > { %v5033_v30 = vpop.eup %3742  ;;  %v2340_v47 = vmul.f32 1.442695, %v2258_v52  ;;  %v2342_v44 = vmul.f32 1.442695, %v2259_v18  ;;  %v5049_v18 = vadd.f32 %v2077_v36, %v2013_v22  ;;  %v2014_v22 = vmul.f32 1.4142135, %v1947_v38 }
 0x396   : > { %5582 = vst [vmem:[#allocation25_spill] sm:$0xff] %v5033_v30  ;;  %v2176_v19 = vpop.xlane.xlu0 %2175  ;;  %v2447_v17 = vadd.f32 %v5033_v30, %v5028_v24 }
 0x397   : > { %3756 = vpow2.f32 %v2340_v47  ;;  %v2260_v56 = vsub.f32 %v4869_v33, %v2176_v19  ;;  %v2261_v20 = vsub.f32 %v4871_v5, %v2176_v19  ;;  %v2015_v47 = vmul.f32 1.4142135, %v1949_v62 }
 0x398   : > { %v5043_v50 = vpop.eup %3744  ;;  %3758 = vpow2.f32 %v2342_v44  ;;  %2151 = vmax.xlane.f32.xlu0 %v2150_v6  ;;  %2448 = vadd.xlane.f32.xlu1 %v2447_v17  ;;  %v2153_v5 = vmax.f32 %v5045_v51, %v5035_v27  ;;  %v5059_v19 = vadd.f32 %v2076_v23, %v2012_v13  ;;  %v2078_v17 = vld [vmem:[#allocation7 + $0x1f0] sm:$0xff] }
 0x399   : > { %v5047_v21 = vpop.eup %3746  ;;  %v2344_v63 = vmul.f32 1.442695, %v2260_v56  ;;  %v2346_v52 = vmul.f32 1.442695, %v2261_v20  ;;  %v5063_v56 = vadd.f32 %v2079_v4, %v2015_v47  ;;  %v5073_v23 = vadd.f32 %v2078_v17, %v2014_v22 }
 0x39a   : > { %v2179_v30 = vpop.xlane.xlu1 %2178  ;;  %v2450_v33 = vadd.f32 %v5047_v21, %v5043_v50 }
 0x39b   : > { %3760 = vpow2.f32 %v2344_v63  ;;  %v2262_v34 = vsub.f32 %v4875_v12, %v2179_v30  ;;  %v2263_v32 = vsub.f32 %v4877_v54, %v2179_v30  ;;  %v2234_v54 = vmax.f32 %v5059_v19, %v5049_v18 }
 0x39c   : > { %v5057_v44 = vpop.eup %3748  ;;  %3762 = vpow2.f32 %v2346_v52  ;;  %2451 = vadd.xlane.f32.xlu0 %v2450_v33  ;;  %2154 = vmax.xlane.f32.xlu1 %v2153_v5 }
 0x39d   : > { %v5061_v6 = vpop.eup %3750  ;;  %v2348_v36 = vmul.f32 1.442695, %v2262_v34  ;;  %v2350_v62 = vmul.f32 1.442695, %v2263_v32 }
 0x39e   : > { %v2182_v20 = vpop.xlane.xlu0 %2181  ;;  %v2453_v12 = vadd.f32 %v5061_v6, %v5057_v44 }
 0x39f   : > { %3764 = vpow2.f32 %v2348_v36  ;;  %v2264_v38 = vsub.f32 %v4881_v0, %v2182_v20  ;;  %v2265_v30 = vsub.f32 %v4883_v15, %v2182_v20  ;;  %v2237_v0 = vmax.f32 %v5073_v23, %v5063_v56 }
 0x3a0   : > { %v5071_v13 = vpop.eup %3752  ;;  %3766 = vpow2.f32 %v2350_v62  ;;  %2454 = vadd.xlane.f32.xlu1 %v2453_v12  ;;  %2235 = vmax.xlane.f32.xlu0 %v2234_v54 }
 0x3a1   : > { %v5075_v63 = vpop.eup %3754  ;;  %v2352_v52 = vmul.f32 1.442695, %v2264_v38  ;;  %v2354_v47 = vmul.f32 1.442695, %v2265_v30 }
 0x3a2   : > { %v2185_v33 = vpop.xlane.xlu1 %2184  ;;  %v2456_v5 = vadd.f32 %v5075_v63, %v5071_v13 }
 0x3a3   : > { %3768 = vpow2.f32 %v2352_v52  ;;  %v2266_v15 = vsub.f32 %v4887_v31, %v2185_v33  ;;  %v2267_v4 = vsub.f32 %v4889_v8, %v2185_v33 }
 0x3a4   : > { %v5083_v34 = vpop.eup %3756  ;;  %3770 = vpow2.f32 %v2354_v47  ;;  %2457 = vadd.xlane.f32.xlu0 %v2456_v5  ;;  %2238 = vmax.xlane.f32.xlu1 %v2237_v0 }
 0x3a5   : > { %v5085_v32 = vpop.eup %3758  ;;  %v2356_v22 = vmul.f32 1.442695, %v2266_v15  ;;  %v2358_v17 = vmul.f32 1.442695, %v2267_v4 }
 0x3a6   : > { %v2188_v36 = vpop.xlane.xlu0 %2187  ;;  %v2459_v62 = vadd.f32 %v5085_v32, %v5083_v34 }
 0x3a7   : > { %3772 = vpow2.f32 %v2356_v22  ;;  %v2268_v20 = vsub.f32 %v4893_v37, %v2188_v36  ;;  %v2269_v31 = vsub.f32 %v4895_v1, %v2188_v36 }
 0x3a8   : > { %v5091_v12 = vpop.eup %3760  ;;  %3774 = vpow2.f32 %v2358_v17  ;;  %2460 = vadd.xlane.f32.xlu1 %v2459_v62 }
 0x3a9   : > { %v5093_v8 = vpop.eup %3762  ;;  %v2360_v54 = vmul.f32 1.442695, %v2268_v20  ;;  %v2362_v38 = vmul.f32 1.442695, %v2269_v31 }
 0x3aa   : > { %v2191_v30 = vpop.xlane.xlu1 %2190  ;;  %v2462_v52 = vadd.f32 %v5093_v8, %v5091_v12 }
 0x3ab   : > { %3776 = vpow2.f32 %v2360_v54  ;;  %v2270_v47 = vsub.f32 %v4899_v41, %v2191_v30  ;;  %v2271_v33 = vsub.f32 %v4901_v45, %v2191_v30 }
 0x3ac   : > { %v5099_v37 = vpop.eup %3764  ;;  %3778 = vpow2.f32 %v2362_v38  ;;  %2463 = vadd.xlane.f32.xlu0 %v2462_v52 }
 0x3ad   : > { %v5101_v1 = vpop.eup %3766  ;;  %v2364_v5 = vmul.f32 1.442695, %v2270_v47  ;;  %v2366_v0 = vmul.f32 1.442695, %v2271_v33 }
 0x3ae   : > { %v2194_v15 = vpop.xlane.xlu0 %2193  ;;  %v2465_v4 = vadd.f32 %v5101_v1, %v5099_v37 }
 0x3af   : > { %3780 = vpow2.f32 %v2364_v5  ;;  %v2272_v22 = vsub.f32 %v4905_v10, %v2194_v15  ;;  %v2273_v17 = vsub.f32 %v4907_v2, %v2194_v15 }
 0x3b0   : > { %v5107_v41 = vpop.eup %3768  ;;  %3782 = vpow2.f32 %v2366_v0  ;;  %2466 = vadd.xlane.f32.xlu1 %v2465_v4 }
 0x3b1   : > { %v5109_v45 = vpop.eup %3770  ;;  %v2368_v36 = vmul.f32 1.442695, %v2272_v22  ;;  %v2370_v62 = vmul.f32 1.442695, %v2273_v17 }
 0x3b2   : > { %v2197_v20 = vpop.xlane.xlu1 %2196  ;;  %v2468_v31 = vadd.f32 %v5109_v45, %v5107_v41 }
 0x3b3   : > { %3784 = vpow2.f32 %v2368_v36  ;;  %v2274_v54 = vsub.f32 %v4911_v61, %v2197_v20  ;;  %v2275_v38 = vsub.f32 %v4913_v53, %v2197_v20 }
 0x3b4   : > { %v5115_v10 = vpop.eup %3772  ;;  %3786 = vpow2.f32 %v2370_v62  ;;  %2469 = vadd.xlane.f32.xlu0 %v2468_v31 }
 0x3b5   : > { %v5117_v2 = vpop.eup %3774  ;;  %v2372_v30 = vmul.f32 1.442695, %v2274_v54  ;;  %v2374_v52 = vmul.f32 1.442695, %v2275_v38 }
 0x3b6   : > { %v2200_v47 = vpop.xlane.xlu0 %2199  ;;  %v2471_v33 = vadd.f32 %v5117_v2, %v5115_v10 }
 0x3b7   : > { %3788 = vpow2.f32 %v2372_v30  ;;  %v2276_v5 = vsub.f32 %v4917_v7, %v2200_v47  ;;  %v2277_v0 = vsub.f32 %v4919_v9, %v2200_v47 }
 0x3b8   : > { %v5123_v61 = vpop.eup %3776  ;;  %3790 = vpow2.f32 %v2374_v52  ;;  %2472 = vadd.xlane.f32.xlu1 %v2471_v33 }
 0x3b9   : > { %v5125_v53 = vpop.eup %3778  ;;  %v2376_v15 = vmul.f32 1.442695, %v2276_v5  ;;  %v2378_v4 = vmul.f32 1.442695, %v2277_v0 }
 0x3ba   : > { %v2203_v22 = vpop.xlane.xlu1 %2202  ;;  %v2474_v17 = vadd.f32 %v5125_v53, %v5123_v61 }
 0x3bb   : > { %3792 = vpow2.f32 %v2376_v15  ;;  %v2278_v36 = vsub.f32 %v4923_v39, %v2203_v22  ;;  %v2279_v62 = vsub.f32 %v4925_v55, %v2203_v22 }
 0x3bc   : > { %v5131_v7 = vpop.eup %3780  ;;  %3794 = vpow2.f32 %v2378_v4  ;;  %2475 = vadd.xlane.f32.xlu0 %v2474_v17  ;;  %v5583_v4 = vld [vmem:[#allocation13_spill] sm:$0xff] }
 0x3bd   : > { %v5133_v9 = vpop.eup %3782  ;;  %v2380_v20 = vmul.f32 1.442695, %v2278_v36  ;;  %v2382_v31 = vmul.f32 1.442695, %v2279_v62 }
 0x3be   : > { %v2206_v54 = vpop.xlane.xlu0 %2205  ;;  %v2477_v38 = vadd.f32 %v5133_v9, %v5131_v7 }
 0x3bf   : > { %3796 = vpow2.f32 %v2380_v20  ;;  %v2280_v30 = vsub.f32 %v4929_v58, %v2206_v54  ;;  %v2281_v52 = vsub.f32 %v4931_v60, %v2206_v54 }
 0x3c0   : > { %v5139_v39 = vpop.eup %3784  ;;  %3798 = vpow2.f32 %v2382_v31  ;;  %2478 = vadd.xlane.f32.xlu1 %v2477_v38 }
 0x3c1   : > { %v5141_v55 = vpop.eup %3786  ;;  %v2384_v47 = vmul.f32 1.442695, %v2280_v30  ;;  %v2386_v33 = vmul.f32 1.442695, %v2281_v52 }
 0x3c2   : > { %v2209_v5 = vpop.xlane.xlu1 %2208  ;;  %v2480_v0 = vadd.f32 %v5141_v55, %v5139_v39 }
 0x3c3   : > { %3800 = vpow2.f32 %v2384_v47  ;;  %v2282_v15 = vsub.f32 %v4935_v48, %v2209_v5  ;;  %v2283_v22 = vsub.f32 %v5583_v4, %v2209_v5 }
 0x3c4   : > { %v5147_v58 = vpop.eup %3788  ;;  %3802 = vpow2.f32 %v2386_v33  ;;  %2481 = vadd.xlane.f32.xlu0 %v2480_v0 }
 0x3c5   : > { %v5149_v60 = vpop.eup %3790  ;;  %v2388_v17 = vmul.f32 1.442695, %v2282_v15  ;;  %v2390_v36 = vmul.f32 1.442695, %v2283_v22 }
 0x3c6   : > { %v2212_v62 = vpop.xlane.xlu0 %2211  ;;  %v2483_v20 = vadd.f32 %v5149_v60, %v5147_v58 }
 0x3c7   : > { %3804 = vpow2.f32 %v2388_v17  ;;  %v2284_v31 = vsub.f32 %v4943_v11, %v2212_v62  ;;  %v2285_v54 = vsub.f32 %v4945_v3, %v2212_v62 }
 0x3c8   : > { %v5155_v48 = vpop.eup %3792  ;;  %3806 = vpow2.f32 %v2390_v36  ;;  %2484 = vadd.xlane.f32.xlu1 %v2483_v20 }
 0x3c9   : > { %5584 = vst [vmem:[#allocation17_spill] sm:$0xff] %v5155_v48  ;;  %v5157_v38 = vpop.eup %3794  ;;  %v2392_v30 = vmul.f32 1.442695, %v2284_v31  ;;  %v2394_v52 = vmul.f32 1.442695, %v2285_v54 }
 0x3ca   : > { %v2146_v47 = vpop.xlane.xlu0 %2145  ;;  %v2215_v33 = vpop.xlane.xlu1 %2214  ;;  %v2486_v5 = vadd.f32 %v5157_v38, %v5155_v48 }
 0x3cb   : > { %3808 = vpow2.f32 %v2392_v30  ;;  %v2286_v0 = vsub.f32 %v4955_v25, %v2215_v33  ;;  %v2287_v11 = vsub.f32 %v4957_v16, %v2215_v33 }
 0x3cc   : > { %v5162_v15 = vpop.eup %3796  ;;  %3810 = vpow2.f32 %v2394_v52  ;;  %2487 = vadd.xlane.f32.xlu0 %v2486_v5  ;;  %v5589_v5 = vld [vmem:[#allocation20_spill] sm:$0xff] }
 0x3cd   : > { %5585 = vst [vmem:[#allocation24_spill] sm:$0xff] %v5162_v15  ;;  %v5165_v3 = vpop.eup %3798  ;;  %v2396_v4 = vmul.f32 1.442695, %v2286_v0  ;;  %v2398_v22 = vmul.f32 1.442695, %v2287_v11  ;;  %v5590_v11 = vld [vmem:[#allocation22_spill] sm:$0xff] }
 0x3ce   : > { %5586 = vst [vmem:[#allocation28_spill] sm:$0xff] %v5165_v3  ;;  %v2149_v17 = vpop.xlane.xlu1 %2148  ;;  %v2218_v36 = vpop.xlane.xlu0 %2217  ;;  %v2489_v62 = vadd.f32 %v5165_v3, %v5162_v15 }
 0x3cf   : > { %v2288_v20 = vsub.f32 %v4967_v49, %v2218_v36  ;;  %v2289_v25 = vsub.f32 %v4969_v14, %v2218_v36  ;;  %3812 = vpow2.f32 %v2396_v4  ;;  %v5592_v14 = vld [vmem:[#allocation14_spill] sm:$0xff] }
 0x3d0   : > { %v5170_v31 = vpop.eup %3800  ;;  %2490 = vadd.xlane.f32.xlu1 %v2489_v62  ;;  %3814 = vpow2.f32 %v2398_v22  ;;  %v2240_v36 = vsub.f32 %v5592_v14, %v2146_v47  ;;  %v5593_v22 = vld [vmem:[#allocation12_spill] sm:$0xff] }
 0x3d1   : > { %5587 = vst [vmem:[#allocation19_spill] sm:$0xff] %v5170_v31  ;;  %v5173_v54 = vpop.eup %3802  ;;  %v2400_v16 = vmul.f32 1.442695, %v2288_v20  ;;  %v2402_v30 = vmul.f32 1.442695, %v2289_v25  ;;  %v2241_v20 = vsub.f32 %v5593_v22, %v2146_v47 }
 0x3d2   : > { %5588 = vst [vmem:[#allocation27_spill] sm:$0xff] %v5173_v54  ;;  %v2221_v52 = vpop.xlane.xlu1 %2220  ;;  %v2492_v33 = vadd.f32 %v5173_v54, %v5170_v31  ;;  %v5596_v54 = vld [vmem:[#allocation16_spill] sm:$0xff] }
 0x3d3   : > { %v2290_v0 = vsub.f32 %v5589_v5, %v2221_v52  ;;  %v2291_v48 = vsub.f32 %v5590_v11, %v2221_v52  ;;  %3816 = vpow2.f32 %v2400_v16  ;;  %v5594_v5 = vld [vmem:[#allocation15_spill] sm:$0xff]  ;;  %v2304_v16 = vmul.f32 1.442695, %v2240_v36 }
 0x3d4   : > { %v5179_v49 = vpop.eup %3804  ;;  %2493 = vadd.xlane.f32.xlu0 %v2492_v33  ;;  %3818 = vpow2.f32 %v2402_v30  ;;  %v2306_v22 = vmul.f32 1.442695, %v2241_v20  ;;  %v2243_v3 = vsub.f32 %v5596_v54, %v2149_v17 }
 0x3d5   : > { %5591 = vst [vmem:[#allocation31_spill] sm:$0xff] %v5179_v49  ;;  %v5181_v15 = vpop.eup %3806  ;;  %v2404_v4 = vmul.f32 1.442695, %v2290_v0  ;;  %v2406_v62 = vmul.f32 1.442695, %v2291_v48  ;;  %v5595_v48 = vld [vmem:[#allocation18_spill] sm:$0xff] }
 0x3d6   : > { %v2224_v25 = vpop.xlane.xlu0 %2223  ;;  %v2495_v31 = vadd.f32 %v5181_v15, %v5179_v49  ;;  %v2242_v0 = vsub.f32 %v5595_v48, %v2149_v17  ;;  %v2310_v20 = vmul.f32 1.442695, %v2243_v3 }
 0x3d7   : > { %3820 = vpow2.f32 %v2404_v4  ;;  %v2292_v52 = vsub.f32 %v4981_v57, %v2224_v25  ;;  %v2293_v11 = vsub.f32 %v5594_v5, %v2224_v25 }
 0x3d8   : > { %v5189_v33 = vpop.eup %3808  ;;  %3822 = vpow2.f32 %v2406_v62  ;;  %2496 = vadd.xlane.f32.xlu1 %v2495_v31  ;;  %v2308_v31 = vmul.f32 1.442695, %v2242_v0 }
 0x3d9   : > { %v5191_v14 = vpop.eup %3810  ;;  %v2408_v47 = vmul.f32 1.442695, %v2292_v52  ;;  %v2410_v30 = vmul.f32 1.442695, %v2293_v11  ;;  %v5597_v11 = vld [vmem:[#allocation21_spill] sm:$0xff] }
 0x3da   : > { %v2227_v49 = vpop.xlane.xlu1 %2226  ;;  %v2498_v57 = vadd.f32 %v5191_v14, %v5189_v33 }
 0x3db   : > { %3824 = vpow2.f32 %v2408_v47  ;;  %v2294_v4 = vsub.f32 %v4987_v42, %v2227_v49  ;;  %v2295_v62 = vsub.f32 %v4989_v28, %v2227_v49 }
 0x3dc   : > { %3826 = vpow2.f32 %v2410_v30  ;;  %2499 = vadd.xlane.f32.xlu0 %v2498_v57  ;;  %v5199_v52 = vpop.eup %3812 }
 0x3dd   : > { %3828 = vpow2.f32 %v2304_v16  ;;  %v2412_v36 = vmul.f32 1.442695, %v2294_v4  ;;  %v2414_v25 = vmul.f32 1.442695, %v2295_v62  ;;  %v5201_v54 = vpop.eup %3814 }
 0x3de   : > { %3830 = vpow2.f32 %v2306_v22  ;;  %v2230_v17 = vpop.xlane.xlu0 %2229  ;;  %v2501_v28 = vadd.f32 %v5201_v54, %v5199_v52 }
 0x3df   : > { %3832 = vpow2.f32 %v2412_v36  ;;  %v2296_v5 = vsub.f32 %v4993_v40, %v2230_v17  ;;  %v2297_v42 = vsub.f32 %v5597_v11, %v2230_v17 }
 0x3e0   : > { %3834 = vpow2.f32 %v2414_v25  ;;  %v5207_v48 = vpop.eup %3816  ;;  %2502 = vadd.xlane.f32.xlu1 %v2501_v28 }
 0x3e1   : > { %3836 = vpow2.f32 %v2308_v31  ;;  %v2416_v49 = vmul.f32 1.442695, %v2296_v5  ;;  %v2418_v16 = vmul.f32 1.442695, %v2297_v42  ;;  %v5209_v0 = vpop.eup %3818 }
 0x3e2   : > { %3838 = vpow2.f32 %v2310_v20  ;;  %v2233_v3 = vpop.xlane.xlu1 %2232  ;;  %v2504_v22 = vadd.f32 %v5209_v0, %v5207_v48 }
 0x3e3   : > { %3840 = vpow2.f32 %v2416_v49  ;;  %v2298_v47 = vsub.f32 %v4999_v59, %v2233_v3  ;;  %v2299_v40 = vsub.f32 %v5001_v35, %v2233_v3 }
 0x3e4   : > { %v5213_v30 = vpop.eup %3820  ;;  %3842 = vpow2.f32 %v2418_v16  ;;  %2505 = vadd.xlane.f32.xlu0 %v2504_v22 }
 0x3e5   : > { %v5217_v57 = vpop.eup %3822  ;;  %v2420_v4 = vmul.f32 1.442695, %v2298_v47  ;;  %v2422_v62 = vmul.f32 1.442695, %v2299_v40 }
 0x3e6   : > { %v2507_v31 = vadd.f32 %v5217_v57, %v5213_v30 }
 0x3e7   : > { %3844 = vpow2.f32 %v2420_v4 }
 0x3e8   : > { %v5221_v36 = vpop.eup %3824  ;;  %3846 = vpow2.f32 %v2422_v62  ;;  %2508 = vadd.xlane.f32.xlu1 %v2507_v31 }
 0x3e9   : > { %v5223_v59 = vpop.eup %3826 }
 0x3ea   : > { %v5225_v35 = vpop.eup %3828  ;;  %v2510_v25 = vadd.f32 %v5223_v59, %v5221_v36 }
 0x3eb   : > { %v5229_v20 = vpop.eup %3830 }
 0x3ec   : > { %5598 = vst [vmem:[#allocation23_spill] sm:$0xff] %v5229_v20  ;;  %v5231_v17 = vpop.eup %3832  ;;  %2511 = vadd.xlane.f32.xlu0 %v2510_v25  ;;  %v2432_v42 = vadd.f32 %v5229_v20, %v5225_v35 }
 0x3ed   : > { %v5233_v5 = vpop.eup %3834 }
 0x3ee   : > { %v5235_v11 = vpop.eup %3836  ;;  %v2513_v28 = vadd.f32 %v5233_v5, %v5231_v17 }
 0x3ef   : > { %5599 = vst [vmem:[#allocation30_spill] sm:$0xff] %v5235_v11  ;;  %v5241_v49 = vpop.eup %3838 }
 0x3f0   : > { %5600 = vst [vmem:[#allocation34_spill] sm:$0xff] %v5241_v49  ;;  %v5243_v16 = vpop.eup %3840  ;;  %2433 = vadd.xlane.f32.xlu0 %v2432_v42  ;;  %2514 = vadd.xlane.f32.xlu1 %v2513_v28  ;;  %v2435_v40 = vadd.f32 %v5241_v49, %v5235_v11 }
 0x3f1   : > { %5601 = vst [vmem:[#allocation26_spill] sm:$0xff] %v5243_v16  ;;  %v5245_v3 = vpop.eup %3842 }
 0x3f2   : > { %5602 = vst [vmem:[#allocation33_spill] sm:$0xff] %v5245_v3  ;;  %v2516_v47 = vadd.f32 %v5245_v3, %v5243_v16 }
 0x3f4   : > { %v5251_v22 = vpop.eup %3844  ;;  %2517 = vadd.xlane.f32.xlu0 %v2516_v47  ;;  %2436 = vadd.xlane.f32.xlu1 %v2435_v40 }
 0x3f5   : > { %5603 = vst [vmem:[#allocation37_spill] sm:$0xff] %v5251_v22  ;;  %v5253_v4 = vpop.eup %3846 }
 0x3f6   : > { %5604 = vst [vmem:[#allocation29_spill] sm:$0xff] %v5253_v4  ;;  %v2519_v62 = vadd.f32 %v5253_v4, %v5251_v22 }
 0x3f8   : > { %2520 = vadd.xlane.f32.xlu1 %v2519_v62 }
 0x41d   : > { %v2446_v31 = vpop.xlane.xlu0 %2445 }
 0x41e   : > { %3848 = vrcp.f32 %v2446_v31 }
 0x421   : > { %v2152_v25 = vpop.xlane.xlu0 %2151  ;;  %v2449_v42 = vpop.xlane.xlu1 %2448 }
 0x422   : > { %v2244_v28 = vsub.f32 %v5030_v26, %v2152_v25  ;;  %v2245_v16 = vsub.f32 %v5021_v46, %v2152_v25  ;;  %3850 = vrcp.f32 %v2449_v42 }
 0x424   : > { %v2312_v3 = vmul.f32 1.442695, %v2244_v28  ;;  %v2314_v49 = vmul.f32 1.442695, %v2245_v16 }
 0x425   : > { %v2452_v20 = vpop.xlane.xlu0 %2451  ;;  %v2155_v47 = vpop.xlane.xlu1 %2154 }
 0x426   : > { %3852 = vpow2.f32 %v2312_v3  ;;  %v2246_v40 = vsub.f32 %v5045_v51, %v2155_v47  ;;  %v2247_v11 = vsub.f32 %v5035_v27, %v2155_v47  ;;  %v5605_v47 = vld [vmem:[#allocation25_spill] sm:$0xff] }
 0x427   : > { %3854 = vpow2.f32 %v2314_v49 }
 0x428   : > { %v2316_v62 = vmul.f32 1.442695, %v2246_v40  ;;  %v2318_v22 = vmul.f32 1.442695, %v2247_v11  ;;  %3856 = vrcp.f32 %v2452_v20 }
 0x429   : > { %v2455_v31 = vpop.xlane.xlu1 %2454  ;;  %v2236_v4 = vpop.xlane.xlu0 %2235 }
 0x42a   : > { %3858 = vpow2.f32 %v2316_v62  ;;  %v2300_v26 = vsub.f32 %v5059_v19, %v2236_v4  ;;  %v2301_v46 = vsub.f32 %v5049_v18, %v2236_v4 }
 0x42b   : > { %3860 = vpow2.f32 %v2318_v22  ;;  %v3849_v3 = vpop.eup %3848 }
 0x42c   : > { %3862 = vrcp.f32 %v2455_v31  ;;  %v2424_v16 = vmul.f32 1.442695, %v2300_v26  ;;  %v2426_v25 = vmul.f32 1.442695, %v2301_v46  ;;  %v2600_v49 = vmul.f32 %v3849_v3, %v5016_v43 }
 0x42d   : > { %v2239_v42 = vpop.xlane.xlu1 %2238  ;;  %v2458_v51 = vpop.xlane.xlu0 %2457  ;;  %v2601_v4 = vmul.f32 %v3849_v3, %v5019_v29 }
 0x42e   : > { %3864 = vpow2.f32 %v2424_v16  ;;  %v2302_v27 = vsub.f32 %v5073_v23, %v2239_v42  ;;  %v2303_v11 = vsub.f32 %v5063_v56, %v2239_v42 }
 0x42f   : > { %v3851_v20 = vpop.eup %3850  ;;  %3866 = vpow2.f32 %v2426_v25 }
 0x430   : > { %v2602_v19 = vmul.f32 %v3851_v20, %v5028_v24  ;;  %v2428_v28 = vmul.f32 1.442695, %v2302_v27  ;;  %v2430_v18 = vmul.f32 1.442695, %v2303_v11  ;;  %3868 = vrcp.f32 %v2458_v51 }
 0x431   : > { %v2461_v22 = vpop.xlane.xlu1 %2460  ;;  %v2603_v40 = vmul.f32 %v3851_v20, %v5605_v47 }
 0x432   : > { %v2660_v62 = vpack.c.bf16 %v2602_v19, %v2600_v49  ;;  %3870 = vpow2.f32 %v2428_v28 }
 0x433   : > { %v5269_v31 = vpop.eup %3852  ;;  %3872 = vpow2.f32 %v2430_v18  ;;  %v2661_v56 = vpack.c.bf16 %v2603_v40, %v2601_v4 }
 0x434   : > { %v5271_v23 = vpop.eup %3854  ;;  %3874 = vrcp.f32 %v2461_v22 }
 0x435   : > { %2752 = vmatprep.mubr.bf16.mxu1 %v2661_v56  ;;  %v2464_v43 = vpop.xlane.xlu0 %2463  ;;  %v2438_v24 = vadd.f32 %v5271_v23, %v5269_v31  ;;  %v3857_v26 = vpop.eup %3856 }
 0x436   : > { %2753 = vmatmul.mubr.bf16.vlgmr.msra.gmra.mxu1 %v2660_v62  ;;  %3876 = vrcp.f32 %v2464_v43  ;;  %v2605_v42 = vmul.f32 %v3857_v26, %v5047_v21  ;;  %v2604_v27 = vmul.f32 %v3857_v26, %v5043_v50 }
 0x437   : > { %v5275_v46 = vpop.eup %3858  ;;  %2439 = vadd.xlane.f32.xlu0 %v2438_v24 }
 0x438   : > { %v5277_v29 = vpop.eup %3860 }
 0x439   : > { %v3863_v16 = vpop.eup %3862  ;;  %v2467_v25 = vpop.xlane.xlu1 %2466  ;;  %v2441_v3 = vadd.f32 %v5277_v29, %v5275_v46 }
 0x43a   : > { %3878 = vrcp.f32 %v2467_v25  ;;  %v2607_v51 = vmul.f32 %v3863_v16, %v5061_v6  ;;  %v2606_v11 = vmul.f32 %v3863_v16, %v5057_v44 }
 0x43b   : > { %v5285_v20 = vpop.eup %3864  ;;  %2442 = vadd.xlane.f32.xlu1 %v2441_v3 }
 0x43c   : > { %v5287_v49 = vpop.eup %3866  ;;  %v2663_v19 = vpack.c.bf16 %v2607_v51, %v2605_v42  ;;  %v2662_v28 = vpack.c.bf16 %v2606_v11, %v2604_v27 }
 0x43d   : > { %v2470_v18 = vpop.xlane.xlu0 %2469  ;;  %v2522_v22 = vadd.f32 %v5287_v49, %v5285_v20  ;;  %v3869_v4 = vpop.eup %3868 }
 0x43e   : > { %2760 = vmatprep.mubr.bf16.mxu1 %v2663_v19  ;;  %3880 = vrcp.f32 %v2470_v18  ;;  %v2609_v40 = vmul.f32 %v3869_v4, %v5075_v63  ;;  %v2608_v56 = vmul.f32 %v3869_v4, %v5071_v13 }
 0x43f   : > { %v5291_v21 = vpop.eup %3870  ;;  %2761 = vmatmul.mubr.bf16.gmra.mxu1 %v2662_v28  ;;  %2523 = vadd.xlane.f32.xlu0 %v2522_v22 }
 0x440   : > { %v5293_v50 = vpop.eup %3872 }
 0x441   : > { %v3875_v44 = vpop.eup %3874  ;;  %v2473_v6 = vpop.xlane.xlu1 %2472  ;;  %v2525_v47 = vadd.f32 %v5293_v50, %v5291_v21 }
 0x442   : > { %3882 = vrcp.f32 %v2473_v6  ;;  %v2611_v62 = vmul.f32 %v3875_v44, %v5085_v32  ;;  %v2610_v43 = vmul.f32 %v3875_v44, %v5083_v34 }
 0x443   : > { %2526 = vadd.xlane.f32.xlu1 %v2525_v47  ;;  %v3877_v16 = vpop.eup %3876 }
 0x444   : > { %v2665_v24 = vpack.c.bf16 %v2611_v62, %v2609_v40  ;;  %v2664_v26 = vpack.c.bf16 %v2610_v43, %v2608_v56  ;;  %v2613_v42 = vmul.f32 %v3877_v16, %v5093_v8  ;;  %v2612_v13 = vmul.f32 %v3877_v16, %v5091_v12 }
 0x445   : > { %v2476_v25 = vpop.xlane.xlu0 %2475 }
 0x446   : > { %2768 = vmatprep.mubr.bf16.mxu1 %v2665_v24  ;;  %3884 = vrcp.f32 %v2476_v25 }
 0x447   : > { %v3879_v3 = vpop.eup %3878  ;;  %2769 = vmatmul.mubr.bf16.gmra.mxu1 %v2664_v26 }
 0x448   : > { %v2615_v63 = vmul.f32 %v3879_v3, %v5101_v1  ;;  %v2614_v51 = vmul.f32 %v3879_v3, %v5099_v37 }
 0x449   : > { %v2479_v32 = vpop.xlane.xlu1 %2478 }
 0x44a   : > { %3886 = vrcp.f32 %v2479_v32  ;;  %v2667_v34 = vpack.c.bf16 %v2615_v63, %v2613_v42  ;;  %v2666_v27 = vpack.c.bf16 %v2614_v51, %v2612_v13  ;;  %v5606_v13 = vld [vmem:[#allocation28_spill] sm:$0xff] }
 0x44b   : > { %v3881_v11 = vpop.eup %3880 }
 0x44c   : > { %2776 = vmatprep.mubr.bf16.mxu1 %v2667_v34  ;;  %v2617_v18 = vmul.f32 %v3881_v11, %v5109_v45  ;;  %v2616_v37 = vmul.f32 %v3881_v11, %v5107_v41 }
 0x44d   : > { %v2482_v19 = vpop.xlane.xlu0 %2481 }
 0x44e   : > { %3888 = vrcp.f32 %v2482_v19 }
 0x44f   : > { %v3883_v28 = vpop.eup %3882  ;;  %2777 = vmatmul.mubr.bf16.gmra.mxu1 %v2666_v27 }
 0x450   : > { %v2619_v8 = vmul.f32 %v3883_v28, %v5117_v2  ;;  %v2618_v1 = vmul.f32 %v3883_v28, %v5115_v10 }
 0x451   : > { %v2485_v22 = vpop.xlane.xlu1 %2484 }
 0x452   : > { %3890 = vrcp.f32 %v2485_v22  ;;  %v2669_v12 = vpack.c.bf16 %v2619_v8, %v2617_v18  ;;  %v2668_v4 = vpack.c.bf16 %v2618_v1, %v2616_v37  ;;  %v5609_v1 = vld [vmem:[#allocation27_spill] sm:$0xff] }
 0x453   : > { %v3885_v44 = vpop.eup %3884  ;;  %v5610_v37 = vld [vmem:[#allocation31_spill] sm:$0xff] }
 0x454   : > { %2784 = vmatprep.mubr.bf16.mxu1 %v2669_v12  ;;  %v2621_v40 = vmul.f32 %v3885_v44, %v5125_v53  ;;  %v2620_v10 = vmul.f32 %v3885_v44, %v5123_v61  ;;  %v5611_v44 = vld [vmem:[#allocation19_spill] sm:$0xff] }
 0x455   : > { %v2488_v6 = vpop.xlane.xlu0 %2487 }
 0x456   : > { %3892 = vrcp.f32 %v2488_v6 }
 0x457   : > { %v3887_v47 = vpop.eup %3886  ;;  %2785 = vmatmul.mubr.bf16.gmra.mxu1 %v2668_v4 }
 0x458   : > { %v2623_v45 = vmul.f32 %v3887_v47, %v5133_v9  ;;  %v2622_v2 = vmul.f32 %v3887_v47, %v5131_v7 }
 0x459   : > { %v2491_v62 = vpop.xlane.xlu1 %2490 }
 0x45a   : > { %3894 = vrcp.f32 %v2491_v62  ;;  %v2671_v41 = vpack.c.bf16 %v2623_v45, %v2621_v40  ;;  %v2670_v56 = vpack.c.bf16 %v2622_v2, %v2620_v10 }
 0x45b   : > { %v3889_v43 = vpop.eup %3888 }
 0x45c   : > { %2792 = vmatprep.mubr.bf16.mxu1 %v2671_v41  ;;  %v2625_v16 = vmul.f32 %v3889_v43, %v5141_v55  ;;  %v2624_v7 = vmul.f32 %v3889_v43, %v5139_v39  ;;  %v5607_v55 = vld [vmem:[#allocation24_spill] sm:$0xff] }
 0x45d   : > { %v2494_v24 = vpop.xlane.xlu0 %2493 }
 0x45e   : > { %3896 = vrcp.f32 %v2494_v24 }
 0x45f   : > { %v3891_v26 = vpop.eup %3890  ;;  %2793 = vmatmul.mubr.bf16.gmra.mxu1 %v2670_v56 }
 0x460   : > { %v2627_v53 = vmul.f32 %v3891_v26, %v5149_v60  ;;  %v2626_v9 = vmul.f32 %v3891_v26, %v5147_v58  ;;  %v5608_v60 = vld [vmem:[#allocation17_spill] sm:$0xff] }
 0x461   : > { %v2497_v25 = vpop.xlane.xlu1 %2496 }
 0x462   : > { %3898 = vrcp.f32 %v2497_v25  ;;  %v2673_v61 = vpack.c.bf16 %v2627_v53, %v2625_v16  ;;  %v2672_v3 = vpack.c.bf16 %v2626_v9, %v2624_v7 }
 0x463   : > { %v3893_v42 = vpop.eup %3892 }
 0x464   : > { %2800 = vmatprep.mubr.bf16.mxu1 %v2673_v61  ;;  %v2629_v32 = vmul.f32 %v3893_v42, %v5157_v38  ;;  %v2628_v11 = vmul.f32 %v3893_v42, %v5608_v60 }
 0x465   : > { %v2500_v51 = vpop.xlane.xlu0 %2499 }
 0x466   : > { %3900 = vrcp.f32 %v2500_v51 }
 0x467   : > { %v3895_v63 = vpop.eup %3894  ;;  %2801 = vmatmul.mubr.bf16.gmra.mxu1 %v2672_v3 }
 0x468   : > { %v2631_v34 = vmul.f32 %v3895_v63, %v5606_v13  ;;  %v2630_v27 = vmul.f32 %v3895_v63, %v5607_v55 }
 0x469   : > { %v2503_v19 = vpop.xlane.xlu1 %2502 }
 0x46a   : > { %v2675_v58 = vpack.c.bf16 %v2631_v34, %v2629_v32  ;;  %v2674_v39 = vpack.c.bf16 %v2630_v27, %v2628_v11  ;;  %3902 = vrcp.f32 %v2503_v19  ;;  %v5612_v11 = vld [vmem:[#allocation30_spill] sm:$0xff]  ;;  %v5613_v19 = vld [vmem:[#allocation23_spill] sm:$0xff] }
 0x46b   : > { %v3897_v28 = vpop.eup %3896 }
 0x46c   : > { %2808 = vmatprep.mubr.bf16.mxu1 %v2675_v58  ;;  %v2633_v22 = vmul.f32 %v3897_v28, %v5609_v1  ;;  %v2632_v6 = vmul.f32 %v3897_v28, %v5611_v44  ;;  %v5614_v28 = vld [vmem:[#allocation34_spill] sm:$0xff]  ;;  %v5616_v1 = vld [vmem:[#allocation29_spill] sm:$0xff] }
 0x46d   : > { %v2506_v8 = vpop.xlane.xlu0 %2505 }
 0x46e   : > { %3904 = vrcp.f32 %v2506_v8  ;;  %v5615_v8 = vld [vmem:[#allocation33_spill] sm:$0xff] }
 0x46f   : > { %v3899_v18 = vpop.eup %3898  ;;  %2809 = vmatmul.mubr.bf16.gmra.mxu1 %v2674_v39 }
 0x470   : > { %v2635_v38 = vmul.f32 %v3899_v18, %v5181_v15  ;;  %v2634_v12 = vmul.f32 %v3899_v18, %v5610_v37 }
 0x471   : > { %v2509_v4 = vpop.xlane.xlu1 %2508 }
 0x472   : > { %3906 = vrcp.f32 %v2509_v4  ;;  %v2677_v47 = vpack.c.bf16 %v2635_v38, %v2633_v22  ;;  %v2676_v40 = vpack.c.bf16 %v2634_v12, %v2632_v6  ;;  %v5617_v38 = vld [vmem:[#allocation37_spill] sm:$0xff]  ;;  %v5618_v12 = vld [vmem:[#allocation26_spill] sm:$0xff] }
 0x473   : > { %v3901_v2 = vpop.eup %3900 }
 0x474   : > { %2816 = vmatprep.mubr.bf16.mxu1 %v2677_v47  ;;  %v2637_v56 = vmul.f32 %v3901_v2, %v5191_v14  ;;  %v2636_v43 = vmul.f32 %v3901_v2, %v5189_v33 }
 0x475   : > { %v2512_v45 = vpop.xlane.xlu0 %2511 }
 0x476   : > { %3908 = vrcp.f32 %v2512_v45 }
 0x477   : > { %2817 = vmatmul.mubr.bf16.gmra.mxu1 %v2676_v40  ;;  %v3903_v62 = vpop.eup %3902 }
 0x478   : > { %v2639_v15 = vmul.f32 %v3903_v62, %v5201_v54  ;;  %v2638_v24 = vmul.f32 %v3903_v62, %v5199_v52 }
 0x479   : > { %v2434_v10 = vpop.xlane.xlu0 %2433  ;;  %v2515_v41 = vpop.xlane.xlu1 %2514 }
 0x47a   : > { %3910 = vrcp.f32 %v2515_v41  ;;  %v2679_v26 = vpack.c.bf16 %v2639_v15, %v2637_v56  ;;  %v2678_v16 = vpack.c.bf16 %v2638_v24, %v2636_v43 }
 0x47b   : > { %v3905_v53 = vpop.eup %3904  ;;  %3912 = vrcp.f32 %v2434_v10 }
 0x47c   : > { %2824 = vmatprep.mubr.bf16.mxu1 %v2679_v26  ;;  %v2641_v14 = vmul.f32 %v3905_v53, %v5209_v0  ;;  %v2640_v52 = vmul.f32 %v3905_v53, %v5207_v48 }
 0x47d   : > { %v2518_v9 = vpop.xlane.xlu0 %2517  ;;  %v2437_v25 = vpop.xlane.xlu1 %2436 }
 0x47e   : > { %3914 = vrcp.f32 %v2437_v25 }
 0x47f   : > { %v3907_v7 = vpop.eup %3906  ;;  %2825 = vmatmul.mubr.bf16.gmra.mxu1 %v2678_v16  ;;  %3916 = vrcp.f32 %v2518_v9 }
 0x480   : > { %v2643_v54 = vmul.f32 %v3907_v7, %v5217_v57  ;;  %v2642_v33 = vmul.f32 %v3907_v7, %v5213_v30 }
 0x481   : > { %v2521_v61 = vpop.xlane.xlu1 %2520 }
 0x482   : > { %3918 = vrcp.f32 %v2521_v61  ;;  %v2681_v3 = vpack.c.bf16 %v2643_v54, %v2641_v14  ;;  %v2680_v42 = vpack.c.bf16 %v2642_v33, %v2640_v52 }
 0x483   : > { %v3909_v63 = vpop.eup %3908 }
 0x484   : > { %2832 = vmatprep.mubr.bf16.mxu1 %v2681_v3  ;;  %v2645_v32 = vmul.f32 %v3909_v63, %v5223_v59  ;;  %v2644_v0 = vmul.f32 %v3909_v63, %v5221_v36 }
 0x487   : > { %2833 = vmatmul.mubr.bf16.gmra.mxu1 %v2680_v42  ;;  %v3911_v51 = vpop.eup %3910 }
 0x488   : > { %v2647_v13 = vmul.f32 %v3911_v51, %v5233_v5  ;;  %v2646_v57 = vmul.f32 %v3911_v51, %v5231_v17  ;;  %v3913_v34 = vpop.eup %3912 }
 0x489   : > { %v2592_v60 = vmul.f32 %v3913_v34, %v5225_v35  ;;  %v2593_v39 = vmul.f32 %v3913_v34, %v5613_v19 }
 0x48a   : > { %v2683_v30 = vpack.c.bf16 %v2647_v13, %v2645_v32  ;;  %v2682_v55 = vpack.c.bf16 %v2646_v57, %v2644_v0 }
 0x48b   : > { %v3915_v27 = vpop.eup %3914 }
 0x48c   : > { %v3917_v48 = vpop.eup %3916  ;;  %v2594_v58 = vmul.f32 %v3915_v27, %v5612_v11  ;;  %2840 = vmatprep.mubr.bf16.mxu1 %v2683_v30  ;;  %v2595_v59 = vmul.f32 %v3915_v27, %v5614_v28 }
 0x48d   : > { %v2649_v17 = vmul.f32 %v3917_v48, %v5615_v8  ;;  %v2648_v35 = vmul.f32 %v3917_v48, %v5618_v12 }
 0x48e   : > { %v2656_v5 = vpack.c.bf16 %v2594_v58, %v2592_v60  ;;  %v2657_v36 = vpack.c.bf16 %v2595_v59, %v2593_v39 }
 0x48f   : > { %v3919_v18 = vpop.eup %3918  ;;  %2841 = vmatmul.mubr.bf16.gmra.mxu1 %v2682_v55 }
 0x490   : > { %v2651_v22 = vmul.f32 %v3919_v18, %v5616_v1  ;;  %v2650_v37 = vmul.f32 %v3919_v18, %v5617_v38  ;;  %2736 = vmatprep.mubr.bf16.mxu0 %v2657_v36 }
 0x491   : > { %2737 = vmatmul.mubr.bf16.vlgmr.msra.gmra.mxu0 %v2656_v5 }
 0x492   : > { %v2685_v4 = vpack.c.bf16 %v2651_v22, %v2649_v17  ;;  %v2684_v44 = vpack.c.bf16 %v2650_v37, %v2648_v35 }
 0x494   : > { %2848 = vmatprep.mubr.bf16.mxu1 %v2685_v4 }
 0x497   : > { %2849 = vmatmul.mubr.bf16.gmra.mxu1 %v2684_v44 }
 0x4c0   : > { %v2440_v6 = vpop.xlane.xlu0 %2439 }
 0x4c1   : > { %3920 = vrcp.f32 %v2440_v6 }
 0x4c4   : > { %v2443_v47 = vpop.xlane.xlu1 %2442 }
 0x4c5   : > { %3922 = vrcp.f32 %v2443_v47 }
 0x4c8   : > { %v2524_v40 = vpop.xlane.xlu0 %2523 }
 0x4c9   : > { %3924 = vrcp.f32 %v2524_v40 }
 0x4cc   : > { %v2527_v45 = vpop.xlane.xlu1 %2526 }
 0x4cd   : > { %3926 = vrcp.f32 %v2527_v45 }
 0x4ce   : > { %v3921_v2 = vpop.eup %3920 }
 0x4cf   : > { %v2597_v10 = vmul.f32 %v3921_v2, %v5271_v23  ;;  %v2596_v56 = vmul.f32 %v3921_v2, %v5269_v31 }
 0x4d2   : > { %v3923_v62 = vpop.eup %3922 }
 0x4d3   : > { %v2599_v41 = vmul.f32 %v3923_v62, %v5277_v29  ;;  %v2598_v15 = vmul.f32 %v3923_v62, %v5275_v46 }
 0x4d5   : > { %v2659_v43 = vpack.c.bf16 %v2599_v41, %v2597_v10  ;;  %v2658_v24 = vpack.c.bf16 %v2598_v15, %v2596_v56 }
 0x4d6   : > { %v3925_v26 = vpop.eup %3924 }
 0x4d7   : > { %2744 = vmatprep.mubr.bf16.mxu0 %v2659_v43  ;;  %v2653_v53 = vmul.f32 %v3925_v26, %v5287_v49  ;;  %v2652_v25 = vmul.f32 %v3925_v26, %v5285_v20 }
 0x4d8   : > { %2745 = vmatmul.mubr.bf16.gmra.mxu0 %v2658_v24 }
 0x4da   : > { %v3927_v16 = vpop.eup %3926 }
 0x4db   : > { %v2655_v9 = vmul.f32 %v3927_v16, %v5293_v50  ;;  %v2654_v23 = vmul.f32 %v3927_v16, %v5291_v21 }
 0x4dd   : > { %v2687_v29 = vpack.c.bf16 %v2655_v9, %v2653_v53  ;;  %v2686_v7 = vpack.c.bf16 %v2654_v23, %v2652_v25 }
 0x4df   : > { %2856 = vmatprep.mubr.bf16.mxu1 %v2687_v29 }
 0x4e0   : > { %2857 = vmatmul.mubr.bf16.gmra.mxu1 %v2686_v7 }
 0x4f6   : > { %v3351_v31 = vpop.f32.mrf.mxu1 }
 0x4f8   : > { %v3352_v46 = vpop.f32.mrf.mxu1 }
 0x4f9   : > { %v3353_v14 = vadd.f32 %v3352_v46, %v3351_v31 }
 0x4fa   : > { %v3354_v54 = vpop.f32.mrf.mxu1 }
 0x4fb   : > { %2869 = vst [vmem:[%s5354_s20 + $0x20] sm:$0xff] %v3353_v14 }
 0x4fc   : > { %v3355_v20 = vpop.f32.mrf.mxu1 }
 0x4fd   : > { %v3356_v49 = vadd.f32 %v3355_v20, %v3354_v54 }
 0x4ff   : > { %2870 = vst [vmem:[%s5354_s20 + $0x28] sm:$0xff] %v3356_v49  ;;  %v3357_v21 = vpop.f32.mrf.mxu1 }
 0x501   : > { %v3358_v50 = vpop.f32.mrf.mxu1 }
 0x502   : > { %v3359_v33 = vadd.f32 %v3358_v50, %v3357_v21 }
 0x503   : > { %v3360_v61 = vpop.f32.mrf.mxu1 }
 0x504   : > { %2871 = vst [vmem:[%s5354_s20 + $0x30] sm:$0xff] %v3359_v33 }
 0x505   : > { %v3361_v52 = vpop.f32.mrf.mxu1 }
 0x506   : > { %v3362_v3 = vadd.f32 %v3361_v52, %v3360_v61 }
 0x507   : > { %v3363_v42 = vpop.f32.mrf.mxu1 }
 0x508   : > { %2872 = vst [vmem:[%s5354_s20 + $0x38] sm:$0xff] %v3362_v3 }
 0x509   : > { %v3364_v63 = vpop.f32.mrf.mxu1 }
 0x50a   : > { %v3365_v51 = vadd.f32 %v3364_v63, %v3363_v42 }
 0x50b   : > { %v3366_v32 = vpop.f32.mrf.mxu1 }
 0x50c   : > { %2873 = vst [vmem:[%s5354_s20 + $0x40] sm:$0xff] %v3365_v51 }
 0x50d   : > { %v3367_v13 = vpop.f32.mrf.mxu1 }
 0x50e   : > { %v3368_v0 = vadd.f32 %v3367_v13, %v3366_v32 }
 0x50f   : > { %v3369_v57 = vpop.f32.mrf.mxu1 }
 0x510   : > { %2874 = vst [vmem:[%s5354_s20 + $0x48] sm:$0xff] %v3368_v0 }
 0x511   : > { %v3370_v34 = vpop.f32.mrf.mxu1 }
 0x512   : > { %v3371_v30 = vadd.f32 %v3370_v34, %v3369_v57 }
 0x513   : > { %v3372_v55 = vpop.f32.mrf.mxu1 }
 0x514   : > { %2875 = vst [vmem:[%s5354_s20 + $0x50] sm:$0xff] %v3371_v30 }
 0x515   : > { %v3373_v27 = vpop.f32.mrf.mxu1 }
 0x516   : > { %v3374_v48 = vadd.f32 %v3373_v27, %v3372_v55 }
 0x517   : > { %v3375_v60 = vpop.f32.mrf.mxu1 }
 0x518   : > { %2876 = vst [vmem:[%s5354_s20 + $0x58] sm:$0xff] %v3374_v48 }
 0x519   : > { %v3376_v11 = vpop.f32.mrf.mxu1 }
 0x51a   : > { %v3377_v58 = vadd.f32 %v3376_v11, %v3375_v60 }
 0x51b   : > { %v3378_v19 = vpop.f32.mrf.mxu1 }
 0x51c   : > { %2877 = vst [vmem:[%s5354_s20 + $0x60] sm:$0xff] %v3377_v58 }
 0x51d   : > { %v3379_v39 = vpop.f32.mrf.mxu1 }
 0x51e   : > { %v3380_v28 = vadd.f32 %v3379_v39, %v3378_v19 }
 0x51f   : > { %v3381_v59 = vpop.f32.mrf.mxu1 }
 0x520   : > { %2878 = vst [vmem:[%s5354_s20 + $0x68] sm:$0xff] %v3380_v28 }
 0x521   : > { %v3382_v18 = vpop.f32.mrf.mxu1 }
 0x522   : > { %v3383_v5 = vadd.f32 %v3382_v18, %v3381_v59 }
 0x523   : > { %v3384_v36 = vpop.f32.mrf.mxu1 }
 0x524   : > { %2879 = vst [vmem:[%s5354_s20 + $0x70] sm:$0xff] %v3383_v5 }
 0x525   : > { %v3385_v8 = vpop.f32.mrf.mxu1 }
 0x526   : > { %v3386_v17 = vadd.f32 %v3385_v8, %v3384_v36 }
 0x527   : > { %v3387_v1 = vpop.f32.mrf.mxu1 }
 0x528   : > { %2880 = vst [vmem:[%s5354_s20 + $0x78] sm:$0xff] %v3386_v17 }
 0x529   : > { %v3388_v22 = vpop.f32.mrf.mxu1 }
 0x52a   : > { %v3389_v38 = vadd.f32 %v3388_v22, %v3387_v1 }
 0x52b   : > { %v3390_v37 = vpop.f32.mrf.mxu1 }
 0x52c   : > { %2881 = vst [vmem:[%s5354_s20 + $0x80] sm:$0xff] %v3389_v38 }
 0x52d   : > { %v3391_v12 = vpop.f32.mrf.mxu1 }
 0x52e   : > { %v3392_v35 = vadd.f32 %v3391_v12, %v3390_v37 }
 0x52f   : > { %v3393_v4 = vpop.f32.mrf.mxu1 }
 0x530   : > { %2882 = vst [vmem:[%s5354_s20 + $0x88] sm:$0xff] %v3392_v35 }
 0x531   : > { %v3394_v44 = vpop.f32.mrf.mxu1 }
 0x532   : > { %v3395_v6 = vadd.f32 %v3394_v44, %v3393_v4 }
 0x533   : > { %v3396_v47 = vpop.f32.mrf.mxu1 }
 0x534   : > { %2883 = vst [vmem:[%s5354_s20 + $0x90] sm:$0xff] %v3395_v6 }
 0x535   : > { %v3397_v40 = vpop.f32.mrf.mxu1 }
 0x536   : > { %v3398_v45 = vadd.f32 %v3397_v40, %v3396_v47 }
 0x537   : > { %v3399_v2 = vpop.f32.mrf.mxu1 }
 0x538   : > { %2884 = vst [vmem:[%s5354_s20 + $0x98] sm:$0xff] %v3398_v45 }
 0x539   : > { %v3400_v62 = vpop.f32.mrf.mxu1 }
 0x53a   : > { %v3401_v10 = vadd.f32 %v3400_v62, %v3399_v2 }
 0x53b   : > { %v3402_v41 = vpop.f32.mrf.mxu1 }
 0x53c   : > { %2885 = vst [vmem:[%s5354_s20 + $0xa0] sm:$0xff] %v3401_v10 }
 0x53d   : > { %v3403_v56 = vpop.f32.mrf.mxu1 }
 0x53e   : > { %v3404_v15 = vadd.f32 %v3403_v56, %v3402_v41 }
 0x53f   : > { %v3405_v43 = vpop.f32.mrf.mxu1 }
 0x540   : > { %2886 = vst [vmem:[%s5354_s20 + $0xa8] sm:$0xff] %v3404_v15 }
 0x541   : > { %v3406_v24 = vpop.f32.mrf.mxu1 }
 0x542   : > { %v3407_v26 = vadd.f32 %v3406_v24, %v3405_v43 }
 0x543   : > { %v3408_v16 = vpop.f32.mrf.mxu1 }
 0x544   : > { %2887 = vst [vmem:[%s5354_s20 + $0xb0] sm:$0xff] %v3407_v26 }
 0x545   : > { %v3409_v53 = vpop.f32.mrf.mxu1 }
 0x546   : > { %v3410_v9 = vadd.f32 %v3409_v53, %v3408_v16 }
 0x547   : > { %v3411_v25 = vpop.f32.mrf.mxu1 }
 0x548   : > { %2888 = vst [vmem:[%s5354_s20 + $0xb8] sm:$0xff] %v3410_v9 }
 0x549   : > { %v3412_v23 = vpop.f32.mrf.mxu1 }
 0x54a   : > { %v3413_v29 = vadd.f32 %v3412_v23, %v3411_v25 }
 0x54b   : > { %v3414_v7 = vpop.f32.mrf.mxu1 }
 0x54c   : > { %2889 = vst [vmem:[%s5354_s20 + $0xc0] sm:$0xff] %v3413_v29 }
 0x54d   : > { %v3415_v31 = vpop.f32.mrf.mxu1 }
 0x54e   : > { %v3416_v46 = vadd.f32 %v3415_v31, %v3414_v7 }
 0x54f   : > { %v3417_v14 = vpop.f32.mrf.mxu1 }
 0x550   : > { %2890 = vst [vmem:[%s5354_s20 + $0xc8] sm:$0xff] %v3416_v46 }
 0x551   : > { %v3418_v54 = vpop.f32.mrf.mxu1  ;;  %v3339_v49 = vpop.f32.mrf.mxu0 }
 0x552   : > { %v3419_v20 = vadd.f32 %v3418_v54, %v3417_v14 }
 0x553   : > { %v3420_v21 = vpop.f32.mrf.mxu1  ;;  %v3340_v50 = vpop.f32.mrf.mxu0 }
 0x554   : > { %2891 = vst [vmem:[%s5354_s20 + $0xd0] sm:$0xff] %v3419_v20  ;;  %v3341_v33 = vadd.f32 %v3340_v50, %v3339_v49 }
 0x555   : > { %v3421_v61 = vpop.f32.mrf.mxu1  ;;  %v3342_v3 = vpop.f32.mrf.mxu0 }
 0x556   : > { %v3422_v52 = vadd.f32 %v3421_v61, %v3420_v21  ;;  %2865 = vst [vmem:[%s5354_s20] sm:$0xff] %v3341_v33 }
 0x557   : > { %v3423_v42 = vpop.f32.mrf.mxu1  ;;  %v3343_v63 = vpop.f32.mrf.mxu0 }
 0x558   : > { %2892 = vst [vmem:[%s5354_s20 + $0xd8] sm:$0xff] %v3422_v52  ;;  %v3344_v51 = vadd.f32 %v3343_v63, %v3342_v3 }
 0x559   : > { %v3424_v32 = vpop.f32.mrf.mxu1 }
 0x55a   : > { %v3425_v13 = vadd.f32 %v3424_v32, %v3423_v42  ;;  %2866 = vst [vmem:[%s5354_s20 + $0x8] sm:$0xff] %v3344_v51 }
 0x55b   : > { %v3426_v0 = vpop.f32.mrf.mxu1 }
 0x55c   : > { %2893 = vst [vmem:[%s5354_s20 + $0xe0] sm:$0xff] %v3425_v13 }
 0x55d   : > { %v3427_v57 = vpop.f32.mrf.mxu1 }
 0x55e   : > { %v3428_v34 = vadd.f32 %v3427_v57, %v3426_v0 }
 0x560   : > { %2894 = vst [vmem:[%s5354_s20 + $0xe8] sm:$0xff] %v3428_v34 }
 0x598   : > { %v3345_v30 = vpop.f32.mrf.mxu0 }
 0x59a   : > { %v3346_v55 = vpop.f32.mrf.mxu0 }
 0x59b   : > { %v3347_v27 = vadd.f32 %v3346_v55, %v3345_v30 }
 0x59c   : > { %v3348_v48 = vpop.f32.mrf.mxu0 }
 0x59d   : > { %2867 = vst [vmem:[%s5354_s20 + $0x10] sm:$0xff] %v3347_v27 }
 0x59e   : > { %v3349_v60 = vpop.f32.mrf.mxu0 }
 0x59f   : > { %v3350_v11 = vadd.f32 %v3349_v60, %v3348_v48 }
 0x5a0   : > { %v3429_v58 = vpop.f32.mrf.mxu1 }
 0x5a1   : > { %2868 = vst [vmem:[%s5354_s20 + $0x18] sm:$0xff] %v3350_v11 }
 0x5a2   : > { %v3430_v19 = vpop.f32.mrf.mxu1 }
 0x5a3   : > { %v3431_v39 = vadd.f32 %v3430_v19, %v3429_v58 }
 0x5a4   : > { %v3432_v28 = vpop.f32.mrf.mxu1 }
 0x5a5   : > { %2895 = vst [vmem:[%s5354_s20 + $0xf0] sm:$0xff] %v3431_v39 }
 0x5a6   : > { %v3433_v59 = vpop.f32.mrf.mxu1 }
 0x5a7   : > { %v3434_v18 = vadd.f32 %v3433_v59, %v3432_v28 }
 0x5a9   : > { %2896 = vst [vmem:[%s5354_s20 + $0xf8] sm:$0xff] %v3434_v18 }
 0x5aa   : > { %4021 = shalt.err (!%p4018_p3)
}
 0x5ab   : > { %s4022_s23 = scalar_lea.hbm %s5392_s5, 4096  ;;  %s4026_s8 = scalar_lea.hbm %s5441_s3, 8192 }
 0x5ac   : > { %p4023_p2 = scmp.ne.s32.totalorder %s5392_s5, %s4022_s23  ;;  %p4027_p4 = scmp.lt.s32.totalorder %s5392_s5, %s5441_s3 }
 0x5ad   : > { %p4028_p6 = scmp.lt.s32.totalorder %s4026_s8, %s4022_s23 }
 0x5ae   : > { %p4024_p9 = pnand %p4023_p2, %p5619_p11 }
 0x5af   : > { %p4029_p8 = por %p4028_p6, %p4027_p4 }
 0x5b0   : > { %p4025_p1 = pneg %p4024_p9 }
 0x5b2   : > { %p4030_p10 = pnand %p4029_p8, %p4025_p1 }
 0x5b4   : > { %4033 = shalt.err (!%p4030_p10)
}
 0x5b5   : > { %s4087_s18 = smov 128   ;;  %s4088_s20 = smov 8  }
 0x5b6   : > { %3512 = dma.vmem_to_hbm [thread:$0]  (%p5619_p11), %s5394_s28, 4096, %s5392_s5, %s2898_s6, %s4087_s18, %s4087_s18, %s4088_s20  }
 0x5b7 PF: > { %s2926_s27 = sand.u32 1, %s4064_s12   ;;  %p5620_p7 = scmp.ne.s32.totalorder %s5477_s19, 0 }
 0x5b8   : > { %p5621_p12 = scmp.ge.s32.totalorder %s4076_s15, 2  ;;  %s2927_s25 = scalar_lea.sflag [#allocation4], %s2926_s27 }
 0x5ba   : > { %p3526_p13 = pnand %p5621_p12, %p5620_p7 }
 0x5bc   : > { %p3527_p0 = pneg %p3526_p13 }
 0x5be   : > { %4059 = dma.done.wait (%p3527_p0), %s2927_s25, 4096  }
 0x5bf   : > { %4061 = vsyncadd (%p3527_p0), %s2927_s25, 4294963200  ;;  %p17_p5 = scmp.ge.s32.totalorder %s4184_s9, 4   ;;  %s5622_s12 = smov %s4068_s13 }
 0x5c0   : > { %s5623_s13 = smov %s4072_s14  ;;  %s5624_s14 = smov %s4193_s17 }
 0x5c1   : > { %s5625_s15 = smov %s4184_s9  ;;  %19 = sbr.rel (!%p17_p5) target bundleno = 6 (0x6), region = 85 }
 0x5c6   :  { %2932 = vsyncpa [#allocation3], 1 }
 0x5c7   :  { %2934 = vsyncpa [#allocation3 + $0x1], 1 }
 0x5c8   :  { %2935 = vsyncpa [#allocation6], 1 }
 0x5c9   :  { %2936 = vsyncpa [#allocation4], 1 }
 0x5ca   :  { %2938 = vsyncpa [#allocation4 + $0x1], 1 }

</bundles_post_ra>
